<compile_context>
chip_gen: v6e
topology: v6e:2x2x1
jax: 0.10.0
libtpu: 0.0.40
codegen_flags: <defaults>
</compile_context>

<pallas_src>
import jax
import jax.numpy as jnp
from jax.experimental import pallas as pl
from jax.experimental.pallas import tpu as pltpu

_BN_EPS = 1e-5

_MATMUL_IN_BF16 = True
_MM_DTYPE = jnp.bfloat16 if _MATMUL_IN_BF16 else jnp.float32

# Batch rows per grid step (the sublane axis of every activation tile).  Must be a
# multiple of 8 (f32 sublane tile) so the leading-dim reshapes below are tile-exact.
# Raise to 32-128 for production batches, keeping the grid length >= 2 on v7x.
_TILE_B = 8


def _mm(a, w):
    """MXU matmul with f32 accumulation; LHS cast to the (possibly bf16) weight dtype."""
    return jnp.dot(a.astype(w.dtype), w, preferred_element_type=jnp.float32)


def _conv3_taps(x, w_ref, b):
    """Conv1d(kernel=3, stride=1, padding=1, padding_mode='replicate'), length-leading.

    x: (L, Bt, Cin).  w_ref: (3, Cin, Cout) with w_ref[k][ci, co] == torch_weight[co, ci, k].
    Three per-tap matmuls whose (.., Cout) outputs are lane-aligned for any Cout; the
    +/-1 tap shifts (replicate edges) are applied along the LEADING length axis, i.e.
    whole (Bt, Cout) slab moves -> no shifted-input copies, no misaligned lane slices.
    TODO(synk): for the full-size model (Cout multiple of 128) keep an N-fused single
                matmul, and on v6e/v7x consider K-fusion (3*Cin contraction) instead.
    """
    L, Bt, Cin = x.shape
    Cout = w_ref.shape[-1]
    if Cin == 1:
        # K=1 contraction == lane-broadcast multiply; skip degenerate MXU matmuls.
        p0, p1, p2 = (x * w_ref[k] for k in range(3))          # (L, Bt, 1)*(1, Cout)
    else:
        x2 = x.reshape(L * Bt, Cin)                             # tile-exact (Bt == 8)
        p0, p1, p2 = (_mm(x2, w_ref[k]).reshape(L, Bt, Cout) for k in range(3))
    p0 = jnp.concatenate([p0[:1], p0[:-1]], axis=0)             # x[l-1] tap, replicate left
    p2 = jnp.concatenate([p2[1:], p2[-1:]], axis=0)             # x[l+1] tap, replicate right
    return p0 + p1 + p2 + b


def _maxpool3s2(x):
    """MaxPool1d(kernel=3, stride=2, padding=1) along the leading (length) axis; L even.

    out[j] = max(x[2j-1], x[2j], x[2j+1]); the left pad is -inf (PyTorch pads max-pool
    with -inf), the right pad is never touched for even L.  The stride-2 selection is a
    leading-dims-only reshape (no data movement) + static leading-dim index, so the
    whole pool stays in registers -- no VMEM scratch round-trip (drops the old
    hbuf/rbuf scratch buffers entirely).
    """
    L, Bt, C = x.shape
    xr = x.reshape(L // 2, 2, Bt, C)
    x_even, x_odd = xr[:, 0], xr[:, 1]                          # x[2j], x[2j+1]
    neg = jnp.full((1, Bt, C), -jnp.inf, dtype=x.dtype)
    x_prev = jnp.concatenate([neg, x_odd[:-1]], axis=0)         # x[2j-1]
    return jnp.maximum(jnp.maximum(x_even, x_odd), x_prev)


def _make_gennet_kernel(num_blocks, num_class):
    """Fused forward: encoder blocks -> LSTM final hidden state -> MLP head."""

    def kernel(*refs):
        k = 0
        x_ref = refs[k]; k += 1
        blk_refs = refs[k:k + 6 * num_blocks]; k += 6 * num_blocks
        wih_ref, whh_ref, bl_ref = refs[k:k + 3]; k += 3
        hw1_ref, hb1_ref, hw2_ref, hb2_ref = refs[k:k + 4]; k += 4
        out_ref = refs[k]; k += 1
        xp_ref = refs[k]                 # (T, TILE_B, 4H) VMEM scratch: staged LSTM inputs

        y = x_ref[...]                   # (L, Bt, 1): one batch tile, length-leading
        res = y                          # residual = raw input captured BEFORE the block/BN
                                         # (matches Encoder.forward: res = x, then block(x))

        # ---- Encoder: Block(BN -> conv3 -> ReLU -> conv3 -> ReLU) -> +res -> pool ----
        for bi in range(num_blocks):
            (scale_ref, shift_ref, w1_ref, b1_ref,
             w2_ref, b2_ref) = blk_refs[6 * bi:6 * bi + 6]
            xn = y * scale_ref[...] + shift_ref[...]          # BatchNorm1d (eval, pre-folded)
            h = jnp.maximum(_conv3_taps(xn, w1_ref, b1_ref[...]), 0.0)
            h = jnp.maximum(_conv3_taps(h, w2_ref, b2_ref[...]), 0.0)
            h = h + res                                       # == x += res.repeat(1, C, 1)
            y = _maxpool3s2(h)
            res = _maxpool3s2(res)

        # ---- LSTM (1 layer, batch_first, zero init state; PyTorch gate order i|f|g|o) ----
        T, Bt, C = y.shape
        H = whh_ref.shape[0]
        # Input projection hoisted out of the recurrence as ONE (T*Bt, C)@(C, 4H) matmul,
        # staged time-major in VMEM so the recurrence only does a leading-axis read.
        xp = _mm(y.reshape(T * Bt, C), wih_ref[...]) + bl_ref[...]
        xp_ref[...] = xp.reshape(T, Bt, 4 * H)
        whh = whh_ref[...]                                    # resident (H, 4H) weight

        def step(t, carry):
            h_t, c_t = carry
            g = xp_ref[t] + _mm(h_t, whh)                     # (Bt, 4H) fused gates
            i_g = jax.nn.sigmoid(g[:, 0 * H:1 * H])
            f_g = jax.nn.sigmoid(g[:, 1 * H:2 * H])
            g_g = jnp.tanh(g[:, 2 * H:3 * H])
            o_g = jax.nn.sigmoid(g[:, 3 * H:4 * H])
            c_n = f_g * c_t + i_g * g_g
            h_n = o_g * jnp.tanh(c_n)
            return h_n, c_n

        init = (jnp.zeros((Bt, H), jnp.float32), jnp.zeros((Bt, H), jnp.float32))
        if T <= 16:
            # Short fixed trip count: fully unroll for LLO scheduler visibility.
            h_t, _ = jax.lax.fori_loop(0, T, step, init, unroll=True)
        else:
            # Production T (= L / 2**num_blocks): rolled loop bounds vreg live ranges and
            # compile time.  TODO(synk): sweep a small partial unroll factor (e.g. 4).
            h_t, _ = jax.lax.fori_loop(0, T, step, init)

        # ---- MLP head: Linear -> (Dropout = identity in eval) -> ReLU -> Linear ----
        z = jnp.maximum(_mm(h_t, hw1_ref[...]) + hb1_ref[...], 0.0)
        if num_class == 1:
            # N=1 matmul wastes an MXU push + width-1 FIFO pop; do it on the VPU/XLU as a
            # lane-broadcast multiply + lane reduction (hw2 passed as a (1, h_size) row).
            out_ref[...] = jnp.sum(z * hw2_ref[...], axis=-1, keepdims=True) + hb2_ref[...]
        else:
            out_ref[...] = _mm(z, hw2_ref[...]) + hb2_ref[...]

    return kernel


def init_gennet_params(key, enc_chs=(1, 16, 32, 64), lstm_h_size=64, h_size=128, num_class=1):
    """Deterministic synthetic parameters (layouts documented inline)."""
    keys = iter(jax.random.split(key, 8 * (len(enc_chs) - 1) + 16))

    def nrm(shape, scale):
        return (scale * jax.random.normal(next(keys), shape)).astype(jnp.float32)

    blocks = []
    for i in range(len(enc_chs) - 1):
        cin, cout = enc_chs[i], enc_chs[i + 1]
        blocks.append(dict(
            # BatchNorm1d(cin) affine params + running stats.
            gamma=1.0 + nrm((1, cin), 0.1),
            beta=nrm((1, cin), 0.1),
            mean=nrm((1, cin), 0.1),
            var=1.0 + jnp.abs(nrm((1, cin), 0.1)),
            # Conv1d weights stored (3, Cin, Cout); torch layout is (Cout, Cin, 3):
            #   w[k, ci, co] == torch_weight[co, ci, k].
            w1=nrm((3, cin, cout), (3 * cin) ** -0.5),
            b1=nrm((1, cout), 0.02),
            w2=nrm((3, cout, cout), (3 * cout) ** -0.5),
            b2=nrm((1, cout), 0.02),
        ))
    hin = enc_chs[-1]
    lstm = dict(
        # Fused-gate layout, columns [i | f | g | o] (PyTorch order):
        #   wih == weight_ih_l0.T, whh == weight_hh_l0.T,
        #   b   == (bias_ih_l0 + bias_hh_l0)[None, :]   (sum when porting checkpoints).
        wih=nrm((hin, 4 * lstm_h_size), hin ** -0.5),
        whh=nrm((lstm_h_size, 4 * lstm_h_size), lstm_h_size ** -0.5),
        b=nrm((1, 4 * lstm_h_size), 0.02),
    )
    head = dict(
        w1=nrm((lstm_h_size, h_size), lstm_h_size ** -0.5),
        b1=nrm((1, h_size), 0.02),
        w2=nrm((h_size, num_class), h_size ** -0.5),
        b2=nrm((1, num_class), 0.02),
    )
    return dict(blocks=blocks, lstm=lstm, head=head)


@jax.jit
def gennet_forward(params, x):
    """x: (B, L, 1) channels-last == the PyTorch input before its permute to NCW.

    Mirrors GenNet.forward with init_hiden() (zero LSTM state), eval-mode BN/Dropout.
    """
    B, L, _ = x.shape
    num_blocks = len(params["blocks"])
    assert L % (2 ** num_blocks) == 0, "sequence length must be divisible by 2**num_blocks"
    tile_b = _TILE_B

    # ---- Tiny host-side parameter prep: fold BN, cast matmul weights to MXU dtype ----
    flat = []
    for blk in params["blocks"]:
        scale = blk["gamma"] * jax.lax.rsqrt(blk["var"] + _BN_EPS)
        shift = blk["beta"] - blk["mean"] * scale
        flat += [scale, shift,
                 blk["w1"].astype(_MM_DTYPE), blk["b1"],
                 blk["w2"].astype(_MM_DTYPE), blk["b2"]]
    lstm, head = params["lstm"], params["head"]
    lstm_h = lstm["whh"].shape[0]
    num_class = head["w2"].shape[-1]
    # num_class == 1: pass the last linear as a (1, h_size) f32 row for the in-kernel
    # VPU multiply + lane reduction (avoids an N=1 MXU matmul and its narrow result).
    hw2 = head["w2"].T.astype(jnp.float32) if num_class == 1 else head["w2"].astype(_MM_DTYPE)
    flat += [lstm["wih"].astype(_MM_DTYPE), lstm["whh"].astype(_MM_DTYPE), lstm["b"],
             head["w1"].astype(_MM_DTYPE), head["b1"], hw2, head["b2"]]

    # ---- Batch tiling: pad B to a multiple of TILE_B, go length-leading ----
    Bp = ((B + tile_b - 1) // tile_b) * tile_b
    if Bp != B:
        x = jnp.pad(x, ((0, Bp - B), (0, 0), (0, 0)))
    xt = jnp.transpose(x, (1, 0, 2))            # (L, Bp, 1): batch rows on sublanes

    def _w_spec(a):
        # Weights: full-array block with a constant index map -> DMA'd into VMEM once,
        # resident across all grid steps.
        nd = a.ndim
        return pl.BlockSpec(a.shape, lambda g, _nd=nd: (0,) * _nd)
    # TODO(synk): verify in the Mosaic dump that these constant-index inputs are not
    #             double-buffered; if they are, add pipeline_mode=pl.Buffered(1).

    in_specs = [pl.BlockSpec((L, tile_b, 1), lambda g: (0, g, 0))]
    in_specs += [_w_spec(a) for a in flat]

    T = L // (2 ** num_blocks)
    # TODO(synk): for production-scale L / 128-256 channels, tile the length axis with a
    #             1-row halo and size TILE_B so ~3 live (L, TILE_B, Cmax) f32 activations
    #             + the (T, TILE_B, 4H) xp scratch + resident weights fit the budget below
    #             (v7x has only 64 MiB physical VMEM; v5e/v6e can take ~2x larger tiles).
    out = pl.pallas_call(
        _make_gennet_kernel(num_blocks, num_class),
        grid=(Bp // tile_b,),
        out_shape=jax.ShapeDtypeStruct((Bp, num_class), jnp.float32),
        in_specs=in_specs,
        out_specs=pl.BlockSpec((tile_b, num_class), lambda g: (g, 0)),
        scratch_shapes=[pltpu.VMEM((T, tile_b, 4 * lstm_h), jnp.float32)],
        compiler_params=pltpu.CompilerParams(
            dimension_semantics=("parallel",),   # v7x: both TensorCores split the batch tiles
            vmem_limit_bytes=48 * 1024 * 1024),
    )(xt, *flat)
    return out[:B]


if __name__ == "__main__":
    B, L = 16, 32                 # B = 2 batch tiles of 8 -> grid=(2,): both v7x TCs busy
    enc_chs = (1, 16, 32, 64)     # scaled-down version of the reference (1, 64, 128, 256)
    key = jax.random.PRNGKey(0)
    pkey, xkey = jax.random.split(key)
    params = init_gennet_params(pkey, enc_chs=enc_chs, lstm_h_size=64, h_size=128, num_class=1)
    x = jax.random.normal(xkey, (B, L, 1), dtype=jnp.float32)

    out = gennet_forward(params, x)
    jax.block_until_ready(out)
    assert out.shape == (B, 1), out.shape
    print("KERNEL_OK")
</pallas_src>

<mosaic_0001>
module attributes {stable_mosaic.version = 11 : i64} {
  func.func @kernel(%arg0: i32, %arg1: memref<32x8x1xf32, #tpu.memory_space<vmem>>, %arg2: memref<1x1xf32, #tpu.memory_space<vmem>>, %arg3: memref<1x1xf32, #tpu.memory_space<vmem>>, %arg4: memref<3x1x16xbf16, #tpu.memory_space<vmem>>, %arg5: memref<1x16xf32, #tpu.memory_space<vmem>>, %arg6: memref<3x16x16xbf16, #tpu.memory_space<vmem>>, %arg7: memref<1x16xf32, #tpu.memory_space<vmem>>, %arg8: memref<1x16xf32, #tpu.memory_space<vmem>>, %arg9: memref<1x16xf32, #tpu.memory_space<vmem>>, %arg10: memref<3x16x32xbf16, #tpu.memory_space<vmem>>, %arg11: memref<1x32xf32, #tpu.memory_space<vmem>>, %arg12: memref<3x32x32xbf16, #tpu.memory_space<vmem>>, %arg13: memref<1x32xf32, #tpu.memory_space<vmem>>, %arg14: memref<1x32xf32, #tpu.memory_space<vmem>>, %arg15: memref<1x32xf32, #tpu.memory_space<vmem>>, %arg16: memref<3x32x64xbf16, #tpu.memory_space<vmem>>, %arg17: memref<1x64xf32, #tpu.memory_space<vmem>>, %arg18: memref<3x64x64xbf16, #tpu.memory_space<vmem>>, %arg19: memref<1x64xf32, #tpu.memory_space<vmem>>, %arg20: memref<64x256xbf16, #tpu.memory_space<vmem>>, %arg21: memref<64x256xbf16, #tpu.memory_space<vmem>>, %arg22: memref<1x256xf32, #tpu.memory_space<vmem>>, %arg23: memref<64x128xbf16, #tpu.memory_space<vmem>>, %arg24: memref<1x128xf32, #tpu.memory_space<vmem>>, %arg25: memref<1x128xf32, #tpu.memory_space<vmem>>, %arg26: memref<1x1xf32, #tpu.memory_space<vmem>>, %arg27: memref<8x1xf32, #tpu.memory_space<vmem>>, %arg28: memref<4x8x256xf32, #tpu.memory_space<vmem>>) attributes {dimension_semantics = [#tpu.dimension_semantics<parallel>], iteration_bounds = array<i64: 2>, scalar_prefetch = 0 : i64, scratch_operands = 1 : i64, tpu.core_type = #tpu.core_type<tc>, window_params = [{transform_indices = @transform_0, window_bounds = array<i64: 32, 8, 1>}, {pipeline_mode = #tpu.pipeline_mode<synchronous>, transform_indices = @transform_1, window_bounds = array<i64: 1, 1>}, {pipeline_mode = #tpu.pipeline_mode<synchronous>, transform_indices = @transform_2, window_bounds = array<i64: 1, 1>}, {pipeline_mode = #tpu.pipeline_mode<synchronous>, transform_indices = @transform_3, window_bounds = array<i64: 3, 1, 16>}, {pipeline_mode = #tpu.pipeline_mode<synchronous>, transform_indices = @transform_4, window_bounds = array<i64: 1, 16>}, {pipeline_mode = #tpu.pipeline_mode<synchronous>, transform_indices = @transform_5, window_bounds = array<i64: 3, 16, 16>}, {pipeline_mode = #tpu.pipeline_mode<synchronous>, transform_indices = @transform_6, window_bounds = array<i64: 1, 16>}, {pipeline_mode = #tpu.pipeline_mode<synchronous>, transform_indices = @transform_7, window_bounds = array<i64: 1, 16>}, {pipeline_mode = #tpu.pipeline_mode<synchronous>, transform_indices = @transform_8, window_bounds = array<i64: 1, 16>}, {pipeline_mode = #tpu.pipeline_mode<synchronous>, transform_indices = @transform_9, window_bounds = array<i64: 3, 16, 32>}, {pipeline_mode = #tpu.pipeline_mode<synchronous>, transform_indices = @transform_10, window_bounds = array<i64: 1, 32>}, {pipeline_mode = #tpu.pipeline_mode<synchronous>, transform_indices = @transform_11, window_bounds = array<i64: 3, 32, 32>}, {pipeline_mode = #tpu.pipeline_mode<synchronous>, transform_indices = @transform_12, window_bounds = array<i64: 1, 32>}, {pipeline_mode = #tpu.pipeline_mode<synchronous>, transform_indices = @transform_13, window_bounds = array<i64: 1, 32>}, {pipeline_mode = #tpu.pipeline_mode<synchronous>, transform_indices = @transform_14, window_bounds = array<i64: 1, 32>}, {pipeline_mode = #tpu.pipeline_mode<synchronous>, transform_indices = @transform_15, window_bounds = array<i64: 3, 32, 64>}, {pipeline_mode = #tpu.pipeline_mode<synchronous>, transform_indices = @transform_16, window_bounds = array<i64: 1, 64>}, {pipeline_mode = #tpu.pipeline_mode<synchronous>, transform_indices = @transform_17, window_bounds = array<i64: 3, 64, 64>}, {pipeline_mode = #tpu.pipeline_mode<synchronous>, transform_indices = @transform_18, window_bounds = array<i64: 1, 64>}, {pipeline_mode = #tpu.pipeline_mode<synchronous>, transform_indices = @transform_19, window_bounds = array<i64: 64, 256>}, {pipeline_mode = #tpu.pipeline_mode<synchronous>, transform_indices = @transform_20, window_bounds = array<i64: 64, 256>}, {pipeline_mode = #tpu.pipeline_mode<synchronous>, transform_indices = @transform_21, window_bounds = array<i64: 1, 256>}, {pipeline_mode = #tpu.pipeline_mode<synchronous>, transform_indices = @transform_22, window_bounds = array<i64: 64, 128>}, {pipeline_mode = #tpu.pipeline_mode<synchronous>, transform_indices = @transform_23, window_bounds = array<i64: 1, 128>}, {pipeline_mode = #tpu.pipeline_mode<synchronous>, transform_indices = @transform_24, window_bounds = array<i64: 1, 128>}, {pipeline_mode = #tpu.pipeline_mode<synchronous>, transform_indices = @transform_25, window_bounds = array<i64: 1, 1>}, {transform_indices = @transform_26, window_bounds = array<i64: 8, 1>}]} {
    %c0 = arith.constant 0 : index
    %c0_0 = arith.constant 0 : index
    %c0_1 = arith.constant 0 : index
    %0 = vector.load %arg1[%c0, %c0_0, %c0_1] : memref<32x8x1xf32, #tpu.memory_space<vmem>>, vector<32x8x1xf32>
    %c0_2 = arith.constant 0 : index
    %c0_3 = arith.constant 0 : index
    %1 = vector.load %arg2[%c0_2, %c0_3] : memref<1x1xf32, #tpu.memory_space<vmem>>, vector<1x1xf32>
    %2 = vector.shape_cast %1 : vector<1x1xf32> to vector<1x1x1xf32>
    %3 = vector.broadcast %2 : vector<1x1x1xf32> to vector<32x8x1xf32>
    %4 = arith.mulf %0, %3 : vector<32x8x1xf32>
    %c0_4 = arith.constant 0 : index
    %c0_5 = arith.constant 0 : index
    %5 = vector.load %arg3[%c0_4, %c0_5] : memref<1x1xf32, #tpu.memory_space<vmem>>, vector<1x1xf32>
    %6 = vector.shape_cast %5 : vector<1x1xf32> to vector<1x1x1xf32>
    %7 = vector.broadcast %6 : vector<1x1x1xf32> to vector<32x8x1xf32>
    %8 = arith.addf %4, %7 : vector<32x8x1xf32>
    %c0_6 = arith.constant 0 : index
    %c0_7 = arith.constant 0 : index
    %9 = vector.load %arg5[%c0_6, %c0_7] : memref<1x16xf32, #tpu.memory_space<vmem>>, vector<1x16xf32>
    %c0_8 = arith.constant 0 : index
    %c0_9 = arith.constant 0 : index
    %c0_10 = arith.constant 0 : index
    %10 = vector.load %arg4[%c0_8, %c0_9, %c0_10] : memref<3x1x16xbf16, #tpu.memory_space<vmem>>, vector<1x1x16xbf16>
    %11 = vector.shape_cast %10 : vector<1x1x16xbf16> to vector<1x16xbf16>
    %12 = arith.extf %11 : vector<1x16xbf16> to vector<1x16xf32>
    %13 = vector.shape_cast %12 : vector<1x16xf32> to vector<1x1x16xf32>
    %14 = vector.broadcast %8 : vector<32x8x1xf32> to vector<32x8x16xf32>
    %15 = vector.broadcast %13 : vector<1x1x16xf32> to vector<32x8x16xf32>
    %16 = arith.mulf %14, %15 : vector<32x8x16xf32>
    %c1 = arith.constant 1 : index
    %c0_11 = arith.constant 0 : index
    %c0_12 = arith.constant 0 : index
    %17 = vector.load %arg4[%c1, %c0_11, %c0_12] : memref<3x1x16xbf16, #tpu.memory_space<vmem>>, vector<1x1x16xbf16>
    %18 = vector.shape_cast %17 : vector<1x1x16xbf16> to vector<1x16xbf16>
    %19 = arith.extf %18 : vector<1x16xbf16> to vector<1x16xf32>
    %20 = vector.shape_cast %19 : vector<1x16xf32> to vector<1x1x16xf32>
    %21 = vector.broadcast %8 : vector<32x8x1xf32> to vector<32x8x16xf32>
    %22 = vector.broadcast %20 : vector<1x1x16xf32> to vector<32x8x16xf32>
    %23 = arith.mulf %21, %22 : vector<32x8x16xf32>
    %c2 = arith.constant 2 : index
    %c0_13 = arith.constant 0 : index
    %c0_14 = arith.constant 0 : index
    %24 = vector.load %arg4[%c2, %c0_13, %c0_14] : memref<3x1x16xbf16, #tpu.memory_space<vmem>>, vector<1x1x16xbf16>
    %25 = vector.shape_cast %24 : vector<1x1x16xbf16> to vector<1x16xbf16>
    %26 = arith.extf %25 : vector<1x16xbf16> to vector<1x16xf32>
    %27 = vector.shape_cast %26 : vector<1x16xf32> to vector<1x1x16xf32>
    %28 = vector.broadcast %8 : vector<32x8x1xf32> to vector<32x8x16xf32>
    %29 = vector.broadcast %27 : vector<1x1x16xf32> to vector<32x8x16xf32>
    %30 = arith.mulf %28, %29 : vector<32x8x16xf32>
    %31 = vector.extract_strided_slice %16 {offsets = [0, 0, 0], sizes = [1, 8, 16], strides = [1, 1, 1]} : vector<32x8x16xf32> to vector<1x8x16xf32>
    %32 = vector.extract_strided_slice %16 {offsets = [0, 0, 0], sizes = [31, 8, 16], strides = [1, 1, 1]} : vector<32x8x16xf32> to vector<31x8x16xf32>
    %33 = tpu.concatenate %31, %32 in 0 : vector<1x8x16xf32>, vector<31x8x16xf32> -> vector<32x8x16xf32>
    %34 = vector.extract_strided_slice %30 {offsets = [1, 0, 0], sizes = [31, 8, 16], strides = [1, 1, 1]} : vector<32x8x16xf32> to vector<31x8x16xf32>
    %35 = vector.extract_strided_slice %30 {offsets = [31, 0, 0], sizes = [1, 8, 16], strides = [1, 1, 1]} : vector<32x8x16xf32> to vector<1x8x16xf32>
    %36 = tpu.concatenate %34, %35 in 0 : vector<31x8x16xf32>, vector<1x8x16xf32> -> vector<32x8x16xf32>
    %37 = arith.addf %33, %23 : vector<32x8x16xf32>
    %38 = arith.addf %37, %36 : vector<32x8x16xf32>
    %39 = vector.shape_cast %9 : vector<1x16xf32> to vector<1x1x16xf32>
    %40 = vector.broadcast %39 : vector<1x1x16xf32> to vector<32x8x16xf32>
    %41 = arith.addf %38, %40 : vector<32x8x16xf32>
    %cst = arith.constant 0.000000e+00 : f32
    %42 = vector.broadcast %cst : f32 to vector<32x8x16xf32>
    %43 = arith.maximumf %41, %42 : vector<32x8x16xf32>
    %c0_15 = arith.constant 0 : index
    %c0_16 = arith.constant 0 : index
    %44 = vector.load %arg7[%c0_15, %c0_16] : memref<1x16xf32, #tpu.memory_space<vmem>>, vector<1x16xf32>
    %45 = vector.shape_cast %43 : vector<32x8x16xf32> to vector<256x16xf32>
    %c0_17 = arith.constant 0 : index
    %c0_18 = arith.constant 0 : index
    %c0_19 = arith.constant 0 : index
    %46 = vector.load %arg6[%c0_17, %c0_18, %c0_19] : memref<3x16x16xbf16, #tpu.memory_space<vmem>>, vector<1x16x16xbf16>
    %47 = vector.shape_cast %46 : vector<1x16x16xbf16> to vector<16x16xbf16>
    %48 = arith.truncf %45 : vector<256x16xf32> to vector<256x16xbf16>
    %cst_20 = arith.constant dense<0.000000e+00> : vector<256x16xf32>
    %49 = tpu.matmul %48, %47, %cst_20 {dimension_numbers = #tpu.dot_dimension_numbers<[1], [0], [0], [1], [0, 0, 1, 1], [], []>} : vector<256x16xbf16>, vector<16x16xbf16>, vector<256x16xf32> -> vector<256x16xf32>
    %50 = vector.shape_cast %49 : vector<256x16xf32> to vector<32x8x16xf32>
    %c1_21 = arith.constant 1 : index
    %c0_22 = arith.constant 0 : index
    %c0_23 = arith.constant 0 : index
    %51 = vector.load %arg6[%c1_21, %c0_22, %c0_23] : memref<3x16x16xbf16, #tpu.memory_space<vmem>>, vector<1x16x16xbf16>
    %52 = vector.shape_cast %51 : vector<1x16x16xbf16> to vector<16x16xbf16>
    %53 = arith.truncf %45 : vector<256x16xf32> to vector<256x16xbf16>
    %cst_24 = arith.constant dense<0.000000e+00> : vector<256x16xf32>
    %54 = tpu.matmul %53, %52, %cst_24 {dimension_numbers = #tpu.dot_dimension_numbers<[1], [0], [0], [1], [0, 0, 1, 1], [], []>} : vector<256x16xbf16>, vector<16x16xbf16>, vector<256x16xf32> -> vector<256x16xf32>
    %55 = vector.shape_cast %54 : vector<256x16xf32> to vector<32x8x16xf32>
    %c2_25 = arith.constant 2 : index
    %c0_26 = arith.constant 0 : index
    %c0_27 = arith.constant 0 : index
    %56 = vector.load %arg6[%c2_25, %c0_26, %c0_27] : memref<3x16x16xbf16, #tpu.memory_space<vmem>>, vector<1x16x16xbf16>
    %57 = vector.shape_cast %56 : vector<1x16x16xbf16> to vector<16x16xbf16>
    %58 = arith.truncf %45 : vector<256x16xf32> to vector<256x16xbf16>
    %cst_28 = arith.constant dense<0.000000e+00> : vector<256x16xf32>
    %59 = tpu.matmul %58, %57, %cst_28 {dimension_numbers = #tpu.dot_dimension_numbers<[1], [0], [0], [1], [0, 0, 1, 1], [], []>} : vector<256x16xbf16>, vector<16x16xbf16>, vector<256x16xf32> -> vector<256x16xf32>
    %60 = vector.shape_cast %59 : vector<256x16xf32> to vector<32x8x16xf32>
    %61 = vector.extract_strided_slice %50 {offsets = [0, 0, 0], sizes = [1, 8, 16], strides = [1, 1, 1]} : vector<32x8x16xf32> to vector<1x8x16xf32>
    %62 = vector.extract_strided_slice %50 {offsets = [0, 0, 0], sizes = [31, 8, 16], strides = [1, 1, 1]} : vector<32x8x16xf32> to vector<31x8x16xf32>
    %63 = tpu.concatenate %61, %62 in 0 : vector<1x8x16xf32>, vector<31x8x16xf32> -> vector<32x8x16xf32>
    %64 = vector.extract_strided_slice %60 {offsets = [1, 0, 0], sizes = [31, 8, 16], strides = [1, 1, 1]} : vector<32x8x16xf32> to vector<31x8x16xf32>
    %65 = vector.extract_strided_slice %60 {offsets = [31, 0, 0], sizes = [1, 8, 16], strides = [1, 1, 1]} : vector<32x8x16xf32> to vector<1x8x16xf32>
    %66 = tpu.concatenate %64, %65 in 0 : vector<31x8x16xf32>, vector<1x8x16xf32> -> vector<32x8x16xf32>
    %67 = arith.addf %63, %55 : vector<32x8x16xf32>
    %68 = arith.addf %67, %66 : vector<32x8x16xf32>
    %69 = vector.shape_cast %44 : vector<1x16xf32> to vector<1x1x16xf32>
    %70 = vector.broadcast %69 : vector<1x1x16xf32> to vector<32x8x16xf32>
    %71 = arith.addf %68, %70 : vector<32x8x16xf32>
    %cst_29 = arith.constant 0.000000e+00 : f32
    %72 = vector.broadcast %cst_29 : f32 to vector<32x8x16xf32>
    %73 = arith.maximumf %71, %72 : vector<32x8x16xf32>
    %74 = vector.broadcast %0 : vector<32x8x1xf32> to vector<32x8x16xf32>
    %75 = arith.addf %73, %74 : vector<32x8x16xf32>
    %76 = vector.shape_cast %75 : vector<32x8x16xf32> to vector<16x2x8x16xf32>
    %77 = vector.extract_strided_slice %76 {offsets = [0, 0, 0, 0], sizes = [16, 1, 8, 16], strides = [1, 1, 1, 1]} : vector<16x2x8x16xf32> to vector<16x1x8x16xf32>
    %78 = vector.shape_cast %77 : vector<16x1x8x16xf32> to vector<16x8x16xf32>
    %79 = vector.extract_strided_slice %76 {offsets = [0, 1, 0, 0], sizes = [16, 1, 8, 16], strides = [1, 1, 1, 1]} : vector<16x2x8x16xf32> to vector<16x1x8x16xf32>
    %80 = vector.shape_cast %79 : vector<16x1x8x16xf32> to vector<16x8x16xf32>
    %cst_30 = arith.constant 0xFF800000 : f32
    %81 = vector.broadcast %cst_30 : f32 to vector<1x8x16xf32>
    %82 = vector.extract_strided_slice %80 {offsets = [0, 0, 0], sizes = [15, 8, 16], strides = [1, 1, 1]} : vector<16x8x16xf32> to vector<15x8x16xf32>
    %83 = tpu.concatenate %81, %82 in 0 : vector<1x8x16xf32>, vector<15x8x16xf32> -> vector<16x8x16xf32>
    %84 = arith.maximumf %78, %80 : vector<16x8x16xf32>
    %85 = arith.maximumf %84, %83 : vector<16x8x16xf32>
    %86 = vector.shape_cast %0 : vector<32x8x1xf32> to vector<16x2x8x1xf32>
    %87 = vector.extract_strided_slice %86 {offsets = [0, 0, 0, 0], sizes = [16, 1, 8, 1], strides = [1, 1, 1, 1]} : vector<16x2x8x1xf32> to vector<16x1x8x1xf32>
    %88 = vector.shape_cast %87 : vector<16x1x8x1xf32> to vector<16x8x1xf32>
    %89 = vector.extract_strided_slice %86 {offsets = [0, 1, 0, 0], sizes = [16, 1, 8, 1], strides = [1, 1, 1, 1]} : vector<16x2x8x1xf32> to vector<16x1x8x1xf32>
    %90 = vector.shape_cast %89 : vector<16x1x8x1xf32> to vector<16x8x1xf32>
    %cst_31 = arith.constant 0xFF800000 : f32
    %91 = vector.broadcast %cst_31 : f32 to vector<1x8x1xf32>
    %92 = vector.extract_strided_slice %90 {offsets = [0, 0, 0], sizes = [15, 8, 1], strides = [1, 1, 1]} : vector<16x8x1xf32> to vector<15x8x1xf32>
    %93 = tpu.concatenate %91, %92 in 0 : vector<1x8x1xf32>, vector<15x8x1xf32> -> vector<16x8x1xf32>
    %94 = arith.maximumf %88, %90 : vector<16x8x1xf32>
    %95 = arith.maximumf %94, %93 : vector<16x8x1xf32>
    %c0_32 = arith.constant 0 : index
    %c0_33 = arith.constant 0 : index
    %96 = vector.load %arg8[%c0_32, %c0_33] : memref<1x16xf32, #tpu.memory_space<vmem>>, vector<1x16xf32>
    %97 = vector.shape_cast %96 : vector<1x16xf32> to vector<1x1x16xf32>
    %98 = vector.broadcast %97 : vector<1x1x16xf32> to vector<16x8x16xf32>
    %99 = arith.mulf %85, %98 : vector<16x8x16xf32>
    %c0_34 = arith.constant 0 : index
    %c0_35 = arith.constant 0 : index
    %100 = vector.load %arg9[%c0_34, %c0_35] : memref<1x16xf32, #tpu.memory_space<vmem>>, vector<1x16xf32>
    %101 = vector.shape_cast %100 : vector<1x16xf32> to vector<1x1x16xf32>
    %102 = vector.broadcast %101 : vector<1x1x16xf32> to vector<16x8x16xf32>
    %103 = arith.addf %99, %102 : vector<16x8x16xf32>
    %c0_36 = arith.constant 0 : index
    %c0_37 = arith.constant 0 : index
    %104 = vector.load %arg11[%c0_36, %c0_37] : memref<1x32xf32, #tpu.memory_space<vmem>>, vector<1x32xf32>
    %105 = vector.shape_cast %103 : vector<16x8x16xf32> to vector<128x16xf32>
    %c0_38 = arith.constant 0 : index
    %c0_39 = arith.constant 0 : index
    %c0_40 = arith.constant 0 : index
    %106 = vector.load %arg10[%c0_38, %c0_39, %c0_40] : memref<3x16x32xbf16, #tpu.memory_space<vmem>>, vector<1x16x32xbf16>
    %107 = vector.shape_cast %106 : vector<1x16x32xbf16> to vector<16x32xbf16>
    %108 = arith.truncf %105 : vector<128x16xf32> to vector<128x16xbf16>
    %cst_41 = arith.constant dense<0.000000e+00> : vector<128x32xf32>
    %109 = tpu.matmul %108, %107, %cst_41 {dimension_numbers = #tpu.dot_dimension_numbers<[1], [0], [0], [1], [0, 0, 1, 1], [], []>} : vector<128x16xbf16>, vector<16x32xbf16>, vector<128x32xf32> -> vector<128x32xf32>
    %110 = vector.shape_cast %109 : vector<128x32xf32> to vector<16x8x32xf32>
    %c1_42 = arith.constant 1 : index
    %c0_43 = arith.constant 0 : index
    %c0_44 = arith.constant 0 : index
    %111 = vector.load %arg10[%c1_42, %c0_43, %c0_44] : memref<3x16x32xbf16, #tpu.memory_space<vmem>>, vector<1x16x32xbf16>
    %112 = vector.shape_cast %111 : vector<1x16x32xbf16> to vector<16x32xbf16>
    %113 = arith.truncf %105 : vector<128x16xf32> to vector<128x16xbf16>
    %cst_45 = arith.constant dense<0.000000e+00> : vector<128x32xf32>
    %114 = tpu.matmul %113, %112, %cst_45 {dimension_numbers = #tpu.dot_dimension_numbers<[1], [0], [0], [1], [0, 0, 1, 1], [], []>} : vector<128x16xbf16>, vector<16x32xbf16>, vector<128x32xf32> -> vector<128x32xf32>
    %115 = vector.shape_cast %114 : vector<128x32xf32> to vector<16x8x32xf32>
    %c2_46 = arith.constant 2 : index
    %c0_47 = arith.constant 0 : index
    %c0_48 = arith.constant 0 : index
    %116 = vector.load %arg10[%c2_46, %c0_47, %c0_48] : memref<3x16x32xbf16, #tpu.memory_space<vmem>>, vector<1x16x32xbf16>
    %117 = vector.shape_cast %116 : vector<1x16x32xbf16> to vector<16x32xbf16>
    %118 = arith.truncf %105 : vector<128x16xf32> to vector<128x16xbf16>
    %cst_49 = arith.constant dense<0.000000e+00> : vector<128x32xf32>
    %119 = tpu.matmul %118, %117, %cst_49 {dimension_numbers = #tpu.dot_dimension_numbers<[1], [0], [0], [1], [0, 0, 1, 1], [], []>} : vector<128x16xbf16>, vector<16x32xbf16>, vector<128x32xf32> -> vector<128x32xf32>
    %120 = vector.shape_cast %119 : vector<128x32xf32> to vector<16x8x32xf32>
    %121 = vector.extract_strided_slice %110 {offsets = [0, 0, 0], sizes = [1, 8, 32], strides = [1, 1, 1]} : vector<16x8x32xf32> to vector<1x8x32xf32>
    %122 = vector.extract_strided_slice %110 {offsets = [0, 0, 0], sizes = [15, 8, 32], strides = [1, 1, 1]} : vector<16x8x32xf32> to vector<15x8x32xf32>
    %123 = tpu.concatenate %121, %122 in 0 : vector<1x8x32xf32>, vector<15x8x32xf32> -> vector<16x8x32xf32>
    %124 = vector.extract_strided_slice %120 {offsets = [1, 0, 0], sizes = [15, 8, 32], strides = [1, 1, 1]} : vector<16x8x32xf32> to vector<15x8x32xf32>
    %125 = vector.extract_strided_slice %120 {offsets = [15, 0, 0], sizes = [1, 8, 32], strides = [1, 1, 1]} : vector<16x8x32xf32> to vector<1x8x32xf32>
    %126 = tpu.concatenate %124, %125 in 0 : vector<15x8x32xf32>, vector<1x8x32xf32> -> vector<16x8x32xf32>
    %127 = arith.addf %123, %115 : vector<16x8x32xf32>
    %128 = arith.addf %127, %126 : vector<16x8x32xf32>
    %129 = vector.shape_cast %104 : vector<1x32xf32> to vector<1x1x32xf32>
    %130 = vector.broadcast %129 : vector<1x1x32xf32> to vector<16x8x32xf32>
    %131 = arith.addf %128, %130 : vector<16x8x32xf32>
    %cst_50 = arith.constant 0.000000e+00 : f32
    %132 = vector.broadcast %cst_50 : f32 to vector<16x8x32xf32>
    %133 = arith.maximumf %131, %132 : vector<16x8x32xf32>
    %c0_51 = arith.constant 0 : index
    %c0_52 = arith.constant 0 : index
    %134 = vector.load %arg13[%c0_51, %c0_52] : memref<1x32xf32, #tpu.memory_space<vmem>>, vector<1x32xf32>
    %135 = vector.shape_cast %133 : vector<16x8x32xf32> to vector<128x32xf32>
    %c0_53 = arith.constant 0 : index
    %c0_54 = arith.constant 0 : index
    %c0_55 = arith.constant 0 : index
    %136 = vector.load %arg12[%c0_53, %c0_54, %c0_55] : memref<3x32x32xbf16, #tpu.memory_space<vmem>>, vector<1x32x32xbf16>
    %137 = vector.shape_cast %136 : vector<1x32x32xbf16> to vector<32x32xbf16>
    %138 = arith.truncf %135 : vector<128x32xf32> to vector<128x32xbf16>
    %cst_56 = arith.constant dense<0.000000e+00> : vector<128x32xf32>
    %139 = tpu.matmul %138, %137, %cst_56 {dimension_numbers = #tpu.dot_dimension_numbers<[1], [0], [0], [1], [0, 0, 1, 1], [], []>} : vector<128x32xbf16>, vector<32x32xbf16>, vector<128x32xf32> -> vector<128x32xf32>
    %140 = vector.shape_cast %139 : vector<128x32xf32> to vector<16x8x32xf32>
    %c1_57 = arith.constant 1 : index
    %c0_58 = arith.constant 0 : index
    %c0_59 = arith.constant 0 : index
    %141 = vector.load %arg12[%c1_57, %c0_58, %c0_59] : memref<3x32x32xbf16, #tpu.memory_space<vmem>>, vector<1x32x32xbf16>
    %142 = vector.shape_cast %141 : vector<1x32x32xbf16> to vector<32x32xbf16>
    %143 = arith.truncf %135 : vector<128x32xf32> to vector<128x32xbf16>
    %cst_60 = arith.constant dense<0.000000e+00> : vector<128x32xf32>
    %144 = tpu.matmul %143, %142, %cst_60 {dimension_numbers = #tpu.dot_dimension_numbers<[1], [0], [0], [1], [0, 0, 1, 1], [], []>} : vector<128x32xbf16>, vector<32x32xbf16>, vector<128x32xf32> -> vector<128x32xf32>
    %145 = vector.shape_cast %144 : vector<128x32xf32> to vector<16x8x32xf32>
    %c2_61 = arith.constant 2 : index
    %c0_62 = arith.constant 0 : index
    %c0_63 = arith.constant 0 : index
    %146 = vector.load %arg12[%c2_61, %c0_62, %c0_63] : memref<3x32x32xbf16, #tpu.memory_space<vmem>>, vector<1x32x32xbf16>
    %147 = vector.shape_cast %146 : vector<1x32x32xbf16> to vector<32x32xbf16>
    %148 = arith.truncf %135 : vector<128x32xf32> to vector<128x32xbf16>
    %cst_64 = arith.constant dense<0.000000e+00> : vector<128x32xf32>
    %149 = tpu.matmul %148, %147, %cst_64 {dimension_numbers = #tpu.dot_dimension_numbers<[1], [0], [0], [1], [0, 0, 1, 1], [], []>} : vector<128x32xbf16>, vector<32x32xbf16>, vector<128x32xf32> -> vector<128x32xf32>
    %150 = vector.shape_cast %149 : vector<128x32xf32> to vector<16x8x32xf32>
    %151 = vector.extract_strided_slice %140 {offsets = [0, 0, 0], sizes = [1, 8, 32], strides = [1, 1, 1]} : vector<16x8x32xf32> to vector<1x8x32xf32>
    %152 = vector.extract_strided_slice %140 {offsets = [0, 0, 0], sizes = [15, 8, 32], strides = [1, 1, 1]} : vector<16x8x32xf32> to vector<15x8x32xf32>
    %153 = tpu.concatenate %151, %152 in 0 : vector<1x8x32xf32>, vector<15x8x32xf32> -> vector<16x8x32xf32>
    %154 = vector.extract_strided_slice %150 {offsets = [1, 0, 0], sizes = [15, 8, 32], strides = [1, 1, 1]} : vector<16x8x32xf32> to vector<15x8x32xf32>
    %155 = vector.extract_strided_slice %150 {offsets = [15, 0, 0], sizes = [1, 8, 32], strides = [1, 1, 1]} : vector<16x8x32xf32> to vector<1x8x32xf32>
    %156 = tpu.concatenate %154, %155 in 0 : vector<15x8x32xf32>, vector<1x8x32xf32> -> vector<16x8x32xf32>
    %157 = arith.addf %153, %145 : vector<16x8x32xf32>
    %158 = arith.addf %157, %156 : vector<16x8x32xf32>
    %159 = vector.shape_cast %134 : vector<1x32xf32> to vector<1x1x32xf32>
    %160 = vector.broadcast %159 : vector<1x1x32xf32> to vector<16x8x32xf32>
    %161 = arith.addf %158, %160 : vector<16x8x32xf32>
    %cst_65 = arith.constant 0.000000e+00 : f32
    %162 = vector.broadcast %cst_65 : f32 to vector<16x8x32xf32>
    %163 = arith.maximumf %161, %162 : vector<16x8x32xf32>
    %164 = vector.broadcast %95 : vector<16x8x1xf32> to vector<16x8x32xf32>
    %165 = arith.addf %163, %164 : vector<16x8x32xf32>
    %166 = vector.shape_cast %165 : vector<16x8x32xf32> to vector<8x2x8x32xf32>
    %167 = vector.extract_strided_slice %166 {offsets = [0, 0, 0, 0], sizes = [8, 1, 8, 32], strides = [1, 1, 1, 1]} : vector<8x2x8x32xf32> to vector<8x1x8x32xf32>
    %168 = vector.shape_cast %167 : vector<8x1x8x32xf32> to vector<8x8x32xf32>
    %169 = vector.extract_strided_slice %166 {offsets = [0, 1, 0, 0], sizes = [8, 1, 8, 32], strides = [1, 1, 1, 1]} : vector<8x2x8x32xf32> to vector<8x1x8x32xf32>
    %170 = vector.shape_cast %169 : vector<8x1x8x32xf32> to vector<8x8x32xf32>
    %cst_66 = arith.constant 0xFF800000 : f32
    %171 = vector.broadcast %cst_66 : f32 to vector<1x8x32xf32>
    %172 = vector.extract_strided_slice %170 {offsets = [0, 0, 0], sizes = [7, 8, 32], strides = [1, 1, 1]} : vector<8x8x32xf32> to vector<7x8x32xf32>
    %173 = tpu.concatenate %171, %172 in 0 : vector<1x8x32xf32>, vector<7x8x32xf32> -> vector<8x8x32xf32>
    %174 = arith.maximumf %168, %170 : vector<8x8x32xf32>
    %175 = arith.maximumf %174, %173 : vector<8x8x32xf32>
    %176 = vector.shape_cast %95 : vector<16x8x1xf32> to vector<8x2x8x1xf32>
    %177 = vector.extract_strided_slice %176 {offsets = [0, 0, 0, 0], sizes = [8, 1, 8, 1], strides = [1, 1, 1, 1]} : vector<8x2x8x1xf32> to vector<8x1x8x1xf32>
    %178 = vector.shape_cast %177 : vector<8x1x8x1xf32> to vector<8x8x1xf32>
    %179 = vector.extract_strided_slice %176 {offsets = [0, 1, 0, 0], sizes = [8, 1, 8, 1], strides = [1, 1, 1, 1]} : vector<8x2x8x1xf32> to vector<8x1x8x1xf32>
    %180 = vector.shape_cast %179 : vector<8x1x8x1xf32> to vector<8x8x1xf32>
    %cst_67 = arith.constant 0xFF800000 : f32
    %181 = vector.broadcast %cst_67 : f32 to vector<1x8x1xf32>
    %182 = vector.extract_strided_slice %180 {offsets = [0, 0, 0], sizes = [7, 8, 1], strides = [1, 1, 1]} : vector<8x8x1xf32> to vector<7x8x1xf32>
    %183 = tpu.concatenate %181, %182 in 0 : vector<1x8x1xf32>, vector<7x8x1xf32> -> vector<8x8x1xf32>
    %184 = arith.maximumf %178, %180 : vector<8x8x1xf32>
    %185 = arith.maximumf %184, %183 : vector<8x8x1xf32>
    %c0_68 = arith.constant 0 : index
    %c0_69 = arith.constant 0 : index
    %186 = vector.load %arg14[%c0_68, %c0_69] : memref<1x32xf32, #tpu.memory_space<vmem>>, vector<1x32xf32>
    %187 = vector.shape_cast %186 : vector<1x32xf32> to vector<1x1x32xf32>
    %188 = vector.broadcast %187 : vector<1x1x32xf32> to vector<8x8x32xf32>
    %189 = arith.mulf %175, %188 : vector<8x8x32xf32>
    %c0_70 = arith.constant 0 : index
    %c0_71 = arith.constant 0 : index
    %190 = vector.load %arg15[%c0_70, %c0_71] : memref<1x32xf32, #tpu.memory_space<vmem>>, vector<1x32xf32>
    %191 = vector.shape_cast %190 : vector<1x32xf32> to vector<1x1x32xf32>
    %192 = vector.broadcast %191 : vector<1x1x32xf32> to vector<8x8x32xf32>
    %193 = arith.addf %189, %192 : vector<8x8x32xf32>
    %c0_72 = arith.constant 0 : index
    %c0_73 = arith.constant 0 : index
    %194 = vector.load %arg17[%c0_72, %c0_73] : memref<1x64xf32, #tpu.memory_space<vmem>>, vector<1x64xf32>
    %195 = vector.shape_cast %193 : vector<8x8x32xf32> to vector<64x32xf32>
    %c0_74 = arith.constant 0 : index
    %c0_75 = arith.constant 0 : index
    %c0_76 = arith.constant 0 : index
    %196 = vector.load %arg16[%c0_74, %c0_75, %c0_76] : memref<3x32x64xbf16, #tpu.memory_space<vmem>>, vector<1x32x64xbf16>
    %197 = vector.shape_cast %196 : vector<1x32x64xbf16> to vector<32x64xbf16>
    %198 = arith.truncf %195 : vector<64x32xf32> to vector<64x32xbf16>
    %cst_77 = arith.constant dense<0.000000e+00> : vector<64x64xf32>
    %199 = tpu.matmul %198, %197, %cst_77 {dimension_numbers = #tpu.dot_dimension_numbers<[1], [0], [0], [1], [0, 0, 1, 1], [], []>} : vector<64x32xbf16>, vector<32x64xbf16>, vector<64x64xf32> -> vector<64x64xf32>
    %200 = vector.shape_cast %199 : vector<64x64xf32> to vector<8x8x64xf32>
    %c1_78 = arith.constant 1 : index
    %c0_79 = arith.constant 0 : index
    %c0_80 = arith.constant 0 : index
    %201 = vector.load %arg16[%c1_78, %c0_79, %c0_80] : memref<3x32x64xbf16, #tpu.memory_space<vmem>>, vector<1x32x64xbf16>
    %202 = vector.shape_cast %201 : vector<1x32x64xbf16> to vector<32x64xbf16>
    %203 = arith.truncf %195 : vector<64x32xf32> to vector<64x32xbf16>
    %cst_81 = arith.constant dense<0.000000e+00> : vector<64x64xf32>
    %204 = tpu.matmul %203, %202, %cst_81 {dimension_numbers = #tpu.dot_dimension_numbers<[1], [0], [0], [1], [0, 0, 1, 1], [], []>} : vector<64x32xbf16>, vector<32x64xbf16>, vector<64x64xf32> -> vector<64x64xf32>
    %205 = vector.shape_cast %204 : vector<64x64xf32> to vector<8x8x64xf32>
    %c2_82 = arith.constant 2 : index
    %c0_83 = arith.constant 0 : index
    %c0_84 = arith.constant 0 : index
    %206 = vector.load %arg16[%c2_82, %c0_83, %c0_84] : memref<3x32x64xbf16, #tpu.memory_space<vmem>>, vector<1x32x64xbf16>
    %207 = vector.shape_cast %206 : vector<1x32x64xbf16> to vector<32x64xbf16>
    %208 = arith.truncf %195 : vector<64x32xf32> to vector<64x32xbf16>
    %cst_85 = arith.constant dense<0.000000e+00> : vector<64x64xf32>
    %209 = tpu.matmul %208, %207, %cst_85 {dimension_numbers = #tpu.dot_dimension_numbers<[1], [0], [0], [1], [0, 0, 1, 1], [], []>} : vector<64x32xbf16>, vector<32x64xbf16>, vector<64x64xf32> -> vector<64x64xf32>
    %210 = vector.shape_cast %209 : vector<64x64xf32> to vector<8x8x64xf32>
    %211 = vector.extract_strided_slice %200 {offsets = [0, 0, 0], sizes = [1, 8, 64], strides = [1, 1, 1]} : vector<8x8x64xf32> to vector<1x8x64xf32>
    %212 = vector.extract_strided_slice %200 {offsets = [0, 0, 0], sizes = [7, 8, 64], strides = [1, 1, 1]} : vector<8x8x64xf32> to vector<7x8x64xf32>
    %213 = tpu.concatenate %211, %212 in 0 : vector<1x8x64xf32>, vector<7x8x64xf32> -> vector<8x8x64xf32>
    %214 = vector.extract_strided_slice %210 {offsets = [1, 0, 0], sizes = [7, 8, 64], strides = [1, 1, 1]} : vector<8x8x64xf32> to vector<7x8x64xf32>
    %215 = vector.extract_strided_slice %210 {offsets = [7, 0, 0], sizes = [1, 8, 64], strides = [1, 1, 1]} : vector<8x8x64xf32> to vector<1x8x64xf32>
    %216 = tpu.concatenate %214, %215 in 0 : vector<7x8x64xf32>, vector<1x8x64xf32> -> vector<8x8x64xf32>
    %217 = arith.addf %213, %205 : vector<8x8x64xf32>
    %218 = arith.addf %217, %216 : vector<8x8x64xf32>
    %219 = vector.shape_cast %194 : vector<1x64xf32> to vector<1x1x64xf32>
    %220 = vector.broadcast %219 : vector<1x1x64xf32> to vector<8x8x64xf32>
    %221 = arith.addf %218, %220 : vector<8x8x64xf32>
    %cst_86 = arith.constant 0.000000e+00 : f32
    %222 = vector.broadcast %cst_86 : f32 to vector<8x8x64xf32>
    %223 = arith.maximumf %221, %222 : vector<8x8x64xf32>
    %c0_87 = arith.constant 0 : index
    %c0_88 = arith.constant 0 : index
    %224 = vector.load %arg19[%c0_87, %c0_88] : memref<1x64xf32, #tpu.memory_space<vmem>>, vector<1x64xf32>
    %225 = vector.shape_cast %223 : vector<8x8x64xf32> to vector<64x64xf32>
    %c0_89 = arith.constant 0 : index
    %c0_90 = arith.constant 0 : index
    %c0_91 = arith.constant 0 : index
    %226 = vector.load %arg18[%c0_89, %c0_90, %c0_91] : memref<3x64x64xbf16, #tpu.memory_space<vmem>>, vector<1x64x64xbf16>
    %227 = vector.shape_cast %226 : vector<1x64x64xbf16> to vector<64x64xbf16>
    %228 = arith.truncf %225 : vector<64x64xf32> to vector<64x64xbf16>
    %cst_92 = arith.constant dense<0.000000e+00> : vector<64x64xf32>
    %229 = tpu.matmul %228, %227, %cst_92 {dimension_numbers = #tpu.dot_dimension_numbers<[1], [0], [0], [1], [0, 0, 1, 1], [], []>} : vector<64x64xbf16>, vector<64x64xbf16>, vector<64x64xf32> -> vector<64x64xf32>
    %230 = vector.shape_cast %229 : vector<64x64xf32> to vector<8x8x64xf32>
    %c1_93 = arith.constant 1 : index
    %c0_94 = arith.constant 0 : index
    %c0_95 = arith.constant 0 : index
    %231 = vector.load %arg18[%c1_93, %c0_94, %c0_95] : memref<3x64x64xbf16, #tpu.memory_space<vmem>>, vector<1x64x64xbf16>
    %232 = vector.shape_cast %231 : vector<1x64x64xbf16> to vector<64x64xbf16>
    %233 = arith.truncf %225 : vector<64x64xf32> to vector<64x64xbf16>
    %cst_96 = arith.constant dense<0.000000e+00> : vector<64x64xf32>
    %234 = tpu.matmul %233, %232, %cst_96 {dimension_numbers = #tpu.dot_dimension_numbers<[1], [0], [0], [1], [0, 0, 1, 1], [], []>} : vector<64x64xbf16>, vector<64x64xbf16>, vector<64x64xf32> -> vector<64x64xf32>
    %235 = vector.shape_cast %234 : vector<64x64xf32> to vector<8x8x64xf32>
    %c2_97 = arith.constant 2 : index
    %c0_98 = arith.constant 0 : index
    %c0_99 = arith.constant 0 : index
    %236 = vector.load %arg18[%c2_97, %c0_98, %c0_99] : memref<3x64x64xbf16, #tpu.memory_space<vmem>>, vector<1x64x64xbf16>
    %237 = vector.shape_cast %236 : vector<1x64x64xbf16> to vector<64x64xbf16>
    %238 = arith.truncf %225 : vector<64x64xf32> to vector<64x64xbf16>
    %cst_100 = arith.constant dense<0.000000e+00> : vector<64x64xf32>
    %239 = tpu.matmul %238, %237, %cst_100 {dimension_numbers = #tpu.dot_dimension_numbers<[1], [0], [0], [1], [0, 0, 1, 1], [], []>} : vector<64x64xbf16>, vector<64x64xbf16>, vector<64x64xf32> -> vector<64x64xf32>
    %240 = vector.shape_cast %239 : vector<64x64xf32> to vector<8x8x64xf32>
    %241 = vector.extract_strided_slice %230 {offsets = [0, 0, 0], sizes = [1, 8, 64], strides = [1, 1, 1]} : vector<8x8x64xf32> to vector<1x8x64xf32>
    %242 = vector.extract_strided_slice %230 {offsets = [0, 0, 0], sizes = [7, 8, 64], strides = [1, 1, 1]} : vector<8x8x64xf32> to vector<7x8x64xf32>
    %243 = tpu.concatenate %241, %242 in 0 : vector<1x8x64xf32>, vector<7x8x64xf32> -> vector<8x8x64xf32>
    %244 = vector.extract_strided_slice %240 {offsets = [1, 0, 0], sizes = [7, 8, 64], strides = [1, 1, 1]} : vector<8x8x64xf32> to vector<7x8x64xf32>
    %245 = vector.extract_strided_slice %240 {offsets = [7, 0, 0], sizes = [1, 8, 64], strides = [1, 1, 1]} : vector<8x8x64xf32> to vector<1x8x64xf32>
    %246 = tpu.concatenate %244, %245 in 0 : vector<7x8x64xf32>, vector<1x8x64xf32> -> vector<8x8x64xf32>
    %247 = arith.addf %243, %235 : vector<8x8x64xf32>
    %248 = arith.addf %247, %246 : vector<8x8x64xf32>
    %249 = vector.shape_cast %224 : vector<1x64xf32> to vector<1x1x64xf32>
    %250 = vector.broadcast %249 : vector<1x1x64xf32> to vector<8x8x64xf32>
    %251 = arith.addf %248, %250 : vector<8x8x64xf32>
    %cst_101 = arith.constant 0.000000e+00 : f32
    %252 = vector.broadcast %cst_101 : f32 to vector<8x8x64xf32>
    %253 = arith.maximumf %251, %252 : vector<8x8x64xf32>
    %254 = vector.broadcast %185 : vector<8x8x1xf32> to vector<8x8x64xf32>
    %255 = arith.addf %253, %254 : vector<8x8x64xf32>
    %256 = vector.shape_cast %255 : vector<8x8x64xf32> to vector<4x2x8x64xf32>
    %257 = vector.extract_strided_slice %256 {offsets = [0, 0, 0, 0], sizes = [4, 1, 8, 64], strides = [1, 1, 1, 1]} : vector<4x2x8x64xf32> to vector<4x1x8x64xf32>
    %258 = vector.shape_cast %257 : vector<4x1x8x64xf32> to vector<4x8x64xf32>
    %259 = vector.extract_strided_slice %256 {offsets = [0, 1, 0, 0], sizes = [4, 1, 8, 64], strides = [1, 1, 1, 1]} : vector<4x2x8x64xf32> to vector<4x1x8x64xf32>
    %260 = vector.shape_cast %259 : vector<4x1x8x64xf32> to vector<4x8x64xf32>
    %cst_102 = arith.constant 0xFF800000 : f32
    %261 = vector.broadcast %cst_102 : f32 to vector<1x8x64xf32>
    %262 = vector.extract_strided_slice %260 {offsets = [0, 0, 0], sizes = [3, 8, 64], strides = [1, 1, 1]} : vector<4x8x64xf32> to vector<3x8x64xf32>
    %263 = tpu.concatenate %261, %262 in 0 : vector<1x8x64xf32>, vector<3x8x64xf32> -> vector<4x8x64xf32>
    %264 = arith.maximumf %258, %260 : vector<4x8x64xf32>
    %265 = arith.maximumf %264, %263 : vector<4x8x64xf32>
    %266 = vector.shape_cast %265 : vector<4x8x64xf32> to vector<32x64xf32>
    %c0_103 = arith.constant 0 : index
    %c0_104 = arith.constant 0 : index
    %267 = vector.load %arg20[%c0_103, %c0_104] : memref<64x256xbf16, #tpu.memory_space<vmem>>, vector<64x256xbf16>
    %268 = arith.truncf %266 : vector<32x64xf32> to vector<32x64xbf16>
    %cst_105 = arith.constant dense<0.000000e+00> : vector<32x256xf32>
    %269 = tpu.matmul %268, %267, %cst_105 {dimension_numbers = #tpu.dot_dimension_numbers<[1], [0], [0], [1], [0, 0, 1, 1], [], []>} : vector<32x64xbf16>, vector<64x256xbf16>, vector<32x256xf32> -> vector<32x256xf32>
    %c0_106 = arith.constant 0 : index
    %c0_107 = arith.constant 0 : index
    %270 = vector.load %arg22[%c0_106, %c0_107] : memref<1x256xf32, #tpu.memory_space<vmem>>, vector<1x256xf32>
    %271 = vector.broadcast %270 : vector<1x256xf32> to vector<32x256xf32>
    %272 = arith.addf %269, %271 : vector<32x256xf32>
    %273 = vector.shape_cast %272 : vector<32x256xf32> to vector<4x8x256xf32>
    %c0_108 = arith.constant 0 : index
    %c0_109 = arith.constant 0 : index
    %c0_110 = arith.constant 0 : index
    %274 = vector.load %arg28[%c0_108, %c0_109, %c0_110] : memref<4x8x256xf32, #tpu.memory_space<vmem>>, vector<4x8x256xf32>
    tpu.vector_store %arg28[%c0_108, %c0_109, %c0_110], %273 {strides = array<i32>} : memref<4x8x256xf32, #tpu.memory_space<vmem>>, vector<4x8x256xf32>,
    %c0_111 = arith.constant 0 : index
    %c0_112 = arith.constant 0 : index
    %275 = vector.load %arg21[%c0_111, %c0_112] : memref<64x256xbf16, #tpu.memory_space<vmem>>, vector<64x256xbf16>
    %cst_113 = arith.constant 0.000000e+00 : f32
    %276 = vector.broadcast %cst_113 : f32 to vector<8x64xf32>
    %cst_114 = arith.constant 0.000000e+00 : f32
    %277 = vector.broadcast %cst_114 : f32 to vector<8x64xf32>
    %c0_i32 = arith.constant 0 : i32
    %278 = arith.index_cast %c0_i32 : i32 to index
    %c0_115 = arith.constant 0 : index
    %c0_116 = arith.constant 0 : index
    %279 = vector.load %arg28[%278, %c0_115, %c0_116] : memref<4x8x256xf32, #tpu.memory_space<vmem>>, vector<1x8x256xf32>
    %280 = vector.shape_cast %279 : vector<1x8x256xf32> to vector<8x256xf32>
    %281 = arith.truncf %276 : vector<8x64xf32> to vector<8x64xbf16>
    %cst_117 = arith.constant dense<0.000000e+00> : vector<8x256xf32>
    %282 = tpu.matmul %281, %275, %cst_117 {dimension_numbers = #tpu.dot_dimension_numbers<[1], [0], [0], [1], [0, 0, 1, 1], [], []>} : vector<8x64xbf16>, vector<64x256xbf16>, vector<8x256xf32> -> vector<8x256xf32>
    %283 = arith.addf %280, %282 : vector<8x256xf32>
    %284 = vector.extract_strided_slice %283 {offsets = [0, 0], sizes = [8, 64], strides = [1, 1]} : vector<8x256xf32> to vector<8x64xf32>
    %285 = arith.negf %284 : vector<8x64xf32>
    %286 = math.exp %285 : vector<8x64xf32>
    %cst_118 = arith.constant 1.000000e+00 : f32
    %287 = vector.broadcast %cst_118 : f32 to vector<8x64xf32>
    %288 = arith.addf %287, %286 : vector<8x64xf32>
    %289 = arith.divf %287, %288 : vector<8x64xf32>
    %290 = vector.extract_strided_slice %283 {offsets = [0, 64], sizes = [8, 64], strides = [1, 1]} : vector<8x256xf32> to vector<8x64xf32>
    %291 = arith.negf %290 : vector<8x64xf32>
    %292 = math.exp %291 : vector<8x64xf32>
    %cst_119 = arith.constant 1.000000e+00 : f32
    %293 = vector.broadcast %cst_119 : f32 to vector<8x64xf32>
    %294 = arith.addf %293, %292 : vector<8x64xf32>
    %295 = arith.divf %293, %294 : vector<8x64xf32>
    %296 = vector.extract_strided_slice %283 {offsets = [0, 128], sizes = [8, 64], strides = [1, 1]} : vector<8x256xf32> to vector<8x64xf32>
    %297 = math.tanh %296 : vector<8x64xf32>
    %298 = vector.extract_strided_slice %283 {offsets = [0, 192], sizes = [8, 64], strides = [1, 1]} : vector<8x256xf32> to vector<8x64xf32>
    %299 = arith.negf %298 : vector<8x64xf32>
    %300 = math.exp %299 : vector<8x64xf32>
    %cst_120 = arith.constant 1.000000e+00 : f32
    %301 = vector.broadcast %cst_120 : f32 to vector<8x64xf32>
    %302 = arith.addf %301, %300 : vector<8x64xf32>
    %303 = arith.divf %301, %302 : vector<8x64xf32>
    %304 = arith.mulf %295, %277 : vector<8x64xf32>
    %305 = arith.mulf %289, %297 : vector<8x64xf32>
    %306 = arith.addf %304, %305 : vector<8x64xf32>
    %307 = math.tanh %306 : vector<8x64xf32>
    %308 = arith.mulf %303, %307 : vector<8x64xf32>
    %c1_i32 = arith.constant 1 : i32
    %309 = arith.index_cast %c1_i32 : i32 to index
    %c0_121 = arith.constant 0 : index
    %c0_122 = arith.constant 0 : index
    %310 = vector.load %arg28[%309, %c0_121, %c0_122] : memref<4x8x256xf32, #tpu.memory_space<vmem>>, vector<1x8x256xf32>
    %311 = vector.shape_cast %310 : vector<1x8x256xf32> to vector<8x256xf32>
    %312 = arith.truncf %308 : vector<8x64xf32> to vector<8x64xbf16>
    %cst_123 = arith.constant dense<0.000000e+00> : vector<8x256xf32>
    %313 = tpu.matmul %312, %275, %cst_123 {dimension_numbers = #tpu.dot_dimension_numbers<[1], [0], [0], [1], [0, 0, 1, 1], [], []>} : vector<8x64xbf16>, vector<64x256xbf16>, vector<8x256xf32> -> vector<8x256xf32>
    %314 = arith.addf %311, %313 : vector<8x256xf32>
    %315 = vector.extract_strided_slice %314 {offsets = [0, 0], sizes = [8, 64], strides = [1, 1]} : vector<8x256xf32> to vector<8x64xf32>
    %316 = arith.negf %315 : vector<8x64xf32>
    %317 = math.exp %316 : vector<8x64xf32>
    %cst_124 = arith.constant 1.000000e+00 : f32
    %318 = vector.broadcast %cst_124 : f32 to vector<8x64xf32>
    %319 = arith.addf %318, %317 : vector<8x64xf32>
    %320 = arith.divf %318, %319 : vector<8x64xf32>
    %321 = vector.extract_strided_slice %314 {offsets = [0, 64], sizes = [8, 64], strides = [1, 1]} : vector<8x256xf32> to vector<8x64xf32>
    %322 = arith.negf %321 : vector<8x64xf32>
    %323 = math.exp %322 : vector<8x64xf32>
    %cst_125 = arith.constant 1.000000e+00 : f32
    %324 = vector.broadcast %cst_125 : f32 to vector<8x64xf32>
    %325 = arith.addf %324, %323 : vector<8x64xf32>
    %326 = arith.divf %324, %325 : vector<8x64xf32>
    %327 = vector.extract_strided_slice %314 {offsets = [0, 128], sizes = [8, 64], strides = [1, 1]} : vector<8x256xf32> to vector<8x64xf32>
    %328 = math.tanh %327 : vector<8x64xf32>
    %329 = vector.extract_strided_slice %314 {offsets = [0, 192], sizes = [8, 64], strides = [1, 1]} : vector<8x256xf32> to vector<8x64xf32>
    %330 = arith.negf %329 : vector<8x64xf32>
    %331 = math.exp %330 : vector<8x64xf32>
    %cst_126 = arith.constant 1.000000e+00 : f32
    %332 = vector.broadcast %cst_126 : f32 to vector<8x64xf32>
    %333 = arith.addf %332, %331 : vector<8x64xf32>
    %334 = arith.divf %332, %333 : vector<8x64xf32>
    %335 = arith.mulf %326, %306 : vector<8x64xf32>
    %336 = arith.mulf %320, %328 : vector<8x64xf32>
    %337 = arith.addf %335, %336 : vector<8x64xf32>
    %338 = math.tanh %337 : vector<8x64xf32>
    %339 = arith.mulf %334, %338 : vector<8x64xf32>
    %c2_i32 = arith.constant 2 : i32
    %340 = arith.index_cast %c2_i32 : i32 to index
    %c0_127 = arith.constant 0 : index
    %c0_128 = arith.constant 0 : index
    %341 = vector.load %arg28[%340, %c0_127, %c0_128] : memref<4x8x256xf32, #tpu.memory_space<vmem>>, vector<1x8x256xf32>
    %342 = vector.shape_cast %341 : vector<1x8x256xf32> to vector<8x256xf32>
    %343 = arith.truncf %339 : vector<8x64xf32> to vector<8x64xbf16>
    %cst_129 = arith.constant dense<0.000000e+00> : vector<8x256xf32>
    %344 = tpu.matmul %343, %275, %cst_129 {dimension_numbers = #tpu.dot_dimension_numbers<[1], [0], [0], [1], [0, 0, 1, 1], [], []>} : vector<8x64xbf16>, vector<64x256xbf16>, vector<8x256xf32> -> vector<8x256xf32>
    %345 = arith.addf %342, %344 : vector<8x256xf32>
    %346 = vector.extract_strided_slice %345 {offsets = [0, 0], sizes = [8, 64], strides = [1, 1]} : vector<8x256xf32> to vector<8x64xf32>
    %347 = arith.negf %346 : vector<8x64xf32>
    %348 = math.exp %347 : vector<8x64xf32>
    %cst_130 = arith.constant 1.000000e+00 : f32
    %349 = vector.broadcast %cst_130 : f32 to vector<8x64xf32>
    %350 = arith.addf %349, %348 : vector<8x64xf32>
    %351 = arith.divf %349, %350 : vector<8x64xf32>
    %352 = vector.extract_strided_slice %345 {offsets = [0, 64], sizes = [8, 64], strides = [1, 1]} : vector<8x256xf32> to vector<8x64xf32>
    %353 = arith.negf %352 : vector<8x64xf32>
    %354 = math.exp %353 : vector<8x64xf32>
    %cst_131 = arith.constant 1.000000e+00 : f32
    %355 = vector.broadcast %cst_131 : f32 to vector<8x64xf32>
    %356 = arith.addf %355, %354 : vector<8x64xf32>
    %357 = arith.divf %355, %356 : vector<8x64xf32>
    %358 = vector.extract_strided_slice %345 {offsets = [0, 128], sizes = [8, 64], strides = [1, 1]} : vector<8x256xf32> to vector<8x64xf32>
    %359 = math.tanh %358 : vector<8x64xf32>
    %360 = vector.extract_strided_slice %345 {offsets = [0, 192], sizes = [8, 64], strides = [1, 1]} : vector<8x256xf32> to vector<8x64xf32>
    %361 = arith.negf %360 : vector<8x64xf32>
    %362 = math.exp %361 : vector<8x64xf32>
    %cst_132 = arith.constant 1.000000e+00 : f32
    %363 = vector.broadcast %cst_132 : f32 to vector<8x64xf32>
    %364 = arith.addf %363, %362 : vector<8x64xf32>
    %365 = arith.divf %363, %364 : vector<8x64xf32>
    %366 = arith.mulf %357, %337 : vector<8x64xf32>
    %367 = arith.mulf %351, %359 : vector<8x64xf32>
    %368 = arith.addf %366, %367 : vector<8x64xf32>
    %369 = math.tanh %368 : vector<8x64xf32>
    %370 = arith.mulf %365, %369 : vector<8x64xf32>
    %c3_i32 = arith.constant 3 : i32
    %371 = arith.index_cast %c3_i32 : i32 to index
    %c0_133 = arith.constant 0 : index
    %c0_134 = arith.constant 0 : index
    %372 = vector.load %arg28[%371, %c0_133, %c0_134] : memref<4x8x256xf32, #tpu.memory_space<vmem>>, vector<1x8x256xf32>
    %373 = vector.shape_cast %372 : vector<1x8x256xf32> to vector<8x256xf32>
    %374 = arith.truncf %370 : vector<8x64xf32> to vector<8x64xbf16>
    %cst_135 = arith.constant dense<0.000000e+00> : vector<8x256xf32>
    %375 = tpu.matmul %374, %275, %cst_135 {dimension_numbers = #tpu.dot_dimension_numbers<[1], [0], [0], [1], [0, 0, 1, 1], [], []>} : vector<8x64xbf16>, vector<64x256xbf16>, vector<8x256xf32> -> vector<8x256xf32>
    %376 = arith.addf %373, %375 : vector<8x256xf32>
    %377 = vector.extract_strided_slice %376 {offsets = [0, 0], sizes = [8, 64], strides = [1, 1]} : vector<8x256xf32> to vector<8x64xf32>
    %378 = arith.negf %377 : vector<8x64xf32>
    %379 = math.exp %378 : vector<8x64xf32>
    %cst_136 = arith.constant 1.000000e+00 : f32
    %380 = vector.broadcast %cst_136 : f32 to vector<8x64xf32>
    %381 = arith.addf %380, %379 : vector<8x64xf32>
    %382 = arith.divf %380, %381 : vector<8x64xf32>
    %383 = vector.extract_strided_slice %376 {offsets = [0, 64], sizes = [8, 64], strides = [1, 1]} : vector<8x256xf32> to vector<8x64xf32>
    %384 = arith.negf %383 : vector<8x64xf32>
    %385 = math.exp %384 : vector<8x64xf32>
    %cst_137 = arith.constant 1.000000e+00 : f32
    %386 = vector.broadcast %cst_137 : f32 to vector<8x64xf32>
    %387 = arith.addf %386, %385 : vector<8x64xf32>
    %388 = arith.divf %386, %387 : vector<8x64xf32>
    %389 = vector.extract_strided_slice %376 {offsets = [0, 128], sizes = [8, 64], strides = [1, 1]} : vector<8x256xf32> to vector<8x64xf32>
    %390 = math.tanh %389 : vector<8x64xf32>
    %391 = vector.extract_strided_slice %376 {offsets = [0, 192], sizes = [8, 64], strides = [1, 1]} : vector<8x256xf32> to vector<8x64xf32>
    %392 = arith.negf %391 : vector<8x64xf32>
    %393 = math.exp %392 : vector<8x64xf32>
    %cst_138 = arith.constant 1.000000e+00 : f32
    %394 = vector.broadcast %cst_138 : f32 to vector<8x64xf32>
    %395 = arith.addf %394, %393 : vector<8x64xf32>
    %396 = arith.divf %394, %395 : vector<8x64xf32>
    %397 = arith.mulf %388, %368 : vector<8x64xf32>
    %398 = arith.mulf %382, %390 : vector<8x64xf32>
    %399 = arith.addf %397, %398 : vector<8x64xf32>
    %400 = math.tanh %399 : vector<8x64xf32>
    %401 = arith.mulf %396, %400 : vector<8x64xf32>
    %c4_i32 = arith.constant 4 : i32
    %c0_139 = arith.constant 0 : index
    %c0_140 = arith.constant 0 : index
    %402 = vector.load %arg23[%c0_139, %c0_140] : memref<64x128xbf16, #tpu.memory_space<vmem>>, vector<64x128xbf16>
    %403 = arith.truncf %401 : vector<8x64xf32> to vector<8x64xbf16>
    %cst_141 = arith.constant dense<0.000000e+00> : vector<8x128xf32>
    %404 = tpu.matmul %403, %402, %cst_141 {dimension_numbers = #tpu.dot_dimension_numbers<[1], [0], [0], [1], [0, 0, 1, 1], [], []>} : vector<8x64xbf16>, vector<64x128xbf16>, vector<8x128xf32> -> vector<8x128xf32>
    %c0_142 = arith.constant 0 : index
    %c0_143 = arith.constant 0 : index
    %405 = vector.load %arg24[%c0_142, %c0_143] : memref<1x128xf32, #tpu.memory_space<vmem>>, vector<1x128xf32>
    %406 = vector.broadcast %405 : vector<1x128xf32> to vector<8x128xf32>
    %407 = arith.addf %404, %406 : vector<8x128xf32>
    %cst_144 = arith.constant 0.000000e+00 : f32
    %408 = vector.broadcast %cst_144 : f32 to vector<8x128xf32>
    %409 = arith.maximumf %407, %408 : vector<8x128xf32>
    %c0_145 = arith.constant 0 : index
    %c0_146 = arith.constant 0 : index
    %410 = vector.load %arg25[%c0_145, %c0_146] : memref<1x128xf32, #tpu.memory_space<vmem>>, vector<1x128xf32>
    %411 = vector.broadcast %410 : vector<1x128xf32> to vector<8x128xf32>
    %412 = arith.mulf %409, %411 : vector<8x128xf32>
    %cst_147 = arith.constant dense<0.000000e+00> : vector<8xf32>
    %413 = vector.multi_reduction <add>, %412, %cst_147 [1] : vector<8x128xf32> to vector<8xf32>
    %414 = vector.shape_cast %413 : vector<8xf32> to vector<8x1xf32>
    %c0_148 = arith.constant 0 : index
    %c0_149 = arith.constant 0 : index
    %415 = vector.load %arg26[%c0_148, %c0_149] : memref<1x1xf32, #tpu.memory_space<vmem>>, vector<1x1xf32>
    %416 = vector.broadcast %415 : vector<1x1xf32> to vector<8x1xf32>
    %417 = arith.addf %414, %416 : vector<8x1xf32>
    %c0_150 = arith.constant 0 : index
    %c0_151 = arith.constant 0 : index
    %418 = vector.load %arg27[%c0_150, %c0_151] : memref<8x1xf32, #tpu.memory_space<vmem>>, vector<8x1xf32>
    tpu.vector_store %arg27[%c0_150, %c0_151], %417 {strides = array<i32>} : memref<8x1xf32, #tpu.memory_space<vmem>>, vector<8x1xf32>,
    return
  }
  func.func @transform_0(%arg0: i32) -> (i32, i32, i32) {
    %c0_i32 = arith.constant 0 : i32
    %c0_i32_0 = arith.constant 0 : i32
    %c0_i32_1 = arith.constant 0 : i32
    return %c0_i32, %arg0, %c0_i32_0 : i32, i32, i32
  }
  func.func @transform_1(%arg0: i32) -> (i32, i32) {
    %c0_i32 = arith.constant 0 : i32
    %c0_i32_0 = arith.constant 0 : i32
    %c0_i32_1 = arith.constant 0 : i32
    return %c0_i32, %c0_i32_0 : i32, i32
  }
  func.func @transform_2(%arg0: i32) -> (i32, i32) {
    %c0_i32 = arith.constant 0 : i32
    %c0_i32_0 = arith.constant 0 : i32
    %c0_i32_1 = arith.constant 0 : i32
    return %c0_i32, %c0_i32_0 : i32, i32
  }
  func.func @transform_3(%arg0: i32) -> (i32, i32, i32) {
    %c0_i32 = arith.constant 0 : i32
    %c0_i32_0 = arith.constant 0 : i32
    %c0_i32_1 = arith.constant 0 : i32
    %c0_i32_2 = arith.constant 0 : i32
    return %c0_i32, %c0_i32_0, %c0_i32_1 : i32, i32, i32
  }
  func.func @transform_4(%arg0: i32) -> (i32, i32) {
    %c0_i32 = arith.constant 0 : i32
    %c0_i32_0 = arith.constant 0 : i32
    %c0_i32_1 = arith.constant 0 : i32
    return %c0_i32, %c0_i32_0 : i32, i32
  }
  func.func @transform_5(%arg0: i32) -> (i32, i32, i32) {
    %c0_i32 = arith.constant 0 : i32
    %c0_i32_0 = arith.constant 0 : i32
    %c0_i32_1 = arith.constant 0 : i32
    %c0_i32_2 = arith.constant 0 : i32
    return %c0_i32, %c0_i32_0, %c0_i32_1 : i32, i32, i32
  }
  func.func @transform_6(%arg0: i32) -> (i32, i32) {
    %c0_i32 = arith.constant 0 : i32
    %c0_i32_0 = arith.constant 0 : i32
    %c0_i32_1 = arith.constant 0 : i32
    return %c0_i32, %c0_i32_0 : i32, i32
  }
  func.func @transform_7(%arg0: i32) -> (i32, i32) {
    %c0_i32 = arith.constant 0 : i32
    %c0_i32_0 = arith.constant 0 : i32
    %c0_i32_1 = arith.constant 0 : i32
    return %c0_i32, %c0_i32_0 : i32, i32
  }
  func.func @transform_8(%arg0: i32) -> (i32, i32) {
    %c0_i32 = arith.constant 0 : i32
    %c0_i32_0 = arith.constant 0 : i32
    %c0_i32_1 = arith.constant 0 : i32
    return %c0_i32, %c0_i32_0 : i32, i32
  }
  func.func @transform_9(%arg0: i32) -> (i32, i32, i32) {
    %c0_i32 = arith.constant 0 : i32
    %c0_i32_0 = arith.constant 0 : i32
    %c0_i32_1 = arith.constant 0 : i32
    %c0_i32_2 = arith.constant 0 : i32
    return %c0_i32, %c0_i32_0, %c0_i32_1 : i32, i32, i32
  }
  func.func @transform_10(%arg0: i32) -> (i32, i32) {
    %c0_i32 = arith.constant 0 : i32
    %c0_i32_0 = arith.constant 0 : i32
    %c0_i32_1 = arith.constant 0 : i32
    return %c0_i32, %c0_i32_0 : i32, i32
  }
  func.func @transform_11(%arg0: i32) -> (i32, i32, i32) {
    %c0_i32 = arith.constant 0 : i32
    %c0_i32_0 = arith.constant 0 : i32
    %c0_i32_1 = arith.constant 0 : i32
    %c0_i32_2 = arith.constant 0 : i32
    return %c0_i32, %c0_i32_0, %c0_i32_1 : i32, i32, i32
  }
  func.func @transform_12(%arg0: i32) -> (i32, i32) {
    %c0_i32 = arith.constant 0 : i32
    %c0_i32_0 = arith.constant 0 : i32
    %c0_i32_1 = arith.constant 0 : i32
    return %c0_i32, %c0_i32_0 : i32, i32
  }
  func.func @transform_13(%arg0: i32) -> (i32, i32) {
    %c0_i32 = arith.constant 0 : i32
    %c0_i32_0 = arith.constant 0 : i32
    %c0_i32_1 = arith.constant 0 : i32
    return %c0_i32, %c0_i32_0 : i32, i32
  }
  func.func @transform_14(%arg0: i32) -> (i32, i32) {
    %c0_i32 = arith.constant 0 : i32
    %c0_i32_0 = arith.constant 0 : i32
    %c0_i32_1 = arith.constant 0 : i32
    return %c0_i32, %c0_i32_0 : i32, i32
  }
  func.func @transform_15(%arg0: i32) -> (i32, i32, i32) {
    %c0_i32 = arith.constant 0 : i32
    %c0_i32_0 = arith.constant 0 : i32
    %c0_i32_1 = arith.constant 0 : i32
    %c0_i32_2 = arith.constant 0 : i32
    return %c0_i32, %c0_i32_0, %c0_i32_1 : i32, i32, i32
  }
  func.func @transform_16(%arg0: i32) -> (i32, i32) {
    %c0_i32 = arith.constant 0 : i32
    %c0_i32_0 = arith.constant 0 : i32
    %c0_i32_1 = arith.constant 0 : i32
    return %c0_i32, %c0_i32_0 : i32, i32
  }
  func.func @transform_17(%arg0: i32) -> (i32, i32, i32) {
    %c0_i32 = arith.constant 0 : i32
    %c0_i32_0 = arith.constant 0 : i32
    %c0_i32_1 = arith.constant 0 : i32
    %c0_i32_2 = arith.constant 0 : i32
    return %c0_i32, %c0_i32_0, %c0_i32_1 : i32, i32, i32
  }
  func.func @transform_18(%arg0: i32) -> (i32, i32) {
    %c0_i32 = arith.constant 0 : i32
    %c0_i32_0 = arith.constant 0 : i32
    %c0_i32_1 = arith.constant 0 : i32
    return %c0_i32, %c0_i32_0 : i32, i32
  }
  func.func @transform_19(%arg0: i32) -> (i32, i32) {
    %c0_i32 = arith.constant 0 : i32
    %c0_i32_0 = arith.constant 0 : i32
    %c0_i32_1 = arith.constant 0 : i32
    return %c0_i32, %c0_i32_0 : i32, i32
  }
  func.func @transform_20(%arg0: i32) -> (i32, i32) {
    %c0_i32 = arith.constant 0 : i32
    %c0_i32_0 = arith.constant 0 : i32
    %c0_i32_1 = arith.constant 0 : i32
    return %c0_i32, %c0_i32_0 : i32, i32
  }
  func.func @transform_21(%arg0: i32) -> (i32, i32) {
    %c0_i32 = arith.constant 0 : i32
    %c0_i32_0 = arith.constant 0 : i32
    %c0_i32_1 = arith.constant 0 : i32
    return %c0_i32, %c0_i32_0 : i32, i32
  }
  func.func @transform_22(%arg0: i32) -> (i32, i32) {
    %c0_i32 = arith.constant 0 : i32
    %c0_i32_0 = arith.constant 0 : i32
    %c0_i32_1 = arith.constant 0 : i32
    return %c0_i32, %c0_i32_0 : i32, i32
  }
  func.func @transform_23(%arg0: i32) -> (i32, i32) {
    %c0_i32 = arith.constant 0 : i32
    %c0_i32_0 = arith.constant 0 : i32
    %c0_i32_1 = arith.constant 0 : i32
    return %c0_i32, %c0_i32_0 : i32, i32
  }
  func.func @transform_24(%arg0: i32) -> (i32, i32) {
    %c0_i32 = arith.constant 0 : i32
    %c0_i32_0 = arith.constant 0 : i32
    %c0_i32_1 = arith.constant 0 : i32
    return %c0_i32, %c0_i32_0 : i32, i32
  }
  func.func @transform_25(%arg0: i32) -> (i32, i32) {
    %c0_i32 = arith.constant 0 : i32
    %c0_i32_0 = arith.constant 0 : i32
    %c0_i32_1 = arith.constant 0 : i32
    return %c0_i32, %c0_i32_0 : i32, i32
  }
  func.func @transform_26(%arg0: i32) -> (i32, i32) {
    %c0_i32 = arith.constant 0 : i32
    %c0_i32_0 = arith.constant 0 : i32
    return %arg0, %c0_i32 : i32, i32
  }
}

</mosaic_0001>

<bundles_post_ra>
// kernel: gennet_forward.1
= control target key start
LH: loop header
LB: loop body
LE: loop exit
PB: predicated region body
PF: predicated region fallthrough
CT: control target
= control target key end

     0   :  { %s7473_s0 = inlined_call_operand.vmem [shape: f32[32,16,1], index: 0, kind: input, shape index: {}]   ;;  %s7474_s1 = inlined_call_operand.<no memory space> [shape: f32[1,1], index: 1, kind: input, shape index: {}]   ;;  %s7475_s3 = inlined_call_operand.vmem [shape: bf16[3,1,16], index: 3, kind: input, shape index: {}]   ;;  %s7476_s4 = inlined_call_operand.vmem [shape: f32[1,16], index: 4, kind: input, shape index: {}]   ;;  %s7477_s5 = inlined_call_operand.vmem [shape: bf16[3,16,16], index: 5, kind: input, shape index: {}]   ;;  %s7478_s6 = inlined_call_operand.vmem [shape: f32[1,16], index: 6, kind: input, shape index: {}]   ;;  %s7479_s7 = inlined_call_operand.vmem [shape: f32[1,16], index: 7, kind: input, shape index: {}]   ;;  %s7480_s8 = inlined_call_operand.vmem [shape: f32[1,16], index: 8, kind: input, shape index: {}]   ;;  %s7481_s9 = inlined_call_operand.vmem [shape: bf16[3,16,32], index: 9, kind: input, shape index: {}]   ;;  %s7482_s10 = inlined_call_operand.vmem [shape: f32[1,32], index: 10, kind: input, shape index: {}]   ;;  %s7483_s11 = inlined_call_operand.vmem [shape: bf16[3,32,32], index: 11, kind: input, shape index: {}]   ;;  %s7484_s12 = inlined_call_operand.vmem [shape: f32[1,32], index: 12, kind: input, shape index: {}]   ;;  %s7485_s13 = inlined_call_operand.vmem [shape: f32[1,32], index: 13, kind: input, shape index: {}]   ;;  %s7486_s14 = inlined_call_operand.vmem [shape: f32[1,32], index: 14, kind: input, shape index: {}]   ;;  %s7487_s15 = inlined_call_operand.vmem [shape: bf16[3,32,64], index: 15, kind: input, shape index: {}]   ;;  %s7488_s16 = inlined_call_operand.vmem [shape: f32[1,64], index: 16, kind: input, shape index: {}]   ;;  %s7489_s17 = inlined_call_operand.vmem [shape: bf16[3,64,64], index: 17, kind: input, shape index: {}]   ;;  %s7490_s18 = inlined_call_operand.vmem [shape: f32[1,64], index: 18, kind: input, shape index: {}]   ;;  %s7491_s19 = inlined_call_operand.vmem [shape: bf16[64,256], index: 19, kind: input, shape index: {}]   ;;  %s7492_s20 = inlined_call_operand.vmem [shape: bf16[64,256], index: 20, kind: input, shape index: {}]   ;;  %s7493_s21 = inlined_call_operand.vmem [shape: f32[1,256], index: 21, kind: input, shape index: {}]   ;;  %s7494_s22 = inlined_call_operand.vmem [shape: bf16[64,128], index: 22, kind: input, shape index: {}]   ;;  %s7495_s23 = inlined_call_operand.vmem [shape: f32[1,128], index: 23, kind: input, shape index: {}]   ;;  %s7496_s24 = inlined_call_operand.vmem [shape: f32[1,128], index: 24, kind: input, shape index: {}]   ;;  %s7497_s26 = inlined_call_operand.vmem [shape: f32[16,1], index: 26, kind: output, shape index: {}]   ;;  %s7498_s2 = inlined_call_operand.<no memory space> [shape: f32[1,1], index: 2, kind: input, shape index: {}]   ;;  %s7499_s25 = inlined_call_operand.<no memory space> [shape: f32[1,1], index: 25, kind: input, shape index: {}]  }
   0x1   :  { %7514 = sst [smem:[#allocation29_spill]] %s7473_s0  ;;  %v33_v1 = vstv %s7498_s2  ;;  %v35_v2 = vstv %s7499_s25 }
   0x2   :  { %7515 = sst [smem:[#allocation30_spill]] %s7474_s1  ;;  %34 = vst [vmem:[#allocation4] sm:$0x1] %v33_v1  ;;  %36 = vst [vmem:[#allocation5] sm:$0x1] %v35_v2 }
   0x3   :  { %7516 = sst [smem:[#allocation31_spill]] %s7475_s3 }
   0x4   :  { %7517 = sst [smem:[#allocation32_spill]] %s7476_s4 }
   0x5   :  { %7518 = sst [smem:[#allocation33_spill]] %s7477_s5 }
   0x6   :  { %7519 = sst [smem:[#allocation34_spill]] %s7478_s6 }
   0x7   :  { %7520 = sst [smem:[#allocation35_spill]] %s7479_s7 }
   0x8   :  { %7521 = sst [smem:[#allocation36_spill]] %s7480_s8 }
   0x9   :  { %7522 = sst [smem:[#allocation37_spill]] %s7481_s9 }
   0xa   :  { %7523 = sst [smem:[#allocation38_spill]] %s7482_s10 }
   0xb   :  { %7524 = sst [smem:[#allocation39_spill]] %s7483_s11 }
   0xc   :  { %s7525_s8 = sld [smem:[#allocation30_spill]] }
  0x12   :  { %v31_v0 = vstv %s7525_s8 }
  0x13   :  { %32 = vst [vmem:[#allocation3] sm:$0x1] %v31_v0 }
  0x14   :  { %s5864_s0 = smov 0   ;;  %s5866_s10 = smov 0  }
  0x15   :  { %s5868_s30 = smov 0  }
  0x16 LB: > { %s4837_s2 = sadd.s32 4294967295, %s5714_s30   ;;  %s5881_s25 = sadd.s32 1, %s5714_s30   ;;  %s5714_s30 = sphi %s5868_s30, %s7583_s30   ;;  %s5710_s10 = sphi %s5866_s10, %s7582_s10   ;;  %s5706_s0 = sphi %s5864_s0, %s7581_s0  }
  0x17   : > { %s46_s3 = ssub.s32 %s5714_s30, %s5881_s25  ;;  %s49_s6 = sadd.s32 1, %s5710_s10 }
  0x18   : > { %p47_p0 = scmp.eq.s32.totalorder %s46_s3, 0  ;;  %p56_p1 = scmp.ne.s32.totalorder %s5710_s10, %s5706_s0 }
  0x19   : > { %p57_p2 = scmp.eq.s32.totalorder %s5714_s30, 0  ;;  %p4840_p4 = scmp.ge.s32.totalorder %s5714_s30, 2 }
  0x1a   : > { %s5890_s11 = scalar_select %p47_p0, %s5710_s10, %s49_s6  }
  0x1b   : > { %p58_p3 = por %p57_p2, %p56_p1  ;;  %708 = sbr.rel (%p4840_p4) target bundleno = 58 (0x3a), region = 116 }
  0x20   : > { %711 = sbr.rel (!%p58_p3) target bundleno = 58 (0x3a), region = 120  ;;  %s713_s7 = sand.u32 (%p58_p3), 1, %s5710_s10  }
  0x21   : > { %s4842_s1 = sshll.u32 (%p58_p3), %s5714_s30, 3  ;;  %s4841_s27 = sshll.u32 (%p58_p3), %s713_s7, 8 }
  0x22   : > { %s7526_s28 = sld [smem:[#allocation29_spill]] (%p58_p3)  ;;  %s5903_s5 = scalar_lea.vmem (%p58_p3), [#allocation6], %s4841_s27 }
  0x28   : > { %s5898_s9 = scalar_lea.vmem %s7526_s28, %s4842_s1 }
  0x29   : > { %v808_v3 = vld [vmem:[%s5898_s9] sm:$0xff]  ;;  %v810_v4 = vld [vmem:[%s5898_s9 + $0x10] sm:$0xff] }
  0x2a   : > { %v812_v5 = vld [vmem:[%s5898_s9 + $0x20] sm:$0xff]  ;;  %809 = vst [vmem:[%s5903_s5] sm:$0xff] %v808_v3  ;;  %811 = vst [vmem:[%s5903_s5 + $0x8] sm:$0xff] %v810_v4  ;;  %v814_v6 = vld [vmem:[%s5898_s9 + $0x30] sm:$0xff] }
  0x2b   : > { %813 = vst [vmem:[%s5903_s5 + $0x10] sm:$0xff] %v812_v5  ;;  %v816_v7 = vld [vmem:[%s5898_s9 + $0x40] sm:$0xff]  ;;  %v818_v8 = vld [vmem:[%s5898_s9 + $0x50] sm:$0xff]  ;;  %815 = vst [vmem:[%s5903_s5 + $0x18] sm:$0xff] %v814_v6 }
  0x2c   : > { %817 = vst [vmem:[%s5903_s5 + $0x20] sm:$0xff] %v816_v7  ;;  %819 = vst [vmem:[%s5903_s5 + $0x28] sm:$0xff] %v818_v8  ;;  %v820_v9 = vld [vmem:[%s5898_s9 + $0x60] sm:$0xff]  ;;  %v822_v10 = vld [vmem:[%s5898_s9 + $0x70] sm:$0xff] }
  0x2d   : > { %v824_v11 = vld [vmem:[%s5898_s9 + $0x80] sm:$0xff]  ;;  %821 = vst [vmem:[%s5903_s5 + $0x30] sm:$0xff] %v820_v9  ;;  %823 = vst [vmem:[%s5903_s5 + $0x38] sm:$0xff] %v822_v10  ;;  %v826_v12 = vld [vmem:[%s5898_s9 + $0x90] sm:$0xff] }
  0x2e   : > { %825 = vst [vmem:[%s5903_s5 + $0x40] sm:$0xff] %v824_v11  ;;  %v828_v13 = vld [vmem:[%s5898_s9 + $0xa0] sm:$0xff]  ;;  %v830_v14 = vld [vmem:[%s5898_s9 + $0xb0] sm:$0xff]  ;;  %827 = vst [vmem:[%s5903_s5 + $0x48] sm:$0xff] %v826_v12 }
  0x2f   : > { %829 = vst [vmem:[%s5903_s5 + $0x50] sm:$0xff] %v828_v13  ;;  %831 = vst [vmem:[%s5903_s5 + $0x58] sm:$0xff] %v830_v14  ;;  %v832_v15 = vld [vmem:[%s5898_s9 + $0xc0] sm:$0xff]  ;;  %v834_v16 = vld [vmem:[%s5898_s9 + $0xd0] sm:$0xff] }
  0x30   : > { %v836_v17 = vld [vmem:[%s5898_s9 + $0xe0] sm:$0xff]  ;;  %833 = vst [vmem:[%s5903_s5 + $0x60] sm:$0xff] %v832_v15  ;;  %835 = vst [vmem:[%s5903_s5 + $0x68] sm:$0xff] %v834_v16  ;;  %v838_v18 = vld [vmem:[%s5898_s9 + $0xf0] sm:$0xff] }
  0x31   : > { %837 = vst [vmem:[%s5903_s5 + $0x70] sm:$0xff] %v836_v17  ;;  %v840_v19 = vld [vmem:[%s5898_s9 + $0x100] sm:$0xff]  ;;  %v842_v20 = vld [vmem:[%s5898_s9 + $0x110] sm:$0xff]  ;;  %839 = vst [vmem:[%s5903_s5 + $0x78] sm:$0xff] %v838_v18 }
  0x32   : > { %841 = vst [vmem:[%s5903_s5 + $0x80] sm:$0xff] %v840_v19  ;;  %843 = vst [vmem:[%s5903_s5 + $0x88] sm:$0xff] %v842_v20  ;;  %v844_v21 = vld [vmem:[%s5898_s9 + $0x120] sm:$0xff]  ;;  %v846_v22 = vld [vmem:[%s5898_s9 + $0x130] sm:$0xff] }
  0x33   : > { %v848_v23 = vld [vmem:[%s5898_s9 + $0x140] sm:$0xff]  ;;  %845 = vst [vmem:[%s5903_s5 + $0x90] sm:$0xff] %v844_v21  ;;  %847 = vst [vmem:[%s5903_s5 + $0x98] sm:$0xff] %v846_v22  ;;  %v850_v24 = vld [vmem:[%s5898_s9 + $0x150] sm:$0xff] }
  0x34   : > { %849 = vst [vmem:[%s5903_s5 + $0xa0] sm:$0xff] %v848_v23  ;;  %v852_v25 = vld [vmem:[%s5898_s9 + $0x160] sm:$0xff]  ;;  %v854_v26 = vld [vmem:[%s5898_s9 + $0x170] sm:$0xff]  ;;  %851 = vst [vmem:[%s5903_s5 + $0xa8] sm:$0xff] %v850_v24 }
  0x35   : > { %853 = vst [vmem:[%s5903_s5 + $0xb0] sm:$0xff] %v852_v25  ;;  %855 = vst [vmem:[%s5903_s5 + $0xb8] sm:$0xff] %v854_v26  ;;  %v856_v27 = vld [vmem:[%s5898_s9 + $0x180] sm:$0xff]  ;;  %v858_v28 = vld [vmem:[%s5898_s9 + $0x190] sm:$0xff] }
  0x36   : > { %v860_v29 = vld [vmem:[%s5898_s9 + $0x1a0] sm:$0xff]  ;;  %857 = vst [vmem:[%s5903_s5 + $0xc0] sm:$0xff] %v856_v27  ;;  %859 = vst [vmem:[%s5903_s5 + $0xc8] sm:$0xff] %v858_v28  ;;  %v862_v30 = vld [vmem:[%s5898_s9 + $0x1b0] sm:$0xff] }
  0x37   : > { %861 = vst [vmem:[%s5903_s5 + $0xd0] sm:$0xff] %v860_v29  ;;  %v864_v31 = vld [vmem:[%s5898_s9 + $0x1c0] sm:$0xff]  ;;  %v866_v32 = vld [vmem:[%s5898_s9 + $0x1d0] sm:$0xff]  ;;  %863 = vst [vmem:[%s5903_s5 + $0xd8] sm:$0xff] %v862_v30 }
  0x38   : > { %865 = vst [vmem:[%s5903_s5 + $0xe0] sm:$0xff] %v864_v31  ;;  %867 = vst [vmem:[%s5903_s5 + $0xe8] sm:$0xff] %v866_v32  ;;  %v868_v33 = vld [vmem:[%s5898_s9 + $0x1e0] sm:$0xff]  ;;  %v870_v34 = vld [vmem:[%s5898_s9 + $0x1f0] sm:$0xff] }
  0x39   : > { %869 = vst [vmem:[%s5903_s5 + $0xf0] sm:$0xff] %v868_v33  ;;  %871 = vst [vmem:[%s5903_s5 + $0xf8] sm:$0xff] %v870_v34 }
  0x3a PF: > { %p4843_p5 = scmp.ge.s32.totalorder %s5714_s30, 1  ;;  %p876_p6 = scmp.lt.s32.totalorder %s5714_s30, 3 }
  0x3c   : > { %p877_p7 = pnand %p4843_p5, %p876_p6 }
  0x3e   : > { %880 = sbr.rel (%p877_p7) target bundleno = 3760 (0xeb0), region = 158 }
  0x43   : > { %s883_s29 = sand.u32 1, %s5706_s0   ;;  %v7504_v35 = vmov 0   ;;  %v5971_v36 = vld [vmem:[#allocation3] ss:$0 sm:$0xff]  ;;  %v5973_v37 = vld [vmem:[#allocation4] ss:$0 sm:$0xff] }
  0x44   : > { %5585 = vset.pattern.permute.xlu1 %v7504_v35  ;;  %5584 = vset.pattern.permute.xlu0 %v7504_v35  ;;  %s4844_s3 = sshll.u32 %s883_s29, 8  ;;  %s7527_s1 = sld [smem:[#allocation33_spill]]  ;;  %vm1500_vm0 = vcmask 130048   ;;  %vm2925_vm1 = vcmask 261120   ;;  %vm3834_vm2 = vcmask 523264   ;;  %vm5719_vm3 = vmmov 0  }
  0x45   : > { %s5975_s6 = scalar_lea.vmem [#allocation6], %s4844_s3  ;;  %s7529_s29 = sld [smem:[#allocation31_spill]]  ;;  %vm4776_vm4 = vcmask 7168  }
  0x46   : > { %v5978_v38 = vld [vmem:[%s5975_s6 + $0x10] sm:$0xff]  ;;  %v5981_v39 = vld [vmem:[%s5975_s6] sm:$0xff]  ;;  %v5984_v40 = vld [vmem:[%s5975_s6 + $0x18] sm:$0xff]  ;;  %s7537_s8 = sld [smem:[#allocation32_spill]]  ;;  %p951_p8 = scmp.lt.s32.totalorder %s4837_s2, 1 }
  0x47   : > { %v997_v41 = vmul.f32 %v5971_v36, %v5978_v38  ;;  %v995_v42 = vmul.f32 %v5971_v36, %v5981_v39  ;;  %v998_v43 = vmul.f32 %v5971_v36, %v5984_v40  ;;  %v5993_v44 = vld [vmem:[%s5975_s6 + $0x8] sm:$0xff]  ;;  %v6001_v47 = vld [vmem:[%s5975_s6 + $0x20] sm:$0xff]  ;;  %v6012_v54 = vld [vmem:[%s5975_s6 + $0x38] sm:$0xff]  ;;  %s7538_s5 = sld [smem:[#allocation37_spill]] }
  0x48   : > { %v5996_v45 = vld [vmem:[%s5975_s6 + $0x28] sm:$0xff]  ;;  %v996_v46 = vmul.f32 %v5971_v36, %v5993_v44  ;;  %v999_v53 = vmul.f32 %v5971_v36, %v6001_v47  ;;  %v6015_v55 = vld [vmem:[%s5975_s6 + $0x30] sm:$0xff]  ;;  %v1002_v56 = vmul.f32 %v5971_v36, %v6012_v54  ;;  %v6027_v61 = vld [vmem:[%s5975_s6 + $0x40] sm:$0xff]  ;;  %s7554_s3 = sld [smem:[#allocation35_spill]]  ;;  %s7585_s2 = smov (!%p951_p8, %s4837_s2), 1 }
  0x49   : > { %v1036_v48 = vadd.f32 %v5973_v37, %v997_v41  ;;  %v1034_v49 = vadd.f32 %v5973_v37, %v995_v42  ;;  %v1000_v50 = vmul.f32 %v5971_v36, %v5996_v45  ;;  %v1037_v51 = vadd.f32 %v5973_v37, %v998_v43  ;;  %v6024_v60 = vld [vmem:[%s5975_s6 + $0x48] sm:$0xff]  ;;  %v6030_v62 = vld [vmem:[%s5975_s6 + $0x58] sm:$0xff]  ;;  %v6034_v0 = vld [vmem:[%s5975_s6 + $0x50] sm:$0xff]  ;;  %s7555_s7 = sld [smem:[#allocation36_spill]] }
  0x4a   : > { %v1035_v52 = vadd.f32 %v5973_v37, %v996_v46  ;;  %v1038_v58 = vadd.f32 %v5973_v37, %v999_v53  ;;  %v1001_v59 = vmul.f32 %v5971_v36, %v6015_v55  ;;  %v1041_v63 = vadd.f32 %v5973_v37, %v1002_v56  ;;  %v5586_v4 = vld [vmem:[%s7527_s1] sm:$0xff]   ;;  %v5587_v5 = vld [vmem:[%s7527_s1 + $0x8] sm:$0xff]   ;;  %v6065_v14 = vld [vmem:[%s5975_s6 + $0x70] sm:$0xff] }
  0x4b   : > { %1081 = vperm.xlu1 %5585, %v1036_v48   ;;  %1071 = vperm.xlu0 %5584, %v1034_v49   ;;  %v1039_v57 = vadd.f32 %v5973_v37, %v1000_v50  ;;  %v1004_v2 = vmul.f32 %v5971_v36, %v6024_v60  ;;  %v1003_v3 = vmul.f32 %v5971_v36, %v6027_v61  ;;  %v6048_v6 = vld [vmem:[%s5975_s6 + $0x68] sm:$0xff]  ;;  %v6053_v8 = vld [vmem:[%s5975_s6 + $0x60] sm:$0xff]  ;;  %v6060_v12 = vld [vmem:[%s5975_s6 + $0x78] sm:$0xff] }
  0x4c   : > { %v1040_v1 = vadd.f32 %v5973_v37, %v1001_v59  ;;  %v1006_v7 = vmul.f32 %v5971_v36, %v6030_v62  ;;  %5244 = vmatprep.subr.bf16.mxu0 %v5586_v4  ;;  %v1005_v11 = vmul.f32 %v5971_v36, %v6034_v0  ;;  %5278 = vmatprep.subr.bf16.mxu1 %v5587_v5  ;;  %v6074_v19 = vld [vmem:[%s5975_s6 + $0x88] sm:$0xff]  ;;  %v6077_v20 = vld [vmem:[%s5975_s6 + $0x80] sm:$0xff]  ;;  %v6090_v25 = vld [vmem:[%s5975_s6 + $0x98] sm:$0xff] }
  0x4d   : > { %v1043_v9 = vadd.f32 %v5973_v37, %v1004_v2  ;;  %v1042_v10 = vadd.f32 %v5973_v37, %v1003_v3  ;;  %5245 = vmatpush3.bf16.msra.mxu0 %v5586_v4  ;;  %v1008_v13 = vmul.f32 %v5971_v36, %v6048_v6  ;;  %5279 = vmatpush3.bf16.msra.mxu1 %v5587_v5  ;;  %v6082_v21 = vld [vmem:[%s7527_s1 + $0x10] sm:$0xff]   ;;  %v6107_v33 = vld [vmem:[%s5975_s6 + $0xa0] sm:$0xff]  ;;  %v6114_v43 = vld [vmem:[%s5975_s6 + $0xb8] sm:$0xff] }
  0x4e   : > { %v1045_v15 = vadd.f32 %v5973_v37, %v1006_v7  ;;  %v1044_v16 = vadd.f32 %v5973_v37, %v1005_v11  ;;  %v1007_v17 = vmul.f32 %v5971_v36, %v6053_v8  ;;  %v1010_v18 = vmul.f32 %v5971_v36, %v6060_v12  ;;  %5312 = vmatprep.subr.bf16.mxu0 %v6082_v21  ;;  %v6094_v27 = vld [vmem:[%s5975_s6 + $0x90] sm:$0xff]  ;;  %v6102_v31 = vld [vmem:[%s5975_s6 + $0xa8] sm:$0xff]  ;;  %v6135_v59 = vld [vmem:[%s5975_s6 + $0xc0] sm:$0xff] }
  0x4f   : > { %1086 = vperm.xlu1 %5585, %v1037_v51   ;;  %1076 = vperm.xlu0 %5584, %v1035_v52   ;;  %v1047_v22 = vadd.f32 %v5973_v37, %v1008_v13  ;;  %v1009_v24 = vmul.f32 %v5971_v36, %v6065_v14  ;;  %v1012_v29 = vmul.f32 %v5971_v36, %v6074_v19  ;;  %v6119_v48 = vld [vmem:[%s5975_s6 + $0xb0] sm:$0xff]  ;;  %v6144_v4 = vld [vmem:[%s5975_s6 + $0xd8] sm:$0xff]  ;;  %v6156_v13 = vld [vmem:[%s5975_s6 + $0xe8] sm:$0xff] }
  0x50   : > { %v1046_v23 = vadd.f32 %v5973_v37, %v1007_v17  ;;  %v1049_v26 = vadd.f32 %v5973_v37, %v1010_v18  ;;  %v1011_v30 = vmul.f32 %v5971_v36, %v6077_v20  ;;  %v1014_v32 = vmul.f32 %v5971_v36, %v6090_v25  ;;  %v6147_v5 = vld [vmem:[%s5975_s6 + $0xd0] sm:$0xff] }
  0x51   : > { %v1048_v28 = vadd.f32 %v5973_v37, %v1009_v24  ;;  %v1051_v34 = vadd.f32 %v5973_v37, %v1012_v29  ;;  %v1013_v42 = vmul.f32 %v5971_v36, %v6094_v27  ;;  %v1016_v46 = vmul.f32 %v5971_v36, %v6102_v31  ;;  %v6171_v24 = vld [vmem:[%s5975_s6 + $0xf0] sm:$0xff] }
  0x52   : > { %v1050_v41 = vadd.f32 %v5973_v37, %v1011_v30  ;;  %v1053_v49 = vadd.f32 %v5973_v37, %v1014_v32  ;;  %v1015_v51 = vmul.f32 %v5971_v36, %v6107_v33  ;;  %v1018_v52 = vmul.f32 %v5971_v36, %v6114_v43 }
  0x53   : > { %1096 = vperm.xlu1 %5585, %v1039_v57   ;;  %1091 = vperm.xlu0 %5584, %v1038_v58   ;;  %v1052_v50 = vadd.f32 %v5973_v37, %v1013_v42  ;;  %v1055_v53 = vadd.f32 %v5973_v37, %v1016_v46  ;;  %v1017_v57 = vmul.f32 %v5971_v36, %v6119_v48  ;;  %v6132_v58 = vld [vmem:[%s5975_s6 + $0xc8] sm:$0xff]  ;;  %v4848_v42 = vld [vmem:[%s7529_s29 + $0x1] sm:$0x1]  ;;  %v4849_v46 = vld [vmem:[%s7529_s29 + $0x2] sm:$0x1] }
  0x54   : > { %v1054_v56 = vadd.f32 %v5973_v37, %v1015_v51  ;;  %v1020_v2 = vmul.f32 %v5971_v36, %v6132_v58  ;;  %v1019_v3 = vmul.f32 %v5971_v36, %v6135_v59  ;;  %v1022_v7 = vmul.f32 %v5971_v36, %v6144_v4 }
  0x55   : > { %v1021_v11 = vmul.f32 %v5971_v36, %v6147_v5  ;;  %v1025_v30 = vmul.f32 %v5971_v36, %v6171_v24  ;;  %v1266_v51 = vunpack.c.l.bf16 %v4848_v42 }
  0x56   : > { %v1061_v17 = vadd.f32 %v5973_v37, %v1022_v7  ;;  %v2414_v7 = vmax.f32 %v6094_v27, %v6090_v25 }
  0x57   : > { %1106 = vperm.xlu1 %5585, %v1041_v63   ;;  %1101 = vperm.xlu0 %5584, %v1040_v1   ;;  %v1057_v63 = vadd.f32 %v5973_v37, %v1018_v52  ;;  %v1056_v1 = vadd.f32 %v5973_v37, %v1017_v57  ;;  %v1060_v18 = vadd.f32 %v5973_v37, %v1021_v11  ;;  %v1305_v52 = vunpack.c.l.bf16 %v4849_v46 }
  0x58   : > { %v2410_v57 = vmax.f32 %v6034_v0, %v6030_v62 }
  0x5b   : > { %1116 = vperm.xlu1 %5585, %v1043_v9   ;;  %1111 = vperm.xlu0 %5584, %v1042_v10   ;;  %v1059_v9 = vadd.f32 %v5973_v37, %v1020_v2  ;;  %v1058_v10 = vadd.f32 %v5973_v37, %v1019_v3 }
  0x5f   : > { %1126 = vperm.xlu1 %5585, %v1045_v15   ;;  %1121 = vperm.xlu0 %5584, %v1044_v16   ;;  %v6159_v15 = vld [vmem:[%s5975_s6 + $0xe0] sm:$0xff]  ;;  %v1024_v16 = vmul.f32 %v5971_v36, %v6156_v13 }
  0x63   : > { %1136 = vperm.xlu1 %5585, %v1047_v22   ;;  %1131 = vperm.xlu0 %5584, %v1046_v23   ;;  %v1023_v22 = vmul.f32 %v5971_v36, %v6159_v15  ;;  %v6168_v23 = vld [vmem:[%s5975_s6 + $0xf8] sm:$0xff] }
  0x65   : > { %v1062_v29 = vadd.f32 %v5973_v37, %v1023_v22 }
  0x67   : > { %1146 = vperm.xlu1 %5585, %v1049_v26   ;;  %1141 = vperm.xlu0 %5584, %v1048_v28   ;;  %v1026_v26 = vmul.f32 %v5971_v36, %v6168_v23  ;;  %v1063_v28 = vadd.f32 %v5973_v37, %v1024_v16  ;;  %v1229_v36 = vlaneseq  ;;  %v2416_v16 = vmax.f32 %v6119_v48, %v6114_v43 }
  0x69   : > { %v1065_v32 = vadd.f32 %v5973_v37, %v1026_v26  ;;  %v6298_v26 = vmax.f32 %v2416_v16, %v6102_v31 }
  0x6b   : > { %1156 = vperm.xlu1 %5585, %v1051_v34   ;;  %1151 = vperm.xlu0 %5584, %v1050_v41   ;;  %v1064_v34 = vadd.f32 %v5973_v37, %v1025_v30  ;;  %v6207_v37 = vshrl.u32 %v1229_v36, 7  ;;  %v1067_v41 = vld [vmem:[%s7529_s29] sm:$0x1]  ;;  %7532 = vst [vmem:[#allocation10_spill] sm:$0xff] %v6298_v26 }
  0x6d   : > { %7528 = vst [vmem:[#allocation7_spill] sm:$0xff] %v6207_v37 }
  0x6f   : > { %1166 = vperm.xlu1 %5585, %v1053_v49   ;;  %1161 = vperm.xlu0 %5584, %v1052_v50   ;;  %v1068_v49 = vunpack.c.l.bf16 %v1067_v41  ;;  %v6221_v50 = vsub.s32 0, %v6207_v37 }
  0x71   : > { %7530 = vst [vmem:[#allocation8_spill] sm:$0xff] %v6221_v50  ;;  %v6237_v2 = vrot.slane %v1266_v51, %v6221_v50  ;;  %v6331_v51 = vld [vmem:[%s7537_s8] ss:$0 sm:$0xff]  ;;  %s7552_s8 = sld [smem:[#allocation34_spill]] }
  0x73   : > { %1176 = vperm.xlu1 %5585, %v1055_v53   ;;  %1171 = vperm.xlu0 %5584, %v1054_v56   ;;  %v2407_v53 = vmax.f32 %v6001_v47, %v5996_v45  ;;  %v2408_v56 = vmax.f32 %v6015_v55, %v6012_v54 }
  0x75   : > { %v6245_v3 = vmax.f32 %v2407_v53, %v5984_v40  ;;  %v6254_v11 = vmax.f32 %v2408_v56, %v5996_v45 }
  0x77   : > { %1186 = vperm.xlu1 %5585, %v1057_v63   ;;  %1181 = vperm.xlu0 %5584, %v1056_v1   ;;  %v2409_v63 = vmax.f32 %v6027_v61, %v6024_v60  ;;  %v6234_v1 = vrot.slane %v1068_v49, %v6221_v50 }
  0x7b   : > { %1196 = vperm.xlu1 %5585, %v1059_v9   ;;  %1191 = vperm.xlu0 %5584, %v1058_v10  }
  0x7f   : > { %1206 = vperm.xlu1 %5585, %v1061_v17   ;;  %1201 = vperm.xlu0 %5584, %v1060_v18   ;;  %v2420_v17 = vmax.f32 %v6171_v24, %v6168_v23 }
  0x83   : > { %1216 = vperm.xlu1 %5585, %v1063_v28   ;;  %1211 = vperm.xlu0 %5584, %v1062_v29  }
  0x87   : > { %1226 = vperm.xlu1 %5585, %v1065_v32   ;;  %1221 = vperm.xlu0 %5584, %v1064_v34   ;;  %v6321_v32 = vmax.f32 %v2420_v17, %v6156_v13 }
  0x89   : > { %7535 = vst [vmem:[#allocation13_spill] sm:$0xff] %v6321_v32 }
  0x8b   : > { %2199 = vperm.xlu1 %5585, %v5984_v40   ;;  %2194 = vperm.xlu0 %5584, %v5978_v38  }
  0x8f   : > { %2209 = vperm.xlu1 %5585, %v5996_v45   ;;  %2204 = vperm.xlu0 %5584, %v6001_v47   ;;  %v6240_v47 = vrot.slane %v1305_v52, %v6221_v50  ;;  %v6271_v45 = vmax.f32 %v5981_v39, %v5993_v44 }
  0x93   : > { %2219 = vperm.xlu1 %5585, %v6012_v54   ;;  %2214 = vperm.xlu0 %5584, %v6015_v55   ;;  %v2412_v55 = vmax.f32 %v6065_v14, %v6060_v12 }
  0x97   : > { %2189 = vperm.xlu1 %5585, %v5993_v44   ;;  %2184 = vperm.xlu0 %5584, %v5981_v39  }
  0x9b   : > { %2229 = vperm.xlu1 %5585, %v6024_v60   ;;  %2224 = vperm.xlu0 %5584, %v6027_v61   ;;  %v2406_v61 = vmax.f32 %v5978_v38, %v5984_v40  ;;  %v6264_v38 = vmax.f32 %v2410_v57, %v6024_v60  ;;  %v6267_v40 = vmax.f32 %v2409_v63, %v6012_v54 }
  0x9c   : > { %v2417_v54 = vmax.f32 %v6135_v59, %v6132_v58 }
  0x9d   : > { %v6287_v39 = vmax.f32 %v2406_v61, %v5993_v44  ;;  %v2419_v44 = vmax.f32 %v6159_v15, %v6156_v13  ;;  %v3456_v61 = vmax.f32 %v6267_v40, %v6264_v38 }
  0x9f   : > { %2239 = vperm.xlu1 %5585, %v6030_v62   ;;  %2234 = vperm.xlu0 %5584, %v6034_v0   ;;  %v2411_v0 = vmax.f32 %v6053_v8, %v6048_v6  ;;  %v6325_v46 = vmax.f32 %v2419_v44, %v6144_v4 }
  0xa1   : > { %v6284_v60 = vmax.f32 %v2411_v0, %v6030_v62  ;;  %7536 = vst [vmem:[#allocation14_spill] sm:$0xff] %v6325_v46 }
  0xa3   : > { %2249 = vperm.xlu1 %5585, %v6048_v6   ;;  %2244 = vperm.xlu0 %5584, %v6053_v8   ;;  %v2415_v8 = vmax.f32 %v6107_v33, %v6102_v31 }
  0xa5   : > { %v6301_v62 = vmax.f32 %v2415_v8, %v6090_v25 }
  0xa7   : > { %2259 = vperm.xlu1 %5585, %v6060_v12   ;;  %2254 = vperm.xlu0 %5584, %v6065_v14   ;;  %v2413_v14 = vmax.f32 %v6077_v20, %v6074_v19  ;;  %7533 = vst [vmem:[#allocation11_spill] sm:$0xff] %v6301_v62 }
  0xab   : > { %2269 = vperm.xlu1 %5585, %v6074_v19   ;;  %2264 = vperm.xlu0 %5584, %v6077_v20   ;;  %v2418_v20 = vmax.f32 %v6147_v5, %v6144_v4 }
  0xaf   : > { %2279 = vperm.xlu1 %5585, %v6090_v25   ;;  %2274 = vperm.xlu0 %5584, %v6094_v27  }
  0xb3   : > { %2289 = vperm.xlu1 %5585, %v6102_v31   ;;  %2284 = vperm.xlu0 %5584, %v6107_v33   ;;  %v6279_v33 = vmax.f32 %v2412_v55, %v6048_v6  ;;  %v6295_v6 = vmax.f32 %v2413_v14, %v6060_v12  ;;  %v6310_v12 = vmax.f32 %v2418_v20, %v6132_v58 }
  0xb5   : > { %7534 = vst [vmem:[#allocation12_spill] sm:$0xff] %v6310_v12  ;;  %v3457_v0 = vmax.f32 %v6284_v60, %v6279_v33 }
  0xb7   : > { %2299 = vperm.xlu1 %5585, %v6114_v43   ;;  %2294 = vperm.xlu0 %5584, %v6119_v48  }
  0xbb   : > { %2309 = vperm.xlu1 %5585, %v6132_v58   ;;  %2304 = vperm.xlu0 %5584, %v6135_v59  }
  0xbf   : > { %2319 = vperm.xlu1 %5585, %v6144_v4   ;;  %2314 = vperm.xlu0 %5584, %v6147_v5   ;;  %v6290_v5 = vmax.f32 %v2414_v7, %v6074_v19 }
  0xc1   : > { %7531 = vst [vmem:[#allocation9_spill] sm:$0xff] %v6290_v5 }
  0xc3   : > { %2329 = vperm.xlu1 %5585, %v6156_v13   ;;  %2324 = vperm.xlu0 %5584, %v6159_v15   ;;  %v6316_v15 = vmax.f32 %v2417_v54, %v6114_v43 }
  0xc6   : > { %v1082_v9 = vpop.permute.xlu1 %1081  ;;  %v1072_v10 = vpop.permute.xlu0 %1071 }
  0xc7   : > { %2339 = vperm.xlu1 %5585, %v6168_v23   ;;  %v1233_v27 = vmul.f32 %v6234_v1, %v1072_v10  ;;  %v1271_v48 = vmul.f32 %v6237_v2, %v1072_v10  ;;  %2334 = vperm.xlu0 %5584, %v6171_v24   ;;  %v1273_v19 = vmul.f32 %v6237_v2, %v1082_v9 }
  0xc8   : > { %v1235_v28 = vmul.f32 %v6234_v1, %v1082_v9  ;;  %v1311_v58 = vmul.f32 %v6240_v47, %v1082_v9 }
  0xc9   : > { %v1341_v24 = vadd.f32 %v1271_v48, %v1233_v27 }
  0xca   : > { %v1087_v18 = vpop.permute.xlu1 %1086  ;;  %v1077_v22 = vpop.permute.xlu0 %1076 }
  0xcb   : > { %v1274_v59 = vmul.f32 %v6237_v2, %v1087_v18  ;;  %v1234_v23 = vmul.f32 %v6234_v1, %v1077_v22  ;;  %3360 = vperm.xlu1 %5585, %v6254_v11   ;;  %v1272_v31 = vmul.f32 %v6237_v2, %v1077_v22  ;;  %v1310_v25 = vmul.f32 %v6240_v47, %v1077_v22 }
  0xcc   : > { %3355 = vperm.xlu0 %5584, %v6245_v3   ;;  %v1312_v29 = vmul.f32 %v6240_v47, %v1087_v18  ;;  %v1236_v43 = vmul.f32 %v6234_v1, %v1087_v18 }
  0xcd   : > { %v1343_v30 = vadd.f32 %v1273_v19, %v1234_v23  ;;  %v1342_v34 = vadd.f32 %v1272_v31, %v1233_v27  ;;  %v1373_v36 = vadd.f32 %v1341_v24, %v1310_v25  ;;  %v1344_v49 = vadd.f32 %v1274_v59, %v1235_v28 }
  0xce   : > { %v1097_v41 = vpop.permute.xlu1 %1096  ;;  %v1092_v42 = vpop.permute.xlu0 %1091 }
  0xcf   : > { %v1375_v52 = vadd.f32 %v1343_v30, %v1312_v29  ;;  %v1276_v13 = vmul.f32 %v6237_v2, %v1097_v41  ;;  %3370 = vperm.xlu1 %5585, %v6264_v38   ;;  %v1374_v53 = vadd.f32 %v1342_v34, %v1311_v58  ;;  %v1237_v56 = vmul.f32 %v6234_v1, %v1092_v42 }
  0xd0   : > { %v1275_v57 = vmul.f32 %v6237_v2, %v1092_v42  ;;  %v1313_v4 = vmul.f32 %v6240_v47, %v1092_v42  ;;  %3365 = vperm.xlu0 %5584, %v6267_v40   ;;  %v1238_v63 = vmul.f32 %v6234_v1, %v1097_v41  ;;  %v1314_v55 = vmul.f32 %v6240_v47, %v1097_v41 }
  0xd1   : > { %v1411_v16 = vadd.f32 %v6331_v51, %v1373_v36  ;;  %v1412_v8 = vadd.f32 %v6331_v51, %v1374_v53  ;;  %v1413_v20 = vadd.f32 %v6331_v51, %v1375_v52  ;;  %v1346_v27 = vadd.f32 %v1276_v13, %v1237_v56 }
  0xd2   : > { %v1345_v7 = vadd.f32 %v1275_v57, %v1236_v43  ;;  %v1376_v9 = vadd.f32 %v1344_v49, %v1313_v4  ;;  %v1107_v10 = vpop.permute.xlu1 %1106  ;;  %v1102_v14 = vpop.permute.xlu0 %1101  ;;  %v6371_v57 = vmax.f32 %v3457_v0, %v6264_v38 }
  0xd3   : > { %v1278_v48 = vmul.f32 %v6237_v2, %v1107_v10  ;;  %v1239_v54 = vmul.f32 %v6234_v1, %v1102_v14  ;;  %3380 = vperm.xlu1 %5585, %v6279_v33   ;;  %v1277_v22 = vmul.f32 %v6237_v2, %v1102_v14  ;;  %v1315_v44 = vmul.f32 %v6240_v47, %v1102_v14 }
  0xd4   : > { %v1377_v17 = vadd.f32 %v1345_v7, %v1314_v55  ;;  %v1414_v18 = vadd.f32 %v6331_v51, %v1376_v9  ;;  %3375 = vperm.xlu0 %5584, %v6284_v60   ;;  %v1240_v19 = vmul.f32 %v6234_v1, %v1107_v10  ;;  %v1316_v59 = vmul.f32 %v6240_v47, %v1107_v10 }
  0xd5   : > { %v1348_v23 = vadd.f32 %v1278_v48, %v1239_v54  ;;  %v1444_v24 = vmax.f32 %v1412_v8, 0.0  ;;  %v1347_v25 = vadd.f32 %v1277_v22, %v1238_v63  ;;  %v1378_v28 = vadd.f32 %v1346_v27, %v1315_v44 }
  0xd6   : > { %v1446_v31 = vmax.f32 %v1414_v18, 0.0  ;;  %v1117_v29 = vpop.permute.xlu1 %1116  ;;  %v1112_v30 = vpop.permute.xlu0 %1111  ;;  %v1443_v58 = vmax.f32 %v1411_v16, 0.0  ;;  %v1415_v34 = vadd.f32 %v6331_v51, %v1377_v17  ;;  %v1445_v60 = vmax.f32 %v1413_v20, 0.0 }
  0xd7   : > { %v1280_v36 = vmul.f32 %v6237_v2, %v1117_v29  ;;  %v1241_v41 = vmul.f32 %v6234_v1, %v1112_v30  ;;  %3350 = vperm.xlu1 %5585, %v6287_v39   ;;  %v1379_v42 = vadd.f32 %v1347_v25, %v1316_v59  ;;  %v1416_v43 = vadd.f32 %v6331_v51, %v1378_v28 }
  0xd8   : > { %v1279_v49 = vmul.f32 %v6237_v2, %v1112_v30  ;;  %v1317_v52 = vmul.f32 %v6240_v47, %v1112_v30  ;;  %3345 = vperm.xlu0 %5584, %v6271_v45   ;;  %v1242_v13 = vmul.f32 %v6234_v1, %v1117_v29  ;;  %v6366_v53 = vpack.c.bf16 %v1444_v24, %v1443_v58 }
  0xd9   : > { %v6368_v56 = vpack.c.bf16 %v1446_v31, %v1445_v60  ;;  %v1448_v4 = vmax.f32 %v1416_v43, 0.0  ;;  %v1318_v63 = vmul.f32 %v6240_v47, %v1117_v29  ;;  %v1417_v14 = vadd.f32 %v6331_v51, %v1379_v42 }
  0xda   : > { %v1349_v55 = vadd.f32 %v1279_v49, %v1240_v19  ;;  %v1380_v7 = vadd.f32 %v1348_v23, %v1317_v52  ;;  %v1127_v9 = vpop.permute.xlu1 %1126  ;;  %v1122_v10 = vpop.permute.xlu0 %1121  ;;  %v1350_v16 = vadd.f32 %v1280_v36, %v1241_v41  ;;  %5246 = vmatprep.mubr.msk.bf16.mxu0 %vm1500_vm0, %v6366_v53  ;;  %5280 = vmatprep.mubr.msk.bf16.mxu1 %vm1500_vm0, %v6366_v53  ;;  %v1447_v0 = vmax.f32 %v1415_v34, 0.0 }
  0xdb   : > { %v1282_v8 = vmul.f32 %v6237_v2, %v1127_v9  ;;  %5247 = vmatmul.mubr.msk.bf16.vlgmr.msra.gmra.mxu0 %vm1500_vm0, %v6368_v56  ;;  %5281 = vmatmul.mubr.msk.bf16.vlgmr.msra.gmra.mxu1 %vm1500_vm0, %v6368_v56  ;;  %v1243_v48 = vmul.f32 %v6234_v1, %v1122_v10  ;;  %v1281_v54 = vmul.f32 %v6237_v2, %v1122_v10  ;;  %v1449_v28 = vmax.f32 %v1417_v14, 0.0 }
  0xdc   : > { %v1381_v20 = vadd.f32 %v1349_v55, %v1318_v63  ;;  %v1418_v27 = vadd.f32 %v6331_v51, %v1380_v7  ;;  %5313 = vmatpush3.bf16.msra.mxu0 %v6082_v21  ;;  %v1319_v17 = vmul.f32 %v6240_v47, %v1122_v10  ;;  %3390 = vperm.xlu1 %5585, %v6290_v5  }
  0xdd   : > { %v6390_v18 = vpack.c.bf16 %v1448_v4, %v1447_v0  ;;  %v1244_v44 = vmul.f32 %v6234_v1, %v1127_v9  ;;  %v1320_v19 = vmul.f32 %v6240_v47, %v1127_v9  ;;  %3385 = vperm.xlu0 %5584, %v6295_v6   ;;  %v3455_v21 = vmax.f32 %v6245_v3, %v6254_v11 }
  0xde   : > { %v1450_v22 = vmax.f32 %v1418_v27, 0.0  ;;  %v1137_v59 = vpop.permute.xlu1 %1136  ;;  %v1132_v23 = vpop.permute.xlu0 %1131  ;;  %v1419_v24 = vadd.f32 %v6331_v51, %v1381_v20  ;;  %v1351_v31 = vadd.f32 %v1281_v54, %v1242_v13  ;;  %v1382_v25 = vadd.f32 %v1350_v16, %v1319_v17 }
  0xdf   : > { %5250 = vmatprep.mubr.msk.bf16.mxu0 %vm1500_vm0, %v6390_v18  ;;  %5284 = vmatprep.mubr.msk.bf16.mxu1 %vm1500_vm0, %v6390_v18  ;;  %v1352_v29 = vadd.f32 %v1282_v8, %v1243_v48  ;;  %v1284_v30 = vmul.f32 %v6237_v2, %v1137_v59  ;;  %v1245_v58 = vmul.f32 %v6234_v1, %v1132_v23 }
  0xe0   : > { %v1283_v34 = vmul.f32 %v6237_v2, %v1132_v23  ;;  %v1383_v36 = vadd.f32 %v1351_v31, %v1320_v19  ;;  %v1420_v3 = vadd.f32 %v6331_v51, %v1382_v25  ;;  %v1321_v41 = vmul.f32 %v6240_v47, %v1132_v23  ;;  %3400 = vperm.xlu1 %5585, %v6298_v26  }
  0xe1   : > { %v6408_v60 = vpack.c.bf16 %v1450_v22, %v1449_v28  ;;  %v1322_v42 = vmul.f32 %v6240_v47, %v1137_v59  ;;  %3395 = vperm.xlu0 %5584, %v6301_v62   ;;  %v6416_v13 = vmax.f32 %v3456_v61, %v6254_v11  ;;  %v3458_v4 = vmax.f32 %v6295_v6, %v6290_v5 }
  0xe2   : > { %v1353_v43 = vadd.f32 %v1283_v34, %v1244_v44  ;;  %v1147_v49 = vpop.permute.xlu1 %1146  ;;  %v1142_v52 = vpop.permute.xlu0 %1141  ;;  %v1452_v63 = vmax.f32 %v1420_v3, 0.0  ;;  %v1384_v55 = vadd.f32 %v1352_v29, %v1321_v41  ;;  %v6421_v7 = vmax.f32 %v3455_v21, %v6287_v39 }
  0xe3   : > { %v3454_v9 = vmax.f32 %v6271_v45, %v6287_v39  ;;  %v1421_v10 = vadd.f32 %v6331_v51, %v1383_v36  ;;  %v1246_v14 = vmul.f32 %v6234_v1, %v1137_v59  ;;  %5251 = vmatmul.mubr.msk.bf16.gmra.mxu0 %vm1500_vm0, %v6408_v60  ;;  %5285 = vmatmul.mubr.msk.bf16.gmra.mxu1 %vm1500_vm0, %v6408_v60  ;;  %v1451_v11 = vmax.f32 %v1419_v24, 0.0 }
  0xe4   : > { %v1385_v16 = vadd.f32 %v1353_v43, %v1322_v42  ;;  %v1354_v38 = vadd.f32 %v1284_v30, %v1245_v58  ;;  %v1422_v40 = vadd.f32 %v6331_v51, %v1384_v55  ;;  %v1285_v6 = vmul.f32 %v6237_v2, %v1142_v52  ;;  %3410 = vperm.xlu1 %5585, %v6310_v12  }
  0xe5   : > { %v1323_v61 = vmul.f32 %v6240_v47, %v1142_v52  ;;  %v1286_v8 = vmul.f32 %v6237_v2, %v1147_v49  ;;  %v1247_v0 = vmul.f32 %v6234_v1, %v1142_v52  ;;  %3405 = vperm.xlu0 %5584, %v6316_v15   ;;  %v6438_v20 = vpack.c.bf16 %v1452_v63, %v1451_v11 }
  0xe6   : > { %v1157_v27 = vpop.permute.xlu1 %1156  ;;  %v1152_v48 = vpop.permute.xlu0 %1151  ;;  %v6441_v54 = vmax.f32 %v3458_v4, %v6279_v33  ;;  %v1454_v17 = vmax.f32 %v1422_v40, 0.0  ;;  %v1324_v22 = vmul.f32 %v6240_v47, %v1147_v49  ;;  %v1355_v44 = vadd.f32 %v1285_v6, %v1246_v14 }
  0xe7   : > { %v1386_v19 = vadd.f32 %v1354_v38, %v1323_v61  ;;  %v1423_v59 = vadd.f32 %v6331_v51, %v1385_v16  ;;  %v1248_v23 = vmul.f32 %v6234_v1, %v1147_v49  ;;  %5254 = vmatprep.mubr.msk.bf16.mxu0 %vm1500_vm0, %v6438_v20  ;;  %5288 = vmatprep.mubr.msk.bf16.mxu1 %vm1500_vm0, %v6438_v20  ;;  %v1453_v24 = vmax.f32 %v1421_v10, 0.0 }
  0xe8   : > { %v1288_v21 = vmul.f32 %v6237_v2, %v1157_v27  ;;  %v1387_v33 = vadd.f32 %v1355_v44, %v1324_v22  ;;  %v1249_v25 = vmul.f32 %v6234_v1, %v1152_v48  ;;  %v1287_v28 = vmul.f32 %v6237_v2, %v1152_v48  ;;  %3420 = vperm.xlu1 %5585, %v6321_v32  }
  0xe9   : > { %v1424_v31 = vadd.f32 %v6331_v51, %v1386_v19  ;;  %v1356_v29 = vadd.f32 %v1286_v8, %v1247_v0  ;;  %v1325_v30 = vmul.f32 %v6240_v47, %v1152_v48  ;;  %3415 = vperm.xlu0 %5584, %v6325_v46   ;;  %v6457_v58 = vpack.c.bf16 %v1454_v17, %v1453_v24 }
  0xea   : > { %v1167_v34 = vpop.permute.xlu1 %1166  ;;  %v1162_v36 = vpop.permute.xlu0 %1161  ;;  %v3460_v3 = vmax.f32 %v6316_v15, %v6310_v12  ;;  %v1425_v41 = vadd.f32 %v6331_v51, %v1387_v33  ;;  %v1326_v43 = vmul.f32 %v6240_v47, %v1157_v27  ;;  %v1357_v49 = vadd.f32 %v1287_v28, %v1248_v23 }
  0xeb   : > { %v1456_v42 = vmax.f32 %v1424_v31, 0.0  ;;  %v1250_v52 = vmul.f32 %v6234_v1, %v1157_v27  ;;  %v1388_v4 = vadd.f32 %v1356_v29, %v1325_v30  ;;  %5255 = vmatmul.mubr.msk.bf16.gmra.mxu0 %vm1500_vm0, %v6457_v58  ;;  %5289 = vmatmul.mubr.msk.bf16.gmra.mxu1 %vm1500_vm0, %v6457_v58  ;;  %v1290_v63 = vmul.f32 %v6237_v2, %v1167_v34 }
  0xec   : > { %v1455_v55 = vmax.f32 %v1423_v59, 0.0  ;;  %v1358_v10 = vadd.f32 %v1288_v21, %v1249_v25  ;;  %v1389_v15 = vadd.f32 %v1357_v49, %v1326_v43  ;;  %v1251_v14 = vmul.f32 %v6234_v1, %v1162_v36  ;;  %4161 = vperm.xlu1 %5585, %v6371_v57  }
  0xed   : > { %v1289_v16 = vmul.f32 %v6237_v2, %v1162_v36  ;;  %v1426_v11 = vadd.f32 %v6331_v51, %v1388_v4  ;;  %v1252_v38 = vmul.f32 %v6234_v1, %v1167_v34  ;;  %v1327_v40 = vmul.f32 %v6240_v47, %v1162_v36  ;;  %4156 = vperm.xlu0 %5584, %v6416_v13  }
  0xee   : > { %v6476_v6 = vpack.c.bf16 %v1456_v42, %v1455_v55  ;;  %v1177_v61 = vpop.permute.xlu1 %1176  ;;  %v1172_v8 = vpop.permute.xlu0 %1171  ;;  %v1427_v0 = vadd.f32 %v6331_v51, %v1389_v15  ;;  %v1328_v27 = vmul.f32 %v6240_v47, %v1167_v34  ;;  %v1457_v17 = vmax.f32 %v1425_v41, 0.0 }
  0xef   : > { %v1359_v48 = vadd.f32 %v1289_v16, %v1250_v52  ;;  %v1458_v22 = vmax.f32 %v1426_v11, 0.0  ;;  %v1360_v57 = vadd.f32 %v1290_v63, %v1251_v14  ;;  %v1390_v44 = vadd.f32 %v1358_v10, %v1327_v40 }
  0xf0   : > { %5258 = vmatprep.mubr.msk.bf16.mxu0 %vm1500_vm0, %v6476_v6  ;;  %5292 = vmatprep.mubr.msk.bf16.mxu1 %vm1500_vm0, %v6476_v6  ;;  %v1292_v13 = vmul.f32 %v6237_v2, %v1177_v61  ;;  %v1253_v59 = vmul.f32 %v6234_v1, %v1172_v8  ;;  %v1291_v23 = vmul.f32 %v6237_v2, %v1172_v8  ;;  %v1459_v45 = vmax.f32 %v1427_v0, 0.0 }
  0xf1   : > { %v1391_v19 = vadd.f32 %v1359_v48, %v1328_v27  ;;  %v1329_v21 = vmul.f32 %v6240_v47, %v1172_v8  ;;  %4151 = vperm.xlu1 %5585, %v6421_v7   ;;  %v1428_v24 = vadd.f32 %v6331_v51, %v1390_v44  ;;  %4146 = vperm.xlu0 %5584, %v3454_v9  }
  0xf2   : > { %v6493_v33 = vpack.c.bf16 %v1458_v22, %v1457_v17  ;;  %v1187_v31 = vpop.permute.xlu1 %1186  ;;  %v1182_v25 = vpop.permute.xlu0 %1181  ;;  %v1330_v28 = vmul.f32 %v6240_v47, %v1177_v61  ;;  %v1361_v29 = vadd.f32 %v1291_v23, %v1252_v38  ;;  %v3467_v34 = vmax.f32 %v3460_v3, %v6298_v26 }
  0xf3   : > { %v1392_v30 = vadd.f32 %v1360_v57, %v1329_v21  ;;  %v1429_v36 = vadd.f32 %v6331_v51, %v1391_v19  ;;  %v1460_v41 = vmax.f32 %v1428_v24, 0.0  ;;  %v1254_v7 = vmul.f32 %v6234_v1, %v1177_v61 }
  0xf4   : > { %5259 = vmatmul.mubr.msk.bf16.gmra.mxu0 %vm1500_vm0, %v6493_v33  ;;  %5293 = vmatmul.mubr.msk.bf16.gmra.mxu1 %vm1500_vm0, %v6493_v33  ;;  %v1362_v39 = vadd.f32 %v1292_v13, %v1253_v59  ;;  %v1393_v9 = vadd.f32 %v1361_v29, %v1330_v28  ;;  %v1293_v43 = vmul.f32 %v6237_v2, %v1182_v25 }
  0xf5   : > { %v1430_v42 = vadd.f32 %v6331_v51, %v1392_v30  ;;  %4166 = vperm.xlu1 %5585, %v6441_v54   ;;  %v1294_v3 = vmul.f32 %v6237_v2, %v1187_v31  ;;  %v1255_v49 = vmul.f32 %v6234_v1, %v1182_v25  ;;  %v1331_v52 = vmul.f32 %v6240_v47, %v1182_v25 }
  0xf6   : > { %v6509_v4 = vpack.c.bf16 %v1460_v41, %v1459_v45  ;;  %v1197_v63 = vpop.permute.xlu1 %1196  ;;  %v1192_v55 = vpop.permute.xlu0 %1191  ;;  %v1332_v15 = vmul.f32 %v6240_v47, %v1187_v31  ;;  %v1363_v14 = vadd.f32 %v1293_v43, %v1254_v7  ;;  %v1431_v16 = vadd.f32 %v6331_v51, %v1393_v9 }
  0xf7   : > { %v1462_v10 = vmax.f32 %v1430_v42, 0.0  ;;  %v1256_v11 = vmul.f32 %v6234_v1, %v1187_v31  ;;  %v1394_v38 = vadd.f32 %v1362_v39, %v1331_v52  ;;  %v1461_v54 = vmax.f32 %v1429_v36, 0.0 }
  0xf8   : > { %5262 = vmatprep.mubr.msk.bf16.mxu0 %vm1500_vm0, %v6509_v4  ;;  %5296 = vmatprep.mubr.msk.bf16.mxu1 %vm1500_vm0, %v6509_v4  ;;  %v1395_v40 = vadd.f32 %v1363_v14, %v1332_v15  ;;  %v1296_v61 = vmul.f32 %v6237_v2, %v1197_v63  ;;  %v1257_v8 = vmul.f32 %v6234_v1, %v1192_v55  ;;  %v1463_v31 = vmax.f32 %v1431_v16, 0.0 }
  0xf9   : > { %v1295_v0 = vmul.f32 %v6237_v2, %v1192_v55  ;;  %4176 = vperm.xlu1 %5585, %v3467_v34   ;;  %v1364_v27 = vadd.f32 %v1294_v3, %v1255_v49  ;;  %v1432_v48 = vadd.f32 %v6331_v51, %v1394_v38  ;;  %v1333_v17 = vmul.f32 %v6240_v47, %v1192_v55 }
  0xfa   : > { %v6523_v22 = vpack.c.bf16 %v1462_v10, %v1461_v54  ;;  %v1207_v57 = vpop.permute.xlu1 %1206  ;;  %v1202_v44 = vpop.permute.xlu0 %1201  ;;  %v1258_v13 = vmul.f32 %v6234_v1, %v1197_v63  ;;  %v1334_v19 = vmul.f32 %v6240_v47, %v1197_v63  ;;  %v1433_v23 = vadd.f32 %v6331_v51, %v1395_v40 }
  0xfb   : > { %v1365_v59 = vadd.f32 %v1295_v0, %v1256_v11  ;;  %v1464_v21 = vmax.f32 %v1432_v48, 0.0  ;;  %v1396_v24 = vadd.f32 %v1364_v27, %v1333_v17  ;;  %v1366_v25 = vadd.f32 %v1296_v61, %v1257_v8 }
  0xfc   : > { %5263 = vmatmul.mubr.msk.bf16.gmra.mxu0 %vm1500_vm0, %v6523_v22  ;;  %5297 = vmatmul.mubr.msk.bf16.gmra.mxu1 %vm1500_vm0, %v6523_v22  ;;  %v1297_v29 = vmul.f32 %v6237_v2, %v1202_v44  ;;  %v1335_v30 = vmul.f32 %v6240_v47, %v1202_v44  ;;  %v1298_v36 = vmul.f32 %v6237_v2, %v1207_v57  ;;  %v1465_v55 = vmax.f32 %v1433_v23, 0.0 }
  0xfd   : > { %v1397_v28 = vadd.f32 %v1365_v59, %v1334_v19  ;;  %v1434_v34 = vadd.f32 %v6331_v51, %v1396_v24  ;;  %v1259_v41 = vmul.f32 %v6234_v1, %v1202_v44  ;;  %v6537_v7 = vpack.c.bf16 %v1464_v21, %v1463_v31 }
  0xfe   : > { %v1217_v45 = vpop.permute.xlu1 %1216  ;;  %v1212_v39 = vpop.permute.xlu0 %1211  ;;  %v1260_v9 = vmul.f32 %v6234_v1, %v1207_v57  ;;  %v1336_v42 = vmul.f32 %v6240_v47, %v1207_v57  ;;  %v1367_v43 = vadd.f32 %v1297_v29, %v1258_v13  ;;  %v1398_v3 = vadd.f32 %v1366_v25, %v1335_v30 }
  0xff   : > { %v1435_v49 = vadd.f32 %v6331_v51, %v1397_v28  ;;  %v1466_v52 = vmax.f32 %v1434_v34, 0.0  ;;  %5266 = vmatprep.mubr.msk.bf16.mxu0 %vm1500_vm0, %v6537_v7  ;;  %5300 = vmatprep.mubr.msk.bf16.mxu1 %vm1500_vm0, %v6537_v7  ;;  %v1300_v63 = vmul.f32 %v6237_v2, %v1217_v45  ;;  %v1261_v14 = vmul.f32 %v6234_v1, %v1212_v39 }
 0x100   : > { %v1399_v10 = vadd.f32 %v1367_v43, %v1336_v42  ;;  %v1436_v15 = vadd.f32 %v6331_v51, %v1398_v3  ;;  %v1299_v16 = vmul.f32 %v6237_v2, %v1212_v39  ;;  %v1368_v11 = vadd.f32 %v1298_v36, %v1259_v41 }
 0x101   : > { %v1262_v38 = vmul.f32 %v6234_v1, %v1217_v45  ;;  %v1337_v54 = vmul.f32 %v6240_v47, %v1212_v39  ;;  %v1489_v40 = vpack.c.bf16 %v1466_v52, %v1465_v55  ;;  %v1338_v48 = vmul.f32 %v6240_v47, %v1217_v45 }
 0x102   : > { %v1227_v61 = vpop.permute.xlu1 %1226  ;;  %v1222_v8 = vpop.permute.xlu0 %1221  ;;  %v1437_v0 = vadd.f32 %v6331_v51, %v1399_v10  ;;  %v1468_v27 = vmax.f32 %v1436_v15, 0.0  ;;  %v1369_v17 = vadd.f32 %v1299_v16, %v1260_v9  ;;  %v1370_v57 = vadd.f32 %v1300_v63, %v1261_v14 }
 0x103   : > { %v1400_v44 = vadd.f32 %v1368_v11, %v1337_v54  ;;  %v1302_v13 = vmul.f32 %v6237_v2, %v1227_v61  ;;  %v1467_v19 = vmax.f32 %v1435_v49, 0.0  ;;  %v1263_v23 = vmul.f32 %v6234_v1, %v1222_v8 }
 0x104   : > { %5267 = vmatmul.mubr.msk.bf16.gmra.mxu0 %vm1500_vm0, %v1489_v40  ;;  %5301 = vmatmul.mubr.msk.bf16.gmra.mxu1 %vm1500_vm0, %v1489_v40  ;;  %v1401_v59 = vadd.f32 %v1369_v17, %v1338_v48  ;;  %v1301_v21 = vmul.f32 %v6237_v2, %v1222_v8  ;;  %v1339_v24 = vmul.f32 %v6240_v47, %v1222_v8  ;;  %v1469_v1 = vmax.f32 %v1437_v0, 0.0 }
 0x105   : > { %v1438_v31 = vadd.f32 %v6331_v51, %v1400_v44  ;;  %v1340_v25 = vmul.f32 %v6240_v47, %v1227_v61  ;;  %v1490_v28 = vpack.c.bf16 %v1468_v27, %v1467_v19  ;;  %v1372_v34 = vadd.f32 %v1302_v13, %v1263_v23 }
 0x106   : > { %v1439_v29 = vadd.f32 %v6331_v51, %v1401_v59  ;;  %v1371_v30 = vadd.f32 %v1301_v21, %v1262_v38  ;;  %v1402_v36 = vadd.f32 %v1370_v57, %v1339_v24 }
 0x107   : > { %v1470_v41 = vmax.f32 %v1438_v31, 0.0  ;;  %5270 = vmatprep.mubr.msk.bf16.mxu0 %vm1500_vm0, %v1490_v28  ;;  %5304 = vmatprep.mubr.msk.bf16.mxu1 %vm1500_vm0, %v1490_v28  ;;  %v1404_v2 = vadd.f32 %v1372_v34, %v1340_v25 }
 0x108   : > { %v1403_v45 = vadd.f32 %v1371_v30, %v1340_v25  ;;  %v1440_v39 = vadd.f32 %v6331_v51, %v1402_v36  ;;  %v1471_v3 = vmax.f32 %v1439_v29, 0.0  ;;  %v6671_v25 = vpop.permute.xlu0 %2194  ;;  %v6677_v30 = vpop.permute.xlu1 %2199 }
 0x109   : > { %v1491_v9 = vpack.c.bf16 %v1470_v41, %v1469_v1  ;;  %v1442_v47 = vadd.f32 %v6331_v51, %v1404_v2 }
 0x10a   : > { %v1441_v42 = vadd.f32 %v6331_v51, %v1403_v45  ;;  %v1472_v43 = vmax.f32 %v1440_v39, 0.0  ;;  %v5589_v51 = vld [vmem:[%s7538_s5] sm:$0xff]  }
 0x10b   : > { %v1474_v63 = vmax.f32 %v1442_v47, 0.0  ;;  %5346 = vmatprep.subr.bf16.mxu1 %v5589_v51 }
 0x10c   : > { %5271 = vmatmul.mubr.msk.bf16.gmra.mxu0 %vm1500_vm0, %v1491_v9  ;;  %5305 = vmatmul.mubr.msk.bf16.gmra.mxu1 %vm1500_vm0, %v1491_v9  ;;  %v1492_v49 = vpack.c.bf16 %v1472_v43, %v1471_v3  ;;  %v1473_v52 = vmax.f32 %v1441_v42, 0.0  ;;  %v6685_v1 = vpop.permute.xlu0 %2204  ;;  %v6689_v2 = vpop.permute.xlu1 %2209 }
 0x10d   : > { %5347 = vmatpush3.bf16.msra.mxu1 %v5589_v51 }
 0x10e   : > { %5274 = vmatprep.mubr.msk.bf16.mxu0 %vm1500_vm0, %v1492_v49  ;;  %5308 = vmatprep.mubr.msk.bf16.mxu1 %vm1500_vm0, %v1492_v49  ;;  %v1493_v55 = vpack.c.bf16 %v1474_v63, %v1473_v52 }
 0x110   : > { %v6697_v47 = vpop.permute.xlu0 %2214 }
 0x114   : > { %5275 = vmatmul.mubr.msk.bf16.gmra.mxu0 %vm1500_vm0, %v1493_v55  ;;  %5309 = vmatmul.mubr.msk.bf16.gmra.mxu1 %vm1500_vm0, %v1493_v55  ;;  %v2185_v51 = vpop.permute.xlu0 %2184 }
 0x115   : > { %5314 = vmatprep.mubr.msk.bf16.mxu0 %vm1500_vm0, %v6366_v53  ;;  %v5590_v53 = vld [vmem:[%s7538_s5 + $0x10] sm:$0xff]  }
 0x116   : > { %5382 = vmatprep.subr.bf16.mxu0 %v5590_v53 }
 0x118   : > { %v6717_v5 = vpop.permute.xlu0 %2224 }
 0x11c   : > { %5315 = vmatmul.mubr.msk.bf16.vlgmr.msra.gmra.mxu0 %vm1500_vm0, %v6368_v56 }
 0x11d   : > { %5318 = vmatprep.mubr.msk.bf16.mxu0 %vm1500_vm0, %v6390_v18  ;;  %5383 = vmatpush3.bf16.msra.mxu0 %v5590_v53 }
 0x124   : > { %5319 = vmatmul.mubr.msk.bf16.gmra.mxu0 %vm1500_vm0, %v6408_v60 }
 0x125   : > { %5322 = vmatprep.mubr.msk.bf16.mxu0 %vm1500_vm0, %v6438_v20 }
 0x12c   : > { %5323 = vmatmul.mubr.msk.bf16.gmra.mxu0 %vm1500_vm0, %v6457_v58  ;;  %v6618_v58 = vld [vmem:[%s7538_s5 + $0x8] sm:$0xff]  }
 0x12d   : > { %5326 = vmatprep.mubr.msk.bf16.mxu0 %vm1500_vm0, %v6476_v6  ;;  %5364 = vmatprep.subr.bf16.mxu1 %v6618_v58 }
 0x134   : > { %5327 = vmatmul.mubr.msk.bf16.gmra.mxu0 %vm1500_vm0, %v6493_v33 }
 0x135   : > { %5330 = vmatprep.mubr.msk.bf16.mxu0 %vm1500_vm0, %v6509_v4 }
 0x13c   : > { %5331 = vmatmul.mubr.msk.bf16.gmra.mxu0 %vm1500_vm0, %v6523_v22 }
 0x13d   : > { %5334 = vmatprep.mubr.msk.bf16.mxu0 %vm1500_vm0, %v6537_v7 }
 0x144   : > { %5335 = vmatmul.mubr.msk.bf16.gmra.mxu0 %vm1500_vm0, %v1489_v40 }
 0x145   : > { %5338 = vmatprep.mubr.msk.bf16.mxu0 %vm1500_vm0, %v1490_v28 }
 0x14c   : > { %5339 = vmatmul.mubr.msk.bf16.gmra.mxu0 %vm1500_vm0, %v1491_v9 }
 0x14d   : > { %5342 = vmatprep.mubr.msk.bf16.mxu0 %vm1500_vm0, %v1492_v49  ;;  %v6703_v49 = vpop.permute.xlu1 %2219 }
 0x151   : > { %v2190_v35 = vpop.permute.xlu1 %2189 }
 0x154   : > { %5343 = vmatmul.mubr.msk.bf16.gmra.mxu0 %vm1500_vm0, %v1493_v55 }
 0x155   : > { %v6721_v37 = vpop.permute.xlu1 %2229 }
 0x19b   : > { %v6607_v56 = vpop.f32.mrf.mxu0  ;;  %v6609_v18 = vpop.f32.mrf.mxu1 }
 0x19d   : > { %v6611_v60 = vpop.f32.mrf.mxu0  ;;  %v6613_v20 = vpop.f32.mrf.mxu1 }
 0x19f   : > { %v6620_v6 = vpop.f32.mrf.mxu0  ;;  %v6622_v33 = vpop.f32.mrf.mxu1 }
 0x1a1   : > { %v1586_v4 = vpop.f32.mrf.mxu0  ;;  %v1755_v22 = vpop.f32.mrf.mxu1 }
 0x1a2   : > { %v2049_v50 = vadd.f32 %v1755_v22, %v6611_v60  ;;  %v6736_v22 = vpop.permute.xlu1 %2239 }
 0x1a3   : > { %v6625_v7 = vpop.f32.mrf.mxu0  ;;  %v6627_v10 = vpop.f32.mrf.mxu1 }
 0x1a5   : > { %v6629_v15 = vpop.f32.mrf.mxu0  ;;  %v6631_v14 = vpop.f32.mrf.mxu1 }
 0x1a7   : > { %v6633_v16 = vpop.f32.mrf.mxu0  ;;  %v6637_v38 = vpop.f32.mrf.mxu1 }
 0x1a9   : > { %v6635_v11 = vpop.f32.mrf.mxu0  ;;  %v1771_v61 = vpop.f32.mrf.mxu1 }
 0x1ab   : > { %v6639_v54 = vpop.f32.mrf.mxu0  ;;  %v6647_v27 = vpop.f32.mrf.mxu1 }
 0x1ad   : > { %v6641_v40 = vpop.f32.mrf.mxu0  ;;  %v6653_v57 = vpop.f32.mrf.mxu1 }
 0x1af   : > { %v6643_v8 = vpop.f32.mrf.mxu0  ;;  %v6659_v19 = vpop.f32.mrf.mxu1 }
 0x1b1   : > { %v6645_v0 = vpop.f32.mrf.mxu0  ;;  %v6665_v21 = vpop.f32.mrf.mxu1 }
 0x1b4   : > { %v6649_v48 = vpop.f32.mrf.mxu0  ;;  %v6673_v28 = vpop.f32.mrf.mxu1 }
 0x1b6   : > { %v6651_v17 = vpop.f32.mrf.mxu0  ;;  %v6681_v36 = vpop.f32.mrf.mxu1 }
 0x1b8   : > { %v6655_v44 = vpop.f32.mrf.mxu0  ;;  %v6691_v39 = vpop.f32.mrf.mxu1 }
 0x1ba   : > { %v6657_v13 = vpop.f32.mrf.mxu0  ;;  %v6699_v43 = vpop.f32.mrf.mxu1 }
 0x1bc   : > { %v6661_v59 = vpop.f32.mrf.mxu0  ;;  %v6707_v63 = vpop.f32.mrf.mxu1 }
 0x1bd   : > { %7539 = vst [vmem:[#allocation15_spill] sm:$0xff] %v6661_v59 }
 0x1be   : > { %v6663_v23 = vpop.f32.mrf.mxu0  ;;  %v6713_v12 = vpop.f32.mrf.mxu1 }
 0x1c0   : > { %v6667_v24 = vpop.f32.mrf.mxu0  ;;  %v6719_v62 = vpop.f32.mrf.mxu1 }
 0x1c1   : > { %7540 = vst [vmem:[#allocation16_spill] sm:$0xff] %v6667_v24  ;;  %7551 = vst [vmem:[#allocation27_spill] sm:$0xff] %v6719_v62  ;;  %v6752_v62 = vpop.permute.xlu1 %2249 }
 0x1c2   : > { %v6669_v31 = vpop.f32.mrf.mxu0 }
 0x1c4   : > { %v6675_v29 = vpop.f32.mrf.mxu0 }
 0x1c5   : > { %7541 = vst [vmem:[#allocation17_spill] sm:$0xff] %v6675_v29 }
 0x1c6   : > { %v6679_v34 = vpop.f32.mrf.mxu0 }
 0x1c8   : > { %v6683_v41 = vpop.f32.mrf.mxu0 }
 0x1c9   : > { %7542 = vst [vmem:[#allocation18_spill] sm:$0xff] %v6683_v41 }
 0x1ca   : > { %v6687_v45 = vpop.f32.mrf.mxu0 }
 0x1cb   : > { %7543 = vst [vmem:[#allocation19_spill] sm:$0xff] %v6687_v45 }
 0x1cc   : > { %v6693_v9 = vpop.f32.mrf.mxu0 }
 0x1cd   : > { %7544 = vst [vmem:[#allocation20_spill] sm:$0xff] %v6693_v9  ;;  %v6725_v9 = vpop.f32.mrf.mxu1 }
 0x1ce   : > { %v6695_v42 = vpop.f32.mrf.mxu0 }
 0x1cf   : > { %7545 = vst [vmem:[#allocation21_spill] sm:$0xff] %v6695_v42 }
 0x1d0   : > { %v6701_v3 = vpop.f32.mrf.mxu0 }
 0x1d1   : > { %7546 = vst [vmem:[#allocation22_spill] sm:$0xff] %v6701_v3 }
 0x1d2   : > { %v6705_v52 = vpop.f32.mrf.mxu0 }
 0x1d3   : > { %7547 = vst [vmem:[#allocation23_spill] sm:$0xff] %v6705_v52  ;;  %v6727_v52 = vpop.permute.xlu0 %2234 }
 0x1d4   : > { %v6709_v55 = vpop.f32.mrf.mxu0 }
 0x1d5   : > { %7548 = vst [vmem:[#allocation24_spill] sm:$0xff] %v6709_v55  ;;  %v2050_v55 = vadd.f32 %v6609_v18, %v1586_v4  ;;  %v2053_v18 = vadd.f32 %v1771_v61, %v6629_v15  ;;  %v6739_v4 = vpop.f32.mrf.mxu1 }
 0x1d6   : > { %v6711_v53 = vpop.f32.mrf.mxu0  ;;  %7553 = vst [vmem:[#allocation28_spill] sm:$0xff] %v6739_v4 }
 0x1d7   : > { %7549 = vst [vmem:[#allocation25_spill] sm:$0xff] %v6711_v53 }
 0x1d8   : > { %v5277_v46 = vpop.f32.mrf.mxu0 }
 0x1d9   : > { %v2048_v46 = vadd.f32 %v6613_v20, %v6611_v60  ;;  %v2051_v60 = vadd.f32 %v6622_v33, %v6607_v56 }
 0x1da   : > { %v6715_v32 = vpop.f32.mrf.mxu0 }
 0x1db   : > { %7550 = vst [vmem:[#allocation26_spill] sm:$0xff] %v6715_v32  ;;  %v6734_v32 = vld [vmem:[%s7552_s8] ss:$0 sm:$0xff]  ;;  %s7570_s8 = sld [smem:[#allocation39_spill]] }
 0x1dc   : > { %v5316_v26 = vpop.f32.mrf.mxu0 }
 0x1dd   : > { %v2081_v53 = vadd.f32 %v5316_v26, %v2049_v50 }
 0x1de   : > { %v1922_v3 = vpop.f32.mrf.mxu0 }
 0x1df   : > { %v2119_v50 = vadd.f32 %v6734_v32, %v2081_v53 }
 0x1e0   : > { %v5317_v41 = vpop.f32.mrf.mxu0 }
 0x1e1   : > { %v2082_v29 = vadd.f32 %v5317_v41, %v2050_v55  ;;  %v6746_v55 = vpop.permute.xlu0 %2244  ;;  %v2151_v53 = vmax.f32 %v2119_v50, 0.0 }
 0x1e2   : > { %v1924_v42 = vpop.f32.mrf.mxu0 }
 0x1e3   : > { %v2080_v3 = vadd.f32 %v2048_v46, %v1924_v42  ;;  %v2120_v20 = vadd.f32 %v6734_v32, %v2082_v29  ;;  %v2054_v42 = vadd.f32 %v6627_v10, %v6635_v11  ;;  %v6750_v46 = vpop.f32.mrf.mxu1  ;;  %v2057_v11 = vadd.f32 %v6665_v21, %v6641_v40 }
 0x1e4   : > { %v5320_v26 = vpop.f32.mrf.mxu0  ;;  %v2343_v50 = vadd.f32 %v2190_v35, %v2151_v53  ;;  %v6770_v35 = vpop.permute.xlu1 %2259 }
 0x1e5   : > { %v2118_v45 = vadd.f32 %v6734_v32, %v2080_v3  ;;  %v2085_v24 = vadd.f32 %v5320_v26, %v2053_v18  ;;  %v2152_v56 = vmax.f32 %v2120_v20, 0.0  ;;  %v2052_v3 = vadd.f32 %v6620_v6, %v6631_v14  ;;  %v6762_v20 = vpop.permute.xlu0 %2254 }
 0x1e6   : > { %v1937_v41 = vpop.f32.mrf.mxu0 }
 0x1e7   : > { %v2150_v15 = vmax.f32 %v2118_v45, 0.0  ;;  %v2083_v61 = vadd.f32 %v2051_v60, %v1937_v41  ;;  %v2123_v26 = vadd.f32 %v6734_v32, %v2085_v24  ;;  %v6760_v45 = vpop.f32.mrf.mxu1  ;;  %v2344_v6 = vadd.f32 %v6671_v25, %v2152_v56 }
 0x1e8   : > { %v5321_v4 = vpop.f32.mrf.mxu0 }
 0x1e9   : > { %v2121_v33 = vadd.f32 %v6734_v32, %v2083_v61  ;;  %v2086_v29 = vadd.f32 %v5321_v4, %v2054_v42  ;;  %v2342_v18 = vadd.f32 %v2185_v51, %v2150_v15  ;;  %v2055_v4 = vadd.f32 %v6637_v38, %v6625_v7  ;;  %v6777_v7 = vld [vmem:[%s7554_s3] ss:$0 sm:$0xff]  ;;  %v6781_v61 = vpop.f32.mrf.mxu1  ;;  %s7571_s3 = sld [smem:[#allocation38_spill]] }
 0x1ea   : > { %v1940_v59 = vpop.f32.mrf.mxu0  ;;  %v2155_v42 = vmax.f32 %v2123_v26, 0.0 }
 0x1eb   : > { %v2153_v10 = vmax.f32 %v2121_v33, 0.0  ;;  %v2084_v60 = vadd.f32 %v2052_v3, %v1940_v59  ;;  %v2124_v24 = vadd.f32 %v6734_v32, %v2086_v29  ;;  %v2374_v51 = vmax.f32 %v2342_v18, %v2343_v50 }
 0x1ec   : > { %v5324_v41 = vpop.f32.mrf.mxu0  ;;  %v2058_v59 = vadd.f32 %v6647_v27, %v6645_v0  ;;  %v2347_v27 = vadd.f32 %v6689_v2, %v2155_v42  ;;  %v2059_v2 = vadd.f32 %v6659_v19, %v6639_v54  ;;  %v6803_v42 = vpop.permute.xlu1 %2269 }
 0x1ed   : > { %v2345_v14 = vadd.f32 %v6677_v30, %v2153_v10  ;;  %v2122_v40 = vadd.f32 %v6734_v32, %v2084_v60  ;;  %v2089_v21 = vadd.f32 %v5324_v41, %v2057_v11  ;;  %v2056_v30 = vadd.f32 %v6633_v16, %v6653_v57  ;;  %v6788_v60 = vpop.permute.xlu0 %2264 }
 0x1ee   : > { %v1953_v15 = vpop.f32.mrf.mxu0  ;;  %v2156_v29 = vmax.f32 %v2124_v24, 0.0  ;;  %v2443_v0 = vmul.f32 %v6777_v7, %v2374_v51  ;;  %v2061_v16 = vadd.f32 %v6699_v43, %v6651_v17 }
 0x1ef   : > { %v2375_v38 = vmax.f32 %v2344_v6, %v2345_v14  ;;  %v2087_v25 = vadd.f32 %v2055_v4, %v1953_v15  ;;  %v2154_v53 = vmax.f32 %v2122_v40, 0.0  ;;  %v2127_v10 = vadd.f32 %v6734_v32, %v2089_v21 }
 0x1f0   : > { %v5325_v56 = vpop.f32.mrf.mxu0  ;;  %v2348_v17 = vadd.f32 %v6697_v47, %v2156_v29 }
 0x1f1   : > { %v2390_v33 = vmax.f32 %v2375_v38, %v2343_v50  ;;  %v2125_v3 = vadd.f32 %v6734_v32, %v2087_v25  ;;  %v2090_v18 = vadd.f32 %v5325_v56, %v2058_v59  ;;  %v2346_v26 = vadd.f32 %v6685_v1, %v2154_v53  ;;  %v6796_v50 = vld [vmem:[%s7555_s7] ss:$0 sm:$0xff]  ;;  %v6800_v1 = vpop.f32.mrf.mxu1  ;;  %s5717_s7 = smov 64  }
 0x1f2   : > { %v1956_v11 = vpop.f32.mrf.mxu0  ;;  %v2159_v59 = vmax.f32 %v2127_v10, 0.0  ;;  %v2466_v38 = vadd.f32 %v6796_v50, %v2443_v0  ;;  %v2062_v25 = vadd.f32 %v6673_v28, %v6657_v13 }
 0x1f3   : > { %v2444_v57 = vmul.f32 %v6777_v7, %v2390_v33  ;;  %v2157_v41 = vmax.f32 %v2125_v3, 0.0  ;;  %v2376_v4 = vmax.f32 %v2346_v26, %v2347_v27  ;;  %v2128_v6 = vadd.f32 %v6734_v32, %v2090_v18  ;;  %v6812_v56 = vpop.f32.mrf.mxu1 }
 0x1f4   : > { %v2088_v24 = vadd.f32 %v2056_v30, %v1956_v11  ;;  %v5328_v51 = vpop.f32.mrf.mxu0  ;;  %v2060_v18 = vadd.f32 %v6643_v8, %v6681_v36  ;;  %v2351_v28 = vadd.f32 %v6721_v37, %v2159_v59  ;;  %v2065_v8 = vadd.f32 %v6725_v9, %v6663_v23 }
 0x1f5   : > { %v2349_v43 = vadd.f32 %v6703_v49, %v2157_v41  ;;  %v2093_v40 = vadd.f32 %v5328_v51, %v2061_v16  ;;  %v2467_v21 = vadd.f32 %v6796_v50, %v2444_v57  ;;  %v2391_v15 = vmax.f32 %v2376_v4, %v2345_v14  ;;  %v6817_v14 = vpop.permute.xlu0 %2274  ;;  %v6829_v57 = vpop.permute.xlu1 %2279 }
 0x1f6   : > { %v2126_v54 = vadd.f32 %v6734_v32, %v2088_v24  ;;  %v1969_v19 = vpop.f32.mrf.mxu0  ;;  %v2160_v47 = vmax.f32 %v2128_v6, 0.0  ;;  %v6834_v41 = vpop.f32.mrf.mxu1  ;;  %v2063_v23 = vadd.f32 %v6691_v39, %v6649_v48 }
 0x1f7   : > { %v2377_v30 = vmax.f32 %v2348_v17, %v2349_v43  ;;  %v2091_v53 = vadd.f32 %v2059_v2, %v1969_v19  ;;  %v2131_v49 = vadd.f32 %v6734_v32, %v2093_v40  ;;  %v6815_v3 = vpack.c.bf16 %v2467_v21, %v2466_v38 }
 0x1f8   : > { %v2158_v33 = vmax.f32 %v2126_v54, 0.0  ;;  %v5329_v29 = vpop.f32.mrf.mxu0  ;;  %v2445_v0 = vmul.f32 %v6777_v7, %v2391_v15  ;;  %v2352_v37 = vadd.f32 %v6727_v52, %v2160_v47  ;;  %v2066_v54 = vadd.f32 %v6707_v63, %v6669_v31 }
 0x1f9   : > { %v2392_v26 = vmax.f32 %v2377_v30, %v2347_v27  ;;  %v2129_v13 = vadd.f32 %v6734_v32, %v2091_v53  ;;  %v2094_v11 = vadd.f32 %v5329_v29, %v2062_v25  ;;  %5348 = vmatprep.mubr.msk.bf16.mxu1 %vm1500_vm0, %v6815_v3  ;;  %5384 = vmatprep.mubr.msk.bf16.mxu0 %vm1500_vm0, %v6815_v3  ;;  %v2163_v2 = vmax.f32 %v2131_v49, 0.0  ;;  %v6844_v59 = vpop.permute.xlu0 %2284  ;;  %v1851_v25 = vpop.f32.mrf.mxu1 }
 0x1fa   : > { %v2350_v10 = vadd.f32 %v6717_v5, %v2158_v33  ;;  %v1972_v16 = vpop.f32.mrf.mxu0  ;;  %v2468_v24 = vadd.f32 %v6796_v50, %v2445_v0  ;;  %v6853_v53 = vpop.permute.xlu1 %2289  ;;  %v2069_v29 = vadd.f32 %v6781_v61, %v6679_v34 }
 0x1fb   : > { %v2446_v36 = vmul.f32 %v6777_v7, %v2392_v26  ;;  %v2161_v27 = vmax.f32 %v2129_v13, 0.0  ;;  %v2092_v4 = vadd.f32 %v2060_v18, %v1972_v16  ;;  %v2132_v21 = vadd.f32 %v6734_v32, %v2094_v11  ;;  %v7556_v26 = vld [vmem:[#allocation15_spill] sm:$0xff] }
 0x1fc   : > { %v2378_v5 = vmax.f32 %v2350_v10, %v2351_v28  ;;  %v5332_v6 = vpop.f32.mrf.mxu0  ;;  %v2355_v48 = vadd.f32 %v6752_v62, %v2163_v2  ;;  %v7557_v13 = vld [vmem:[#allocation27_spill] sm:$0xff]  ;;  %v6869_v10 = vpop.f32.mrf.mxu1 }
 0x1fd   : > { %v2469_v51 = vadd.f32 %v6796_v50, %v2446_v36  ;;  %v2353_v17 = vadd.f32 %v6736_v22, %v2161_v27  ;;  %v2097_v40 = vadd.f32 %v5332_v6, %v2065_v8  ;;  %v2130_v15 = vadd.f32 %v6734_v32, %v2092_v4  ;;  %v6872_v36 = vpop.permute.xlu0 %2294 }
 0x1fe   : > { %v2393_v9 = vmax.f32 %v2378_v5, %v2349_v43  ;;  %v1985_v52 = vpop.f32.mrf.mxu0  ;;  %v2064_v22 = vadd.f32 %v6655_v44, %v6713_v12  ;;  %v2164_v44 = vmax.f32 %v2132_v21, 0.0  ;;  %v7559_v21 = vld [vmem:[#allocation19_spill] sm:$0xff] }
 0x1ff   : > { %v6848_v19 = vpack.c.bf16 %v2469_v51, %v2468_v24  ;;  %v2379_v38 = vmax.f32 %v2352_v37, %v2353_v17  ;;  %v2162_v39 = vmax.f32 %v2130_v15, 0.0  ;;  %v2095_v43 = vadd.f32 %v2063_v23, %v1985_v52  ;;  %v6879_v24 = vpop.permute.xlu1 %2299  ;;  %v7558_v51 = vld [vmem:[#allocation16_spill] sm:$0xff] }
 0x200   : > { %v5333_v30 = vpop.f32.mrf.mxu0  ;;  %v2135_v33 = vadd.f32 %v6734_v32, %v2097_v40  ;;  %v2447_v12 = vmul.f32 %v6777_v7, %v2393_v9  ;;  %v2356_v61 = vadd.f32 %v6762_v20, %v2164_v44  ;;  %v2068_v40 = vadd.f32 %v7558_v51, %v6750_v46  ;;  %v7560_v15 = vld [vmem:[#allocation28_spill] sm:$0xff]  ;;  %v7564_v51 = vld [vmem:[#allocation18_spill] sm:$0xff] }
 0x201   : > { %v2394_v47 = vmax.f32 %v2379_v38, %v2351_v28  ;;  %v2098_v49 = vadd.f32 %v5333_v30, %v2066_v54  ;;  %5349 = vmatmul.mubr.msk.bf16.vlgmr.msra.gmra.mxu1 %vm1500_vm0, %v6848_v19  ;;  %5385 = vmatmul.mubr.msk.bf16.vlgmr.msra.gmra.mxu0 %vm1500_vm0, %v6848_v19  ;;  %v2354_v62 = vadd.f32 %v6746_v55, %v2162_v39  ;;  %v6885_v54 = vpop.f32.mrf.mxu1 }
 0x202   : > { %v2133_v31 = vadd.f32 %v6734_v32, %v2095_v43  ;;  %v1988_v63 = vpop.f32.mrf.mxu0  ;;  %5365 = vmatpush3.bf16.msra.mxu1 %v6618_v58  ;;  %v2067_v28 = vadd.f32 %v7557_v13, %v7556_v26  ;;  %v2167_v27 = vmax.f32 %v2135_v33, 0.0  ;;  %v2470_v6 = vadd.f32 %v6796_v50, %v2447_v12  ;;  %v6898_v12 = vpop.permute.xlu0 %2304 }
 0x203   : > { %v2448_v18 = vmul.f32 %v6777_v7, %v2394_v47  ;;  %v2096_v0 = vadd.f32 %v2064_v22, %v1988_v63  ;;  %v2380_v11 = vmax.f32 %v2354_v62, %v2355_v48  ;;  %v2136_v55 = vadd.f32 %v6734_v32, %v2098_v49  ;;  %v2310_v13 = vpop.permute.xlu1 %2309 }
 0x204   : > { %v2165_v16 = vmax.f32 %v2133_v31, 0.0  ;;  %v5336_v8 = vpop.f32.mrf.mxu0  ;;  %v2070_v52 = vadd.f32 %v7560_v15, %v7559_v21  ;;  %v7562_v31 = vld [vmem:[#allocation17_spill] sm:$0xff] }
 0x205   : > { %v2134_v58 = vadd.f32 %v6734_v32, %v2096_v0  ;;  %v2101_v37 = vadd.f32 %v5336_v8, %v2069_v29  ;;  %v2471_v34 = vadd.f32 %v6796_v50, %v2448_v18  ;;  %v2395_v5 = vmax.f32 %v2380_v11, %v2353_v17  ;;  %v5311_v29 = vpop.f32.mrf.mxu1 }
 0x206   : > { %v2357_v2 = vadd.f32 %v6770_v35, %v2165_v16  ;;  %v2001_v4 = vpop.f32.mrf.mxu0  ;;  %v2168_v20 = vmax.f32 %v2136_v55, 0.0  ;;  %v2359_v35 = vadd.f32 %v6803_v42, %v2167_v27  ;;  %v7561_v42 = vld [vmem:[#allocation21_spill] sm:$0xff]  ;;  %v2071_v63 = vadd.f32 %v6760_v45, %v7562_v31  ;;  %v2315_v15 = vpop.permute.xlu0 %2314 }
 0x207   : > { %v2166_v23 = vmax.f32 %v2134_v58, 0.0  ;;  %v2099_v9 = vadd.f32 %v2067_v28, %v2001_v4  ;;  %v6887_v22 = vpack.c.bf16 %v2471_v34, %v2470_v6  ;;  %v2139_v43 = vadd.f32 %v6734_v32, %v2101_v37  ;;  %v7563_v37 = vld [vmem:[#allocation23_spill] sm:$0xff] }
 0x208   : > { %v2381_v38 = vmax.f32 %v2356_v61, %v2357_v2  ;;  %v5337_v17 = vpop.f32.mrf.mxu0  ;;  %v2449_v30 = vmul.f32 %v6777_v7, %v2395_v5  ;;  %v2073_v44 = vadd.f32 %v1851_v25, %v7561_v42  ;;  %v2360_v18 = vadd.f32 %v6817_v14, %v2168_v20  ;;  %v1867_v61 = vpop.f32.mrf.mxu1 }
 0x209   : > { %v2358_v39 = vadd.f32 %v6788_v60, %v2166_v23  ;;  %v2137_v46 = vadd.f32 %v6734_v32, %v2099_v9  ;;  %v2102_v33 = vadd.f32 %v5337_v17, %v2070_v52  ;;  %5352 = vmatprep.mubr.msk.bf16.mxu1 %vm1500_vm0, %v6887_v22  ;;  %5388 = vmatprep.mubr.msk.bf16.mxu0 %vm1500_vm0, %v6887_v22  ;;  %v2171_v11 = vmax.f32 %v2139_v43, 0.0 }
 0x20a   : > { %v2396_v47 = vmax.f32 %v2381_v38, %v2355_v48  ;;  %v2004_v49 = vpop.f32.mrf.mxu0  ;;  %v2472_v45 = vadd.f32 %v6796_v50, %v2449_v30  ;;  %v2074_v14 = vadd.f32 %v6800_v1, %v7563_v37 }
 0x20b   : > { %v2382_v60 = vmax.f32 %v2358_v39, %v2359_v35  ;;  %v2169_v62 = vmax.f32 %v2137_v46, 0.0  ;;  %v2100_v0 = vadd.f32 %v2068_v40, %v2004_v49  ;;  %v2140_v25 = vadd.f32 %v6734_v32, %v2102_v33  ;;  %v7565_v39 = vld [vmem:[#allocation20_spill] sm:$0xff] }
 0x20c   : > { %v2450_v48 = vmul.f32 %v6777_v7, %v2396_v47  ;;  %v5340_v26 = vpop.f32.mrf.mxu0  ;;  %v2072_v40 = vadd.f32 %v7564_v51, %v6812_v56  ;;  %v2363_v23 = vadd.f32 %v6853_v53, %v2171_v11  ;;  %v2320_v56 = vpop.permute.xlu1 %2319  ;;  %v2075_v53 = vadd.f32 %v6834_v41, %v7565_v39 }
 0x20d   : > { %v2397_v28 = vmax.f32 %v2382_v60, %v2357_v2  ;;  %v2361_v16 = vadd.f32 %v6829_v57, %v2169_v62  ;;  %v2105_v55 = vadd.f32 %v5340_v26, %v2073_v44  ;;  %v2138_v8 = vadd.f32 %v6734_v32, %v2100_v0  ;;  %v7567_v44 = vld [vmem:[#allocation22_spill] sm:$0xff] }
 0x20e   : > { %v2017_v27 = vpop.f32.mrf.mxu0  ;;  %v2473_v58 = vadd.f32 %v6796_v50, %v2450_v48  ;;  %v2172_v1 = vmax.f32 %v2140_v25, 0.0  ;;  %v2076_v60 = vadd.f32 %v7567_v44, %v6885_v54 }
 0x20f   : > { %v2383_v34 = vmax.f32 %v2360_v18, %v2361_v16  ;;  %v2170_v5 = vmax.f32 %v2138_v8, 0.0  ;;  %v2143_v2 = vadd.f32 %v6734_v32, %v2105_v55  ;;  %v2103_v4 = vadd.f32 %v2071_v63, %v2017_v27  ;;  %v7569_v55 = vld [vmem:[#allocation26_spill] sm:$0xff]  ;;  %v2325_v27 = vpop.permute.xlu0 %2324 }
 0x210   : > { %v5341_v57 = vpop.f32.mrf.mxu0  ;;  %v6913_v6 = vpack.c.bf16 %v2473_v58, %v2472_v45  ;;  %v2451_v52 = vmul.f32 %v6777_v7, %v2397_v28  ;;  %v2364_v41 = vadd.f32 %v6872_v36, %v2172_v1  ;;  %v7568_v28 = vld [vmem:[#allocation24_spill] sm:$0xff]  ;;  %v2078_v25 = vadd.f32 %v6869_v10, %v7569_v55  ;;  %v2330_v36 = vpop.permute.xlu1 %2329 }
 0x211   : > { %v2398_v9 = vmax.f32 %v2383_v34, %v2359_v35  ;;  %v2106_v21 = vadd.f32 %v5341_v57, %v2074_v14  ;;  %v2362_v38 = vadd.f32 %v6844_v59, %v2170_v5  ;;  %v2141_v20 = vadd.f32 %v6734_v32, %v2103_v4  ;;  %v7566_v35 = vld [vmem:[#allocation25_spill] sm:$0xff] }
 0x212   : > { %5353 = vmatmul.mubr.msk.bf16.gmra.mxu1 %vm1500_vm0, %v6913_v6  ;;  %5389 = vmatmul.mubr.msk.bf16.gmra.mxu0 %vm1500_vm0, %v6913_v6  ;;  %v2020_v17 = vpop.f32.mrf.mxu0  ;;  %v2077_v43 = vadd.f32 %v1867_v61, %v7566_v35  ;;  %v2175_v59 = vmax.f32 %v2143_v2, 0.0  ;;  %v2474_v26 = vadd.f32 %v6796_v50, %v2451_v52  ;;  %v2079_v11 = vadd.f32 %v5311_v29, %v7568_v28 }
 0x213   : > { %v2452_v46 = vmul.f32 %v6777_v7, %v2398_v9  ;;  %v2104_v30 = vadd.f32 %v2072_v40, %v2020_v17  ;;  %v2384_v47 = vmax.f32 %v2362_v38, %v2363_v23  ;;  %v2173_v33 = vmax.f32 %v2141_v20, 0.0  ;;  %v2335_v20 = vpop.permute.xlu0 %2334 }
 0x214   : > { %v2144_v49 = vadd.f32 %v6734_v32, %v2106_v21  ;;  %v5344_v42 = vpop.f32.mrf.mxu0  ;;  %v2367_v45 = vadd.f32 %v2310_v13, %v2175_v59 }
 0x215   : > { %v2142_v62 = vadd.f32 %v6734_v32, %v2104_v30  ;;  %v2109_v31 = vadd.f32 %v5344_v42, %v2077_v43  ;;  %v2475_v63 = vadd.f32 %v6796_v50, %v2452_v46  ;;  %v2399_v48 = vmax.f32 %v2384_v47, %v2361_v16  ;;  %v2340_v43 = vpop.permute.xlu1 %2339 }
 0x216   : > { %v2365_v18 = vadd.f32 %v6879_v24, %v2173_v33  ;;  %v2033_v0 = vpop.f32.mrf.mxu0  ;;  %v2176_v37 = vmax.f32 %v2144_v49, 0.0 }
 0x217   : > { %v2174_v8 = vmax.f32 %v2142_v62, 0.0  ;;  %v2107_v54 = vadd.f32 %v2075_v53, %v2033_v0  ;;  %v2489_v34 = vpack.c.bf16 %v2475_v63, %v2474_v26  ;;  %v2147_v24 = vadd.f32 %v6734_v32, %v2109_v31 }
 0x218   : > { %v2385_v58 = vmax.f32 %v2364_v41, %v2365_v18  ;;  %v5345_v14 = vpop.f32.mrf.mxu0  ;;  %v2453_v29 = vmul.f32 %v6777_v7, %v2399_v48  ;;  %v2368_v40 = vadd.f32 %v2315_v15, %v2176_v37 }
 0x219   : > { %v2366_v16 = vadd.f32 %v6898_v12, %v2174_v8  ;;  %v2145_v61 = vadd.f32 %v6734_v32, %v2107_v54  ;;  %v2110_v5 = vadd.f32 %v5345_v14, %v2078_v25  ;;  %v2111_v10 = vadd.f32 %v5345_v14, %v2079_v11  ;;  %5356 = vmatprep.mubr.msk.bf16.mxu1 %vm1500_vm0, %v2489_v34 }
 0x21a   : > { %v2400_v2 = vmax.f32 %v2385_v58, %v2363_v23  ;;  %5392 = vmatprep.mubr.msk.bf16.mxu0 %vm1500_vm0, %v2489_v34  ;;  %v2036_v13 = vpop.f32.mrf.mxu0  ;;  %v2179_v1 = vmax.f32 %v2147_v24, 0.0  ;;  %v2476_v53 = vadd.f32 %v6796_v50, %v2453_v29 }
 0x21b   : > { %v2386_v4 = vmax.f32 %v2366_v16, %v2367_v45  ;;  %v2177_v57 = vmax.f32 %v2145_v61, 0.0  ;;  %v2148_v51 = vadd.f32 %v6734_v32, %v2110_v5  ;;  %v2149_v9 = vadd.f32 %v6734_v32, %v2111_v10 }
 0x21c   : > { %v2454_v12 = vmul.f32 %v6777_v7, %v2400_v2  ;;  %v2108_v21 = vadd.f32 %v2076_v60, %v2036_v13  ;;  %v2371_v42 = vadd.f32 %v2330_v36, %v2179_v1 }
 0x21d   : > { %v2401_v52 = vmax.f32 %v2386_v4, %v2365_v18  ;;  %v2369_v38 = vadd.f32 %v2320_v56, %v2177_v57  ;;  %v2180_v23 = vmax.f32 %v2148_v51, 0.0  ;;  %v2181_v17 = vmax.f32 %v2149_v9, 0.0 }
 0x21e   : > { %v2146_v39 = vadd.f32 %v6734_v32, %v2108_v21  ;;  %v2477_v35 = vadd.f32 %v6796_v50, %v2454_v12 }
 0x21f   : > { %v2387_v46 = vmax.f32 %v2368_v40, %v2369_v38  ;;  %v2372_v30 = vadd.f32 %v2335_v20, %v2180_v23  ;;  %v2373_v47 = vadd.f32 %v2340_v43, %v2181_v17  ;;  %v2455_v33 = vmul.f32 %v6777_v7, %v2401_v52 }
 0x220   : > { %v2178_v15 = vmax.f32 %v2146_v39, 0.0  ;;  %v2490_v59 = vpack.c.bf16 %v2477_v35, %v2476_v53  ;;  %v7015_v35 = vld [vmem:[%s7571_s3] ss:$0 sm:$0xff] }
 0x221   : > { %v2402_v49 = vmax.f32 %v2387_v46, %v2367_v45  ;;  %v2389_v56 = vmax.f32 %v2372_v30, %v2373_v47  ;;  %v2478_v31 = vadd.f32 %v6796_v50, %v2455_v33 }
 0x222   : > { %v2370_v44 = vadd.f32 %v2325_v27, %v2178_v15  ;;  %5357 = vmatmul.mubr.msk.bf16.gmra.mxu1 %vm1500_vm0, %v2490_v59  ;;  %5393 = vmatmul.mubr.msk.bf16.gmra.mxu0 %vm1500_vm0, %v2490_v59 }
 0x223   : > { %v2456_v32 = vmul.f32 %v6777_v7, %v2402_v49  ;;  %v2404_v60 = vmax.f32 %v2389_v56, %v2371_v42 }
 0x224   : > { %v2388_v62 = vmax.f32 %v2370_v44, %v2371_v42 }
 0x225   : > { %v2479_v63 = vadd.f32 %v6796_v50, %v2456_v32  ;;  %v2458_v48 = vmul.f32 %v6777_v7, %v2404_v60 }
 0x226   : > { %v2403_v41 = vmax.f32 %v2388_v62, %v2369_v38 }
 0x227   : > { %v2491_v18 = vpack.c.bf16 %v2479_v63, %v2478_v31  ;;  %v2481_v28 = vadd.f32 %v6796_v50, %v2458_v48 }
 0x228   : > { %v2457_v0 = vmul.f32 %v6777_v7, %v2403_v41  ;;  %v5592_v7 = vld [vmem:[%s7570_s8 + $0x8] sm:$0xff]  }
 0x229   : > { %5360 = vmatprep.mubr.msk.bf16.mxu1 %vm1500_vm0, %v2491_v18  ;;  %5396 = vmatprep.mubr.msk.bf16.mxu0 %vm1500_vm0, %v2491_v18 }
 0x22a   : > { %v2480_v26 = vadd.f32 %v6796_v50, %v2457_v0  ;;  %5400 = vmatprep.subr.bf16.mxu1 %v5592_v7  ;;  %v5593_v50 = vld [vmem:[%s7570_s8] sm:$0xff]  }
 0x22c   : > { %v2492_v11 = vpack.c.bf16 %v2481_v28, %v2480_v26 }
 0x22e   : > { %5361 = vmatmul.mubr.msk.bf16.gmra.mxu1 %vm1500_vm0, %v2492_v11  ;;  %5397 = vmatmul.mubr.msk.bf16.gmra.mxu0 %vm1500_vm0, %v2492_v11 }
 0x22f   : > { %5366 = vmatprep.mubr.msk.bf16.mxu1 %vm1500_vm0, %v6815_v3  ;;  %v5594_v3 = vld [vmem:[%s7570_s8 + $0x18] sm:$0xff]  }
 0x230   : > { %5420 = vmatprep.subr.bf16.mxu0 %v5594_v3 }
 0x231   : > { %5421 = vmatpush3.bf16.msra.mxu0 %v5594_v3 }
 0x236   : > { %5367 = vmatmul.mubr.msk.bf16.vlgmr.msra.gmra.mxu1 %vm1500_vm0, %v6848_v19  ;;  %v5595_v19 = vld [vmem:[%s7570_s8 + $0x10] sm:$0xff]  }
 0x237   : > { %5370 = vmatprep.mubr.msk.bf16.mxu1 %vm1500_vm0, %v6887_v22  ;;  %5401 = vmatpush3.bf16.msra.mxu1 %v5592_v7  ;;  %v6993_v22 = vld [vmem:[%s7570_s8 + $0x28] sm:$0xff]  }
 0x238   : > { %5402 = vmatprep.subr.bf16.mxu1 %v5593_v50  ;;  %5422 = vmatprep.subr.bf16.mxu0 %v5595_v19 }
 0x239   : > { %5423 = vmatpush3.bf16.msra.mxu0 %v5595_v19 }
 0x23b   : > { %5403 = vmatpush3.bf16.msra.mxu1 %v5593_v50 }
 0x23c   : > { %5440 = vmatprep.subr.bf16.mxu1 %v6993_v22 }
 0x23e   : > { %5371 = vmatmul.mubr.msk.bf16.gmra.mxu1 %vm1500_vm0, %v6913_v6 }
 0x23f   : > { %5374 = vmatprep.mubr.msk.bf16.mxu1 %vm1500_vm0, %v2489_v34 }
 0x246   : > { %5375 = vmatmul.mubr.msk.bf16.gmra.mxu1 %vm1500_vm0, %v2490_v59 }
 0x247   : > { %5378 = vmatprep.mubr.msk.bf16.mxu1 %vm1500_vm0, %v2491_v18 }
 0x24e   : > { %5379 = vmatmul.mubr.msk.bf16.gmra.mxu1 %vm1500_vm0, %v2492_v11 }
 0x2c1   : > { %v5386_v6 = vpop.f32.mrf.mxu0  ;;  %v5350_v25 = vpop.f32.mrf.mxu1 }
 0x2c3   : > { %v2768_v55 = vpop.f32.mrf.mxu0  ;;  %v2557_v8 = vpop.f32.mrf.mxu1 }
 0x2c4   : > { %v5597_v55 = vld [vmem:[%s7570_s8 + $0x20] sm:$0xff]  }
 0x2c5   : > { %v5351_v54 = vpop.f32.mrf.mxu1  ;;  %v5387_v36 = vpop.f32.mrf.mxu0 }
 0x2c7   : > { %v2560_v27 = vpop.f32.mrf.mxu1  ;;  %v2770_v24 = vpop.f32.mrf.mxu0 }
 0x2d2   : > { %v5354_v45 = vpop.f32.mrf.mxu1  ;;  %v5390_v5 = vpop.f32.mrf.mxu0 }
 0x2d4   : > { %v2573_v58 = vpop.f32.mrf.mxu1  ;;  %v2783_v2 = vpop.f32.mrf.mxu0 }
 0x2d6   : > { %v6996_v37 = vpop.f32.mrf.mxu1  ;;  %v5391_v4 = vpop.f32.mrf.mxu0 }
 0x2d8   : > { %v2576_v14 = vpop.f32.mrf.mxu1  ;;  %v2786_v12 = vpop.f32.mrf.mxu0 }
 0x2e2   : > { %v6998_v34 = vpop.f32.mrf.mxu1  ;;  %v7010_v9 = vpop.f32.mrf.mxu0 }
 0x2e4   : > { %v7000_v16 = vpop.f32.mrf.mxu1  ;;  %v2799_v17 = vpop.f32.mrf.mxu0 }
 0x2e6   : > { %v7002_v61 = vpop.f32.mrf.mxu1  ;;  %v5395_v33 = vpop.f32.mrf.mxu0 }
 0x2e8   : > { %v2592_v29 = vpop.f32.mrf.mxu1  ;;  %v2802_v48 = vpop.f32.mrf.mxu0 }
 0x2ee   : > { %v7004_v10 = vpop.f32.mrf.mxu1  ;;  %v7023_v50 = vpop.f32.mrf.mxu0 }
 0x2f0   : > { %v7006_v13 = vpop.f32.mrf.mxu1 }
 0x2f2   : > { %v5363_v57 = vpop.f32.mrf.mxu1 }
 0x2f4   : > { %v7008_v51 = vpop.f32.mrf.mxu1 }
 0x2f6   : > { %v5368_v40 = vpop.f32.mrf.mxu1 }
 0x2f7   : > { %v2832_v21 = vadd.f32 %v5368_v40, %v2560_v27 }
 0x2f8   : > { %v2662_v52 = vpop.f32.mrf.mxu1 }
 0x2f9   : > { %v2830_v1 = vadd.f32 %v2662_v52, %v2557_v8  ;;  %v2848_v39 = vadd.f32 %v5387_v36, %v2832_v21 }
 0x2fa   : > { %v5369_v38 = vpop.f32.mrf.mxu1 }
 0x2fb   : > { %v2846_v23 = vadd.f32 %v2830_v1, %v2770_v24  ;;  %v2833_v20 = vadd.f32 %v5369_v38, %v5350_v25  ;;  %v2870_v49 = vadd.f32 %v7015_v35, %v2848_v39  ;;  %v2815_v24 = vpop.f32.mrf.mxu0 }
 0x2fc   : > { %v2665_v53 = vpop.f32.mrf.mxu1 }
 0x2fd   : > { %v2849_v43 = vadd.f32 %v2833_v20, %v2783_v2  ;;  %v2831_v46 = vadd.f32 %v2665_v53, %v2557_v8  ;;  %v2868_v47 = vadd.f32 %v7015_v35, %v2846_v23  ;;  %v2886_v18 = vmax.f32 %v2870_v49, 0.0 }
 0x2fe   : > { %v5372_v30 = vpop.f32.mrf.mxu1 }
 0x2ff   : > { %v2871_v15 = vadd.f32 %v7015_v35, %v2849_v43  ;;  %v2847_v59 = vadd.f32 %v5386_v6, %v2831_v46  ;;  %v2836_v42 = vadd.f32 %v5372_v30, %v2576_v14  ;;  %v2884_v31 = vmax.f32 %v2868_v47, 0.0 }
 0x300   : > { %v2678_v56 = vpop.f32.mrf.mxu1 }
 0x301   : > { %v2869_v44 = vadd.f32 %v7015_v35, %v2847_v59  ;;  %v2834_v32 = vadd.f32 %v5351_v54, %v2678_v56  ;;  %v2887_v60 = vmax.f32 %v2871_v15, 0.0  ;;  %v2852_v0 = vadd.f32 %v5391_v4, %v2836_v42 }
 0x302   : > { %v5373_v62 = vpop.f32.mrf.mxu1 }
 0x303   : > { %v2885_v63 = vmax.f32 %v2869_v44, 0.0  ;;  %v2850_v41 = vadd.f32 %v2834_v32, %v2786_v12  ;;  %v2837_v26 = vadd.f32 %v5373_v62, %v5354_v45  ;;  %v7025_v3 = vpack.c.bf16 %v2887_v60, %v2886_v18 }
 0x304   : > { %v2681_v28 = vpop.f32.mrf.mxu1  ;;  %v2874_v54 = vadd.f32 %v7015_v35, %v2852_v0 }
 0x305   : > { %v7021_v11 = vpack.c.bf16 %v2885_v63, %v2884_v31  ;;  %v2835_v7 = vadd.f32 %v2681_v28, %v2573_v58  ;;  %v2853_v19 = vadd.f32 %v2837_v26, %v2799_v17  ;;  %v2872_v25 = vadd.f32 %v7015_v35, %v2850_v41 }
 0x306   : > { %v5376_v6 = vpop.f32.mrf.mxu1  ;;  %v2890_v40 = vmax.f32 %v2874_v54, 0.0 }
 0x307   : > { %v2851_v8 = vadd.f32 %v5390_v5, %v2835_v7  ;;  %5404 = vmatprep.mubr.msk.bf16.mxu1 %vm2925_vm1, %v7021_v11  ;;  %5424 = vmatprep.mubr.msk.bf16.mxu0 %vm2925_vm1, %v7021_v11  ;;  %v2875_v27 = vadd.f32 %v7015_v35, %v2853_v19  ;;  %v2840_v14 = vadd.f32 %v5376_v6, %v2592_v29  ;;  %v2888_v4 = vmax.f32 %v2872_v25, 0.0  ;;  %v5399_v29 = vpop.f32.mrf.mxu0  ;;  %v7097_v19 = vld [vmem:[%s7487_s15 + $0x28] sm:$0xff]  }
 0x308   : > { %v2694_v45 = vpop.f32.mrf.mxu1  ;;  %5405 = vmatmul.mubr.msk.bf16.vlgmr.msra.gmra.mxu1 %vm2925_vm1, %v7025_v3  ;;  %5425 = vmatmul.mubr.msk.bf16.vlgmr.msra.gmra.mxu0 %vm2925_vm1, %v7025_v3 }
 0x309   : > { %v2873_v58 = vadd.f32 %v7015_v35, %v2851_v8  ;;  %v2838_v36 = vadd.f32 %v6996_v37, %v2694_v45  ;;  %5441 = vmatpush3.bf16.msra.mxu1 %v6993_v22  ;;  %v2891_v5 = vmax.f32 %v2875_v27, 0.0  ;;  %v2856_v38 = vadd.f32 %v5395_v33, %v2840_v14  ;;  %v2818_v30 = vpop.f32.mrf.mxu0 }
 0x30a   : > { %v5377_v2 = vpop.f32.mrf.mxu1  ;;  %5442 = vmatprep.subr.bf16.mxu1 %v5597_v55 }
 0x30b   : > { %v2889_v57 = vmax.f32 %v2873_v58, 0.0  ;;  %v2841_v12 = vadd.f32 %v5377_v2, %v6998_v34  ;;  %v2854_v21 = vadd.f32 %v2838_v36, %v2802_v48  ;;  %v2908_v20 = vpack.c.bf16 %v2891_v5, %v2890_v40 }
 0x30c   : > { %v2697_v52 = vpop.f32.mrf.mxu1  ;;  %v2878_v43 = vadd.f32 %v7015_v35, %v2856_v38  ;;  %v3356_v38 = vpop.permute.xlu0 %3355 }
 0x30d   : > { %v2907_v1 = vpack.c.bf16 %v2889_v57, %v2888_v4  ;;  %v2857_v23 = vadd.f32 %v2841_v12, %v2815_v24  ;;  %5443 = vmatpush3.bf16.msra.mxu1 %v5597_v55  ;;  %v2839_v37 = vadd.f32 %v2697_v52, %v7000_v16  ;;  %v2876_v34 = vadd.f32 %v7015_v35, %v2854_v21 }
 0x30e   : > { %v5380_v22 = vpop.f32.mrf.mxu1  ;;  %v2894_v44 = vmax.f32 %v2878_v43, 0.0 }
 0x30f   : > { %v2879_v17 = vadd.f32 %v7015_v35, %v2857_v23  ;;  %5408 = vmatprep.mubr.msk.bf16.mxu1 %vm2925_vm1, %v2907_v1  ;;  %5428 = vmatprep.mubr.msk.bf16.mxu0 %vm2925_vm1, %v2907_v1  ;;  %v2855_v39 = vadd.f32 %v7010_v9, %v2839_v37  ;;  %v2844_v16 = vadd.f32 %v5380_v22, %v7008_v51  ;;  %v2892_v9 = vmax.f32 %v2876_v34, 0.0 }
 0x310   : > { %v2710_v53 = vpop.f32.mrf.mxu1  ;;  %5409 = vmatmul.mubr.msk.bf16.gmra.mxu1 %vm2925_vm1, %v2908_v20  ;;  %5429 = vmatmul.mubr.msk.bf16.gmra.mxu0 %vm2925_vm1, %v2908_v20  ;;  %v7118_v34 = vpop.permute.xlu0 %3365 }
 0x311   : > { %v2842_v46 = vadd.f32 %v7002_v61, %v2710_v53  ;;  %v2877_v47 = vadd.f32 %v7015_v35, %v2855_v39  ;;  %v2895_v59 = vmax.f32 %v2879_v17, 0.0  ;;  %v2860_v32 = vadd.f32 %v5399_v29, %v2844_v16 }
 0x312   : > { %v5381_v15 = vpop.f32.mrf.mxu1 }
 0x313   : > { %v2858_v33 = vadd.f32 %v2842_v46, %v2818_v30  ;;  %v2845_v49 = vadd.f32 %v5381_v15, %v7004_v10  ;;  %v2893_v42 = vmax.f32 %v2877_v47, 0.0  ;;  %v2910_v51 = vpack.c.bf16 %v2895_v59, %v2894_v44 }
 0x314   : > { %v2713_v56 = vpop.f32.mrf.mxu1  ;;  %v2882_v10 = vadd.f32 %v7015_v35, %v2860_v32  ;;  %v7126_v47 = vpop.permute.xlu0 %3375 }
 0x315   : > { %v2861_v60 = vadd.f32 %v5399_v29, %v2845_v49  ;;  %v2843_v62 = vadd.f32 %v2713_v56, %v7006_v13  ;;  %v2909_v31 = vpack.c.bf16 %v2893_v42, %v2892_v9  ;;  %v2880_v61 = vadd.f32 %v7015_v35, %v2858_v33  ;;  %v7133_v56 = vld [vmem:[%s7484_s12] ss:$0 sm:$0xff] }
 0x316   : > { %v2898_v26 = vmax.f32 %v2882_v10, 0.0 }
 0x317   : > { %v2883_v63 = vadd.f32 %v7015_v35, %v2861_v60  ;;  %v2859_v41 = vadd.f32 %v7023_v50, %v2843_v62  ;;  %5412 = vmatprep.mubr.msk.bf16.mxu1 %vm2925_vm1, %v2909_v31  ;;  %5432 = vmatprep.mubr.msk.bf16.mxu0 %vm2925_vm1, %v2909_v31  ;;  %v2896_v13 = vmax.f32 %v2880_v61, 0.0  ;;  %v5599_v50 = vld [vmem:[%s7487_s15] sm:$0xff]  }
 0x318   : > { %5413 = vmatmul.mubr.msk.bf16.gmra.mxu1 %vm2925_vm1, %v2910_v51  ;;  %5433 = vmatmul.mubr.msk.bf16.gmra.mxu0 %vm2925_vm1, %v2910_v51 }
 0x319   : > { %v2881_v48 = vadd.f32 %v7015_v35, %v2859_v41  ;;  %v2899_v18 = vmax.f32 %v2883_v63, 0.0  ;;  %v5598_v35 = vld [vmem:[%s7487_s15 + $0x8] sm:$0xff]   ;;  %v3346_v63 = vpop.permute.xlu0 %3345 }
 0x31a   : > { %5460 = vmatprep.subr.bf16.mxu0 %v5598_v35 }
 0x31b   : > { %v2897_v0 = vmax.f32 %v2881_v48, 0.0  ;;  %v2912_v7 = vpack.c.bf16 %v2899_v18, %v2898_v26  ;;  %5461 = vmatpush3.bf16.msra.mxu0 %v5598_v35 }
 0x31c   : > { %5462 = vmatprep.subr.bf16.mxu0 %v5599_v50 }
 0x31d   : > { %v2911_v28 = vpack.c.bf16 %v2897_v0, %v2896_v13 }
 0x31f   : > { %5416 = vmatprep.mubr.msk.bf16.mxu1 %vm2925_vm1, %v2911_v28  ;;  %5436 = vmatprep.mubr.msk.bf16.mxu0 %vm2925_vm1, %v2911_v28 }
 0x320   : > { %5417 = vmatmul.mubr.msk.bf16.gmra.mxu1 %vm2925_vm1, %v2912_v7  ;;  %5437 = vmatmul.mubr.msk.bf16.gmra.mxu0 %vm2925_vm1, %v2912_v7 }
 0x321   : > { %5444 = vmatprep.mubr.msk.bf16.mxu1 %vm2925_vm1, %v7021_v11  ;;  %v5600_v11 = vld [vmem:[%s7487_s15 + $0x18] sm:$0xff]   ;;  %5463 = vmatpush3.bf16.msra.mxu0 %v5599_v50 }
 0x322   : > { %5472 = vmatprep.subr.bf16.mxu1 %v5600_v11  ;;  %5484 = vmatprep.subr.bf16.mxu0 %v7097_v19 }
 0x328   : > { %5445 = vmatmul.mubr.msk.bf16.vlgmr.msra.gmra.mxu1 %vm2925_vm1, %v7025_v3  ;;  %v5601_v3 = vld [vmem:[%s7487_s15 + $0x10] sm:$0xff]  }
 0x329   : > { %5448 = vmatprep.mubr.msk.bf16.mxu1 %vm2925_vm1, %v2907_v1  ;;  %5473 = vmatpush3.bf16.msra.mxu1 %v5600_v11 }
 0x32a   : > { %5474 = vmatprep.subr.bf16.mxu1 %v5601_v3 }
 0x32d   : > { %5475 = vmatpush3.bf16.msra.mxu1 %v5601_v3 }
 0x330   : > { %5449 = vmatmul.mubr.msk.bf16.gmra.mxu1 %vm2925_vm1, %v2908_v20  ;;  %v3361_v20 = vpop.permute.xlu1 %3360 }
 0x331   : > { %5452 = vmatprep.mubr.msk.bf16.mxu1 %vm2925_vm1, %v2909_v31 }
 0x334   : > { %v7122_v53 = vpop.permute.xlu1 %3370 }
 0x338   : > { %5453 = vmatmul.mubr.msk.bf16.gmra.mxu1 %vm2925_vm1, %v2910_v51  ;;  %v7128_v9 = vpop.permute.xlu1 %3380 }
 0x339   : > { %5456 = vmatprep.mubr.msk.bf16.mxu1 %vm2925_vm1, %v2911_v28 }
 0x33c   : > { %v3351_v0 = vpop.permute.xlu1 %3350 }
 0x340   : > { %5457 = vmatmul.mubr.msk.bf16.gmra.mxu1 %vm2925_vm1, %v2912_v7 }
 0x3c8   : > { %v5406_v6 = vpop.f32.mrf.mxu1  ;;  %v5426_v55 = vpop.f32.mrf.mxu0 }
 0x3ca   : > { %v2984_v25 = vpop.f32.mrf.mxu1  ;;  %v3097_v8 = vpop.f32.mrf.mxu0 }
 0x3cb   : > { %v3273_v42 = vadd.f32 %v3097_v8, %v2984_v25 }
 0x3cc   : > { %v5407_v54 = vpop.f32.mrf.mxu1  ;;  %v5427_v27 = vpop.f32.mrf.mxu0 }
 0x3cd   : > { %v3276_v41 = vadd.f32 %v5427_v27, %v5406_v6 }
 0x3ce   : > { %v2987_v45 = vpop.f32.mrf.mxu1  ;;  %v3100_v58 = vpop.f32.mrf.mxu0 }
 0x3cf   : > { %v3274_v46 = vadd.f32 %v3100_v58, %v2984_v25  ;;  %v3275_v15 = vadd.f32 %v5426_v55, %v2987_v45  ;;  %v7142_v58 = vpop.permute.xlu0 %3385 }
 0x3d0   : > { %v7100_v14 = vpop.f32.mrf.mxu1  ;;  %v5430_v36 = vpop.f32.mrf.mxu0 }
 0x3d2   : > { %v3000_v24 = vpop.f32.mrf.mxu1  ;;  %v3113_v2 = vpop.f32.mrf.mxu0 }
 0x3d3   : > { %v3277_v8 = vadd.f32 %v5407_v54, %v3113_v2 }
 0x3d4   : > { %v7102_v5 = vpop.f32.mrf.mxu1  ;;  %v5431_v57 = vpop.f32.mrf.mxu0 }
 0x3d6   : > { %v3003_v4 = vpop.f32.mrf.mxu1  ;;  %v3116_v21 = vpop.f32.mrf.mxu0 }
 0x3d7   : > { %v3278_v62 = vadd.f32 %v3116_v21, %v3000_v24  ;;  %v3279_v26 = vadd.f32 %v5430_v36, %v3003_v4  ;;  %v3280_v36 = vadd.f32 %v5431_v57, %v7100_v14  ;;  %v7152_v14 = vld [vmem:[%s7485_s13] ss:$0 sm:$0xff] }
 0x3d8   : > { %v7104_v12 = vpop.f32.mrf.mxu1  ;;  %v7110_v23 = vpop.f32.mrf.mxu0 }
 0x3da   : > { %v3016_v40 = vpop.f32.mrf.mxu1  ;;  %v7116_v22 = vpop.f32.mrf.mxu0 }
 0x3dc   : > { %v7106_v52 = vpop.f32.mrf.mxu1  ;;  %v7124_v43 = vpop.f32.mrf.mxu0 }
 0x3de   : > { %v7108_v1 = vpop.f32.mrf.mxu1  ;;  %v3132_v59 = vpop.f32.mrf.mxu0 }
 0x3df   : > { %v3282_v24 = vadd.f32 %v3132_v59, %v3016_v40  ;;  %v3283_v40 = vadd.f32 %v7110_v23, %v7108_v1  ;;  %v3281_v1 = vadd.f32 %v7102_v5, %v7116_v22 }
 0x3e0   : > { %v7112_v29 = vpop.f32.mrf.mxu1  ;;  %v7135_v31 = vpop.f32.mrf.mxu0 }
 0x3e2   : > { %v7114_v37 = vpop.f32.mrf.mxu1  ;;  %v3145_v35 = vpop.f32.mrf.mxu0 }
 0x3e4   : > { %v5419_v17 = vpop.f32.mrf.mxu1  ;;  %v5439_v4 = vpop.f32.mrf.mxu0 }
 0x3e6   : > { %v7120_v39 = vpop.f32.mrf.mxu1 }
 0x3e8   : > { %v5446_v16 = vpop.f32.mrf.mxu1 }
 0x3e9   : > { %v3290_v33 = vadd.f32 %v5446_v16, %v3274_v46 }
 0x3ea   : > { %v3211_v30 = vpop.f32.mrf.mxu1 }
 0x3eb   : > { %v3312_v51 = vadd.f32 %v7133_v56, %v3290_v33  ;;  %v3391_v30 = vpop.permute.xlu1 %3390 }
 0x3ec   : > { %v5447_v49 = vpop.f32.mrf.mxu1 }
 0x3ed   : > { %v3291_v44 = vadd.f32 %v5447_v49, %v3275_v15  ;;  %v3328_v11 = vmax.f32 %v3312_v51, 0.0 }
 0x3ee   : > { %v3213_v32 = vpop.f32.mrf.mxu1 }
 0x3ef   : > { %v3289_v60 = vadd.f32 %v3273_v42, %v3213_v32  ;;  %v3313_v10 = vadd.f32 %v7133_v56, %v3291_v44  ;;  %v3424_v17 = vadd.f32 %v3351_v0, %v3328_v11  ;;  %v3401_v0 = vpop.permute.xlu1 %3400  ;;  %v7168_v11 = vld [vmem:[%s7486_s14] ss:$0 sm:$0xff] }
 0x3f0   : > { %v5450_v61 = vpop.f32.mrf.mxu1 }
 0x3f1   : > { %v3311_v48 = vadd.f32 %v7133_v56, %v3289_v60  ;;  %v3294_v13 = vadd.f32 %v5450_v61, %v3278_v62  ;;  %v3329_v3 = vmax.f32 %v3313_v10, 0.0  ;;  %v3396_v10 = vpop.permute.xlu0 %3395 }
 0x3f2   : > { %v3226_v18 = vpop.f32.mrf.mxu1 }
 0x3f3   : > { %v3327_v28 = vmax.f32 %v3311_v48, 0.0  ;;  %v3292_v7 = vadd.f32 %v3276_v41, %v3226_v18  ;;  %v3316_v6 = vadd.f32 %v7133_v56, %v3294_v13  ;;  %v3425_v15 = vadd.f32 %v3356_v38, %v3329_v3  ;;  %v3148_v38 = vpop.f32.mrf.mxu0 }
 0x3f4   : > { %v5451_v50 = vpop.f32.mrf.mxu1 }
 0x3f5   : > { %v3314_v55 = vadd.f32 %v7133_v56, %v3292_v7  ;;  %v3295_v25 = vadd.f32 %v5451_v50, %v3279_v26  ;;  %v3423_v45 = vadd.f32 %v3346_v63, %v3327_v28  ;;  %v3332_v42 = vmax.f32 %v3316_v6, 0.0 }
 0x3f6   : > { %v3229_v27 = vpop.f32.mrf.mxu1  ;;  %v3284_v26 = vadd.f32 %v7124_v43, %v7104_v12  ;;  %v3286_v28 = vadd.f32 %v3148_v38, %v7114_v37 }
 0x3f7   : > { %v3330_v21 = vmax.f32 %v3314_v55, 0.0  ;;  %v3293_v16 = vadd.f32 %v3277_v8, %v3229_v27  ;;  %v3317_v49 = vadd.f32 %v7133_v56, %v3295_v25  ;;  %v3439_v2 = vmax.f32 %v3423_v45, %v3424_v17 }
 0x3f8   : > { %v5454_v46 = vpop.f32.mrf.mxu1  ;;  %v3428_v48 = vadd.f32 %v7122_v53, %v3332_v42  ;;  %v3285_v55 = vadd.f32 %v7106_v52, %v3145_v35  ;;  %v3406_v35 = vpop.permute.xlu0 %3405 }
 0x3f9   : > { %v3426_v33 = vadd.f32 %v3361_v20, %v3330_v21  ;;  %v3298_v54 = vadd.f32 %v5454_v46, %v3282_v24  ;;  %v3315_v44 = vadd.f32 %v7133_v56, %v3293_v16  ;;  %v3333_v61 = vmax.f32 %v3317_v49, 0.0 }
 0x3fa   : > { %v3242_v32 = vpop.f32.mrf.mxu1  ;;  %v3476_v23 = vmul.f32 %v7152_v14, %v3439_v2  ;;  %v3288_v24 = vadd.f32 %v5439_v4, %v7112_v29  ;;  %v3287_v21 = vadd.f32 %v7135_v31, %v7120_v39 }
 0x3fb   : > { %v3440_v57 = vmax.f32 %v3425_v15, %v3426_v33  ;;  %v3296_v59 = vadd.f32 %v3280_v36, %v3242_v32  ;;  %v3331_v20 = vmax.f32 %v3315_v44, 0.0  ;;  %v3320_v60 = vadd.f32 %v7133_v56, %v3298_v54  ;;  %v3411_v15 = vpop.permute.xlu1 %3410 }
 0x3fc   : > { %v5455_v62 = vpop.f32.mrf.mxu1  ;;  %v3429_v12 = vadd.f32 %v7126_v47, %v3333_v61  ;;  %v3491_v27 = vadd.f32 %v7168_v11, %v3476_v23 }
 0x3fd   : > { %v3447_v51 = vmax.f32 %v3440_v57, %v3424_v17  ;;  %v3318_v63 = vadd.f32 %v7133_v56, %v3296_v59  ;;  %v3299_v41 = vadd.f32 %v5455_v62, %v3283_v40  ;;  %v3427_v13 = vadd.f32 %v7118_v34, %v3331_v20  ;;  %v3416_v62 = vpop.permute.xlu0 %3415 }
 0x3fe   : > { %v3245_v18 = vpop.f32.mrf.mxu1  ;;  %v3336_v50 = vmax.f32 %v3320_v60, 0.0 }
 0x3ff   : > { %v3477_v7 = vmul.f32 %v7152_v14, %v3447_v51  ;;  %v3334_v5 = vmax.f32 %v3318_v63, 0.0  ;;  %v3441_v22 = vmax.f32 %v3427_v13, %v3428_v48  ;;  %v3321_v53 = vadd.f32 %v7133_v56, %v3299_v41  ;;  %v5603_v13 = vld [vmem:[%s7487_s15 + $0x20] sm:$0xff]  }
 0x400   : > { %v3297_v34 = vadd.f32 %v3281_v1, %v3245_v18  ;;  %v5458_v3 = vpop.f32.mrf.mxu1  ;;  %v3432_v47 = vadd.f32 %v3391_v30, %v3336_v50  ;;  %v3421_v1 = vpop.permute.xlu1 %3420 }
 0x401   : > { %v3430_v37 = vadd.f32 %v7128_v9, %v3334_v5  ;;  %v3492_v43 = vadd.f32 %v7168_v11, %v3477_v7  ;;  %v3448_v25 = vmax.f32 %v3441_v22, %v3426_v33  ;;  %v3302_v45 = vadd.f32 %v5458_v3, %v3286_v28 }
 0x402   : > { %v3319_v8 = vadd.f32 %v7133_v56, %v3297_v34  ;;  %v3258_v6 = vpop.f32.mrf.mxu1  ;;  %v3337_v17 = vmax.f32 %v3321_v53, 0.0 }
 0x403   : > { %v3442_v36 = vmax.f32 %v3429_v12, %v3430_v37  ;;  %v3300_v52 = vadd.f32 %v3284_v26, %v3258_v6  ;;  %v3504_v46 = vpack.c.bf16 %v3492_v43, %v3491_v27  ;;  %v3478_v33 = vmul.f32 %v7152_v14, %v3448_v25  ;;  %v5607_v6 = vld [vmem:[%s7489_s17 + $0x30] sm:$0xff]   ;;  %v5608_v27 = vld [vmem:[%s7489_s17 + $0x8] sm:$0xff]  }
 0x404   : > { %v3335_v9 = vmax.f32 %v3319_v8, 0.0  ;;  %v5459_v16 = vpop.f32.mrf.mxu1  ;;  %v3324_v4 = vadd.f32 %v7133_v56, %v3302_v45  ;;  %v3433_v32 = vadd.f32 %v3396_v10, %v3337_v17  ;;  %v5606_v45 = vld [vmem:[%s7489_s17 + $0x10] sm:$0xff]  }
 0x405   : > { %v3449_v49 = vmax.f32 %v3442_v36, %v3428_v48  ;;  %v3322_v54 = vadd.f32 %v7133_v56, %v3300_v52  ;;  %v3303_v2 = vadd.f32 %v5459_v16, %v3287_v21  ;;  %v3304_v39 = vadd.f32 %v5459_v16, %v3288_v24  ;;  %5464 = vmatprep.mubr.msk.bf16.mxu0 %vm2925_vm1, %v3504_v46  ;;  %v5609_v24 = vld [vmem:[%s7489_s17 + $0x28] sm:$0xff]   ;;  %v5610_v21 = vld [vmem:[%s7489_s17] sm:$0xff]   ;;  %v7241_v52 = vld [vmem:[%s7489_s17 + $0x58] sm:$0xff]  }
 0x406   : > { %v3431_v29 = vadd.f32 %v7142_v58, %v3335_v9  ;;  %5476 = vmatprep.mubr.msk.bf16.mxu1 %vm2925_vm1, %v3504_v46  ;;  %v3261_v31 = vpop.f32.mrf.mxu1  ;;  %v3493_v58 = vadd.f32 %v7168_v11, %v3478_v33  ;;  %v3340_v61 = vmax.f32 %v3324_v4, 0.0  ;;  %v5611_v36 = vld [vmem:[%s7489_s17 + $0x20] sm:$0xff]  }
 0x407   : > { %v3479_v30 = vmul.f32 %v7152_v14, %v3449_v49  ;;  %v3338_v42 = vmax.f32 %v3322_v54, 0.0  ;;  %v3325_v44 = vadd.f32 %v7133_v56, %v3303_v2  ;;  %v3326_v57 = vadd.f32 %v7133_v56, %v3304_v39 }
 0x408   : > { %v3443_v40 = vmax.f32 %v3431_v29, %v3432_v47  ;;  %v3301_v59 = vadd.f32 %v3285_v55, %v3261_v31  ;;  %v3436_v7 = vadd.f32 %v3411_v15, %v3340_v61 }
 0x409   : > { %v3494_v38 = vadd.f32 %v7168_v11, %v3479_v30  ;;  %v3434_v20 = vadd.f32 %v3401_v0, %v3338_v42  ;;  %v3341_v60 = vmax.f32 %v3325_v44, 0.0  ;;  %v3342_v63 = vmax.f32 %v3326_v57, 0.0 }
 0x40a   : > { %v3450_v51 = vmax.f32 %v3443_v40, %v3430_v37  ;;  %v3323_v41 = vadd.f32 %v7133_v56, %v3301_v59  ;;  %v5008_v40 = vld [vmem:[%s7488_s16] ss:$0 sm:$0xff] }
 0x40b   : > { %v3505_v23 = vpack.c.bf16 %v3494_v38, %v3493_v58  ;;  %v3444_v48 = vmax.f32 %v3433_v32, %v3434_v20  ;;  %v3437_v10 = vadd.f32 %v3416_v62, %v3341_v60  ;;  %v3438_v18 = vadd.f32 %v3421_v1, %v3342_v63 }
 0x40c   : > { %v3339_v26 = vmax.f32 %v3323_v41, 0.0  ;;  %v3480_v28 = vmul.f32 %v7152_v14, %v3450_v51 }
 0x40d   : > { %v3451_v0 = vmax.f32 %v3444_v48, %v3432_v47  ;;  %5465 = vmatmul.mubr.msk.bf16.vlgmr.msra.gmra.mxu0 %vm2925_vm1, %v3505_v23  ;;  %5477 = vmatmul.mubr.msk.bf16.vlgmr.msra.gmra.mxu1 %vm2925_vm1, %v3505_v23  ;;  %v3446_v5 = vmax.f32 %v3437_v10, %v3438_v18 }
 0x40e   : > { %v3435_v56 = vadd.f32 %v3406_v35, %v3339_v26  ;;  %5485 = vmatpush3.bf16.msra.mxu0 %v7097_v19  ;;  %v3495_v34 = vadd.f32 %v7168_v11, %v3480_v28 }
 0x40f   : > { %v3481_v22 = vmul.f32 %v7152_v14, %v3451_v0  ;;  %5486 = vmatprep.subr.bf16.mxu0 %v5603_v13  ;;  %v3453_v50 = vmax.f32 %v3446_v5, %v3436_v7 }
 0x410   : > { %v3445_v53 = vmax.f32 %v3435_v56, %v3436_v7 }
 0x411   : > { %v3496_v3 = vadd.f32 %v7168_v11, %v3481_v22  ;;  %v3483_v12 = vmul.f32 %v7152_v14, %v3453_v50 }
 0x412   : > { %v3452_v55 = vmax.f32 %v3445_v53, %v3434_v20  ;;  %5487 = vmatpush3.bf16.msra.mxu0 %v5603_v13 }
 0x413   : > { %v3506_v37 = vpack.c.bf16 %v3496_v3, %v3495_v34  ;;  %v3498_v25 = vadd.f32 %v7168_v11, %v3483_v12 }
 0x414   : > { %v3482_v43 = vmul.f32 %v7152_v14, %v3452_v55  ;;  %v5604_v14 = vld [vmem:[%s7489_s17 + $0x18] sm:$0xff]  }
 0x415   : > { %5468 = vmatprep.mubr.msk.bf16.mxu0 %vm2925_vm1, %v3506_v37  ;;  %5480 = vmatprep.mubr.msk.bf16.mxu1 %vm2925_vm1, %v3506_v37 }
 0x416   : > { %v3497_v19 = vadd.f32 %v7168_v11, %v3482_v43  ;;  %v5605_v11 = vld [vmem:[%s7489_s17 + $0x38] sm:$0xff]   ;;  %5496 = vmatprep.subr.bf16.mxu1 %v5604_v14 }
 0x417   : > { %5512 = vmatprep.subr.bf16.mxu0 %v5605_v11  ;;  %5497 = vmatpush3.bf16.msra.mxu1 %v5604_v14  ;;  %v5613_v14 = vld [vmem:[%s7489_s17 + $0x50] sm:$0xff]  }
 0x418   : > { %v3507_v8 = vpack.c.bf16 %v3498_v25, %v3497_v19  ;;  %5498 = vmatprep.subr.bf16.mxu1 %v5606_v45 }
 0x41a   : > { %5469 = vmatmul.mubr.msk.bf16.gmra.mxu0 %vm2925_vm1, %v3507_v8  ;;  %5481 = vmatmul.mubr.msk.bf16.gmra.mxu1 %vm2925_vm1, %v3507_v8 }
 0x41b   : > { %5488 = vmatprep.mubr.msk.bf16.mxu0 %vm2925_vm1, %v3504_v46  ;;  %5499 = vmatpush3.bf16.msra.mxu1 %v5606_v45 }
 0x41c   : > { %5500 = vmatprep.subr.bf16.mxu1 %v5608_v27 }
 0x41f   : > { %5501 = vmatpush3.bf16.msra.mxu1 %v5608_v27 }
 0x420   : > { %5502 = vmatprep.subr.bf16.mxu1 %v5610_v21 }
 0x422   : > { %5489 = vmatmul.mubr.msk.bf16.vlgmr.msra.gmra.mxu0 %vm2925_vm1, %v3505_v23 }
 0x423   : > { %5492 = vmatprep.mubr.msk.bf16.mxu0 %vm2925_vm1, %v3506_v37  ;;  %5513 = vmatpush3.bf16.msra.mxu0 %v5605_v11 }
 0x424   : > { %5514 = vmatprep.subr.bf16.mxu0 %v5607_v6  ;;  %5503 = vmatpush3.bf16.msra.mxu1 %v5610_v21  ;;  %v5614_v21 = vld [vmem:[%s7489_s17 + $0x48] sm:$0xff]  }
 0x425   : > { %5528 = vmatprep.subr.bf16.mxu1 %v7241_v52 }
 0x427   : > { %5515 = vmatpush3.bf16.msra.mxu0 %v5607_v6 }
 0x428   : > { %5516 = vmatprep.subr.bf16.mxu0 %v5609_v24 }
 0x42a   : > { %5493 = vmatmul.mubr.msk.bf16.gmra.mxu0 %vm2925_vm1, %v3507_v8 }
 0x42b   : > { %5517 = vmatpush3.bf16.msra.mxu0 %v5609_v24 }
 0x42c   : > { %5518 = vmatprep.subr.bf16.mxu0 %v5611_v36 }
 0x42f   : > { %5519 = vmatpush3.bf16.msra.mxu0 %v5611_v36 }
 0x4cd   : > { %v5466_v35 = vpop.f32.mrf.mxu0  ;;  %v5478_v47 = vpop.f32.mrf.mxu1 }
 0x4cf   : > { %v3566_v17 = vpop.f32.mrf.mxu0  ;;  %v3647_v9 = vpop.f32.mrf.mxu1 }
 0x4d0   : > { %v3759_v59 = vadd.f32 %v3647_v9, %v3566_v17  ;;  %v5621_v9 = vld [vmem:[%s7491_s19 + $0x34] ss:$8 sps:$4 sm:$0xff]  }
 0x4d1   : > { %v5467_v16 = vpop.f32.mrf.mxu0  ;;  %v5479_v46 = vpop.f32.mrf.mxu1  ;;  %4275 = vmatprep.subr.bf16.mxu0 %v5621_v9 }
 0x4d2   : > { %v3762_v63 = vadd.f32 %v5479_v46, %v5466_v35  ;;  %v5615_v35 = vld [vmem:[%s7489_s17 + $0x40] sm:$0xff]   ;;  %v5619_v46 = vld [vmem:[%s7491_s19 + $0x30] ss:$8 sps:$4 sm:$0xff]  }
 0x4d3   : > { %v3569_v15 = vpop.f32.mrf.mxu0  ;;  %v3650_v33 = vpop.f32.mrf.mxu1 }
 0x4d4   : > { %v3760_v31 = vadd.f32 %v3650_v33, %v3566_v17  ;;  %v3761_v58 = vadd.f32 %v5478_v47, %v3569_v15  ;;  %v7274_v47 = vld [vmem:[%s7492_s20 + $0x34] ss:$8 sps:$4 sm:$0xff]   ;;  %v7279_v17 = vld [vmem:[%s7492_s20 + $0x30] ss:$8 sps:$4 sm:$0xff]   ;;  %v7297_v15 = vld [vmem:[%s7492_s20 + $0x20] ss:$8 sps:$4 sm:$0xff]  }
 0x4d5   : > { %v5627_v33 = vld [vmem:[%s7491_s19 + $0x24] ss:$8 sps:$4 sm:$0xff]  }
 0x4da   : > { %v5470_v49 = vpop.f32.mrf.mxu0  ;;  %v5482_v54 = vpop.f32.mrf.mxu1 }
 0x4dc   : > { %v3582_v2 = vpop.f32.mrf.mxu0  ;;  %v3663_v4 = vpop.f32.mrf.mxu1 }
 0x4dd   : > { %v3763_v5 = vadd.f32 %v5467_v16, %v3663_v4  ;;  %v7289_v16 = vld [vmem:[%s7492_s20 + $0x24] ss:$8 sps:$4 sm:$0xff]  }
 0x4de   : > { %v5471_v29 = vpop.f32.mrf.mxu0  ;;  %v5483_v42 = vpop.f32.mrf.mxu1  ;;  %v7325_v4 = vld [vmem:[%s7492_s20 + $0x4] ss:$8 sps:$4 sm:$0xff]  }
 0x4df   : > { %v3766_v0 = vadd.f32 %v5483_v42, %v5470_v49  ;;  %v7307_v49 = vld [vmem:[%s7492_s20 + $0x14] ss:$8 sps:$4 sm:$0xff]   ;;  %v5637_v42 = vld [vmem:[%s7491_s19] ss:$8 sps:$4 sm:$0xff]  }
 0x4e0   : > { %v3585_v39 = vpop.f32.mrf.mxu0  ;;  %v3666_v38 = vpop.f32.mrf.mxu1  ;;  %v5633_v29 = vld [vmem:[%s7491_s19 + $0x14] ss:$8 sps:$4 sm:$0xff]  }
 0x4e1   : > { %v3764_v41 = vadd.f32 %v3666_v38, %v3582_v2  ;;  %v3765_v23 = vadd.f32 %v5482_v54, %v3585_v39  ;;  %v5625_v54 = vld [vmem:[%s7491_s19 + $0x20] ss:$8 sps:$4 sm:$0xff]   ;;  %v7315_v2 = vld [vmem:[%s7492_s20 + $0x10] ss:$8 sps:$4 sm:$0xff]  }
 0x4e2   : > { %v5490_v30 = vpop.f32.mrf.mxu0  ;;  %v5631_v39 = vld [vmem:[%s7491_s19 + $0x10] ss:$8 sps:$4 sm:$0xff]  }
 0x4e3   : > { %v3768_v44 = vadd.f32 %v5490_v30, %v3760_v31  ;;  %v7333_v31 = vld [vmem:[%s7492_s20] ss:$8 sps:$4 sm:$0xff]   ;;  %v5639_v30 = vld [vmem:[%s7491_s19 + $0x4] ss:$8 sps:$4 sm:$0xff]  }
 0x4e4   : > { %v3729_v32 = vpop.f32.mrf.mxu0 }
 0x4e5   : > { %v3782_v20 = vadd.f32 %v5008_v40, %v3768_v44 }
 0x4e6   : > { %v5491_v57 = vpop.f32.mrf.mxu0 }
 0x4e7   : > { %v3769_v62 = vadd.f32 %v5491_v57, %v3761_v58  ;;  %v3790_v48 = vmax.f32 %v3782_v20, 0.0 }
 0x4e8   : > { %v3731_v60 = vpop.f32.mrf.mxu0 }
 0x4e9   : > { %v3767_v51 = vadd.f32 %v3759_v59, %v3731_v60  ;;  %v3783_v13 = vadd.f32 %v5008_v40, %v3769_v62 }
 0x4ea   : > { %v5494_v61 = vpop.f32.mrf.mxu0 }
 0x4eb   : > { %v3781_v1 = vadd.f32 %v5008_v40, %v3767_v51  ;;  %v3772_v26 = vadd.f32 %v5494_v61, %v3764_v41  ;;  %v3791_v3 = vmax.f32 %v3783_v13, 0.0 }
 0x4ec   : > { %v3744_v10 = vpop.f32.mrf.mxu0 }
 0x4ed   : > { %v3789_v18 = vmax.f32 %v3781_v1, 0.0  ;;  %v3770_v28 = vadd.f32 %v3762_v63, %v3744_v10  ;;  %v3786_v55 = vadd.f32 %v5008_v40, %v3772_v26 }
 0x4ee   : > { %v5495_v7 = vpop.f32.mrf.mxu0 }
 0x4ef   : > { %v3806_v56 = vpack.c.bf16 %v3790_v48, %v3789_v18  ;;  %v3784_v22 = vadd.f32 %v5008_v40, %v3770_v28  ;;  %v3773_v50 = vadd.f32 %v5495_v7, %v3765_v23  ;;  %v3774_v53 = vadd.f32 %v5495_v7, %v3766_v0 }
 0x4f0   : > { %v3747_v34 = vpop.f32.mrf.mxu0  ;;  %v3794_v11 = vmax.f32 %v3786_v55, 0.0 }
 0x4f1   : > { %v3792_v12 = vmax.f32 %v3784_v22, 0.0  ;;  %v3771_v37 = vadd.f32 %v3763_v5, %v3747_v34  ;;  %5504 = vmatprep.mubr.msk.bf16.mxu1 %vm3834_vm2, %v3806_v56  ;;  %5520 = vmatprep.mubr.msk.bf16.mxu0 %vm3834_vm2, %v3806_v56  ;;  %v3787_v19 = vadd.f32 %v5008_v40, %v3773_v50  ;;  %v3788_v25 = vadd.f32 %v5008_v40, %v3774_v53  ;;  %v5049_v53 = vld [vmem:[%s7490_s18] ss:$0 sm:$0xff] }
 0x4f3   : > { %v3807_v43 = vpack.c.bf16 %v3792_v12, %v3791_v3  ;;  %v3785_v8 = vadd.f32 %v5008_v40, %v3771_v37  ;;  %v3795_v6 = vmax.f32 %v3787_v19, 0.0  ;;  %v3796_v27 = vmax.f32 %v3788_v25, 0.0  ;;  %v4157_v25 = vpop.permute.xlu0 %4156 }
 0x4f5   : > { %v3793_v45 = vmax.f32 %v3785_v8, 0.0  ;;  %5505 = vmatmul.mubr.msk.bf16.vlgmr.msra.gmra.mxu1 %vm3834_vm2, %v3807_v43  ;;  %5521 = vmatmul.mubr.msk.bf16.vlgmr.msra.gmra.mxu0 %vm3834_vm2, %v3807_v43  ;;  %v3809_v36 = vpack.c.bf16 %v3796_v27, %v3795_v6  ;;  %v4162_v6 = vpop.permute.xlu1 %4161 }
 0x4f6   : > { %5529 = vmatpush3.bf16.msra.mxu1 %v7241_v52  ;;  %v7572_v52 = vmov 0   ;;  %4276 = vmatpush1.bf16.msra.mxu0 %v5619_v46 }
 0x4f7   : > { %v3808_v24 = vpack.c.bf16 %v3794_v11, %v3793_v45  ;;  %5530 = vmatprep.subr.bf16.mxu1 %v5613_v14  ;;  %4277 = vmatprep.subr.bf16.mxu0 %v5627_v33 }
 0x4f9   : > { %5508 = vmatprep.mubr.msk.bf16.mxu1 %vm3834_vm2, %v3808_v24  ;;  %5524 = vmatprep.mubr.msk.bf16.mxu0 %vm3834_vm2, %v3808_v24 }
 0x4fa   : > { %5531 = vmatpush3.bf16.msra.mxu1 %v5613_v14  ;;  %4278 = vmatpush1.bf16.msra.mxu0 %v5625_v54 }
 0x4fb   : > { %5532 = vmatprep.subr.bf16.mxu1 %v5614_v21  ;;  %4279 = vmatprep.subr.bf16.mxu0 %v5633_v29 }
 0x4fd   : > { %5509 = vmatmul.mubr.msk.bf16.gmra.mxu1 %vm3834_vm2, %v3809_v36  ;;  %5525 = vmatmul.mubr.msk.bf16.gmra.mxu0 %vm3834_vm2, %v3809_v36 }
 0x4fe   : > { %5533 = vmatpush3.bf16.msra.mxu1 %v5614_v21  ;;  %5536 = vmatprep.mubr.msk.bf16.mxu1 %vm3834_vm2, %v3806_v56 }
 0x4ff   : > { %5534 = vmatprep.subr.bf16.mxu1 %v5615_v35  ;;  %4299 = vmatprep.mubr.bf16.mxu0 %v7572_v52 }
 0x500   : > { %4280 = vmatpush1.bf16.msra.mxu0 %v5631_v39 }
 0x501   : > { %4281 = vmatprep.subr.bf16.mxu0 %v5639_v30  ;;  %v4147_v30 = vpop.permute.xlu0 %4146 }
 0x502   : > { %5535 = vmatpush3.bf16.msra.mxu1 %v5615_v35 }
 0x503   : > { %4389 = vmatprep.subr.bf16.mxu1 %v7274_v47 }
 0x504   : > { %4282 = vmatpush1.bf16.msra.mxu0 %v5637_v42 }
 0x505   : > { %5537 = vmatmul.mubr.msk.bf16.vlgmr.msra.gmra.mxu1 %vm3834_vm2, %v3807_v43  ;;  %4464 = vmatprep.subr.bf16.mxu0 %v7274_v47 }
 0x506   : > { %5540 = vmatprep.mubr.msk.bf16.mxu1 %vm3834_vm2, %v3808_v24  ;;  %4390 = vmatpush1.bf16.msra.mxu1 %v7279_v17 }
 0x507   : > { %4391 = vmatprep.subr.bf16.mxu1 %v7289_v16 }
 0x50a   : > { %4392 = vmatpush1.bf16.msra.mxu1 %v7297_v15 }
 0x50b   : > { %4393 = vmatprep.subr.bf16.mxu1 %v7307_v49 }
 0x50d   : > { %5541 = vmatmul.mubr.msk.bf16.gmra.mxu1 %vm3834_vm2, %v3809_v36 }
 0x50e   : > { %4413 = vmatprep.mubr.bf16.mxu1 %v7572_v52  ;;  %4394 = vmatpush1.bf16.msra.mxu1 %v7315_v2 }
 0x50f   : > { %4395 = vmatprep.subr.bf16.mxu1 %v7325_v4 }
 0x512   : > { %4396 = vmatpush1.bf16.msra.mxu1 %v7333_v31 }
 0x513   : > { %4539 = vmatprep.subr.bf16.mxu1 %v7274_v47 }
 0x515   : > { %4414 = vmatmul.mubr.bf16.vlgmr.msra.gmra.mxu1 %v7572_v52 }
 0x516   : > { %4540 = vmatpush1.bf16.msra.mxu1 %v7279_v17  ;;  %4563 = vmatprep.mubr.bf16.mxu1 %v7572_v52 }
 0x517   : > { %4541 = vmatprep.subr.bf16.mxu1 %v7289_v16 }
 0x51a   : > { %4542 = vmatpush1.bf16.msra.mxu1 %v7297_v15 }
 0x51b   : > { %4543 = vmatprep.subr.bf16.mxu1 %v7307_v49 }
 0x51e   : > { %4544 = vmatpush1.bf16.msra.mxu1 %v7315_v2 }
 0x51f   : > { %4545 = vmatprep.subr.bf16.mxu1 %v7325_v4 }
 0x522   : > { %4546 = vmatpush1.bf16.msra.mxu1 %v7333_v31 }
 0x5b5   : > { %v5506_v44 = vpop.f32.mrf.mxu1  ;;  %v5522_v32 = vpop.f32.mrf.mxu0 }
 0x5b7   : > { %v3881_v40 = vpop.f32.mrf.mxu1  ;;  %v3978_v57 = vpop.f32.mrf.mxu0 }
 0x5b8   : > { %v4106_v7 = vadd.f32 %v3978_v57, %v3881_v40 }
 0x5b9   : > { %v5507_v59 = vpop.f32.mrf.mxu1  ;;  %v5523_v58 = vpop.f32.mrf.mxu0 }
 0x5ba   : > { %v4109_v37 = vadd.f32 %v5523_v58, %v5506_v44 }
 0x5bb   : > { %v3884_v38 = vpop.f32.mrf.mxu1  ;;  %v3981_v20 = vpop.f32.mrf.mxu0 }
 0x5bc   : > { %v4108_v26 = vadd.f32 %v5522_v32, %v3884_v38  ;;  %v4107_v5 = vadd.f32 %v3981_v20, %v3881_v40 }
 0x5bd   : > { %v5510_v60 = vpop.f32.mrf.mxu1  ;;  %v5526_v62 = vpop.f32.mrf.mxu0 }
 0x5bf   : > { %v3897_v51 = vpop.f32.mrf.mxu1  ;;  %v3994_v61 = vpop.f32.mrf.mxu0 }
 0x5c0   : > { %v4110_v63 = vadd.f32 %v5507_v59, %v3994_v61  ;;  %v4152_v59 = vpop.permute.xlu1 %4151 }
 0x5c1   : > { %v5511_v41 = vpop.f32.mrf.mxu1  ;;  %v5527_v1 = vpop.f32.mrf.mxu0 }
 0x5c2   : > { %v4113_v23 = vadd.f32 %v5527_v1, %v5510_v60  ;;  %v4209_v1 = vld [vmem:[%s7493_s21] sm:$0x3] }
 0x5c3   : > { %v3900_v48 = vpop.f32.mrf.mxu1  ;;  %v3997_v28 = vpop.f32.mrf.mxu0 }
 0x5c4   : > { %v4112_v10 = vadd.f32 %v5526_v62, %v3900_v48  ;;  %v4111_v50 = vadd.f32 %v3997_v28, %v3897_v51  ;;  %v7574_v28 = vld [vmem:[#allocation7_spill] sm:$0xff] }
 0x5c5   : > { %v5538_v13 = vpop.f32.mrf.mxu1 }
 0x5c6   : > { %v4115_v34 = vadd.f32 %v5538_v13, %v4107_v5 }
 0x5c7   : > { %v4076_v18 = vpop.f32.mrf.mxu1 }
 0x5c8   : > { %v4129_v14 = vadd.f32 %v5049_v53, %v4115_v34  ;;  %v7575_v34 = vld [vmem:[#allocation10_spill] sm:$0xff] }
 0x5c9   : > { %v5539_v0 = vpop.f32.mrf.mxu1 }
 0x5ca   : > { %v4116_v56 = vadd.f32 %v5539_v0, %v4108_v26  ;;  %v4137_v33 = vmax.f32 %v4129_v14, 0.0  ;;  %v4217_v0 = vsub.s32 1, %v7574_v28 }
 0x5cb   : > { %v4078_v22 = vpop.f32.mrf.mxu1 }
 0x5cc   : > { %v4114_v3 = vadd.f32 %v4106_v7, %v4078_v22  ;;  %v4130_v55 = vadd.f32 %v5049_v53, %v4116_v56  ;;  %v4185_v58 = vadd.f32 %v4152_v59, %v4137_v33  ;;  %v4167_v33 = vpop.permute.xlu1 %4166 }
 0x5cd   : > { %v5542_v12 = vpop.f32.mrf.mxu1 }
 0x5ce   : > { %v4128_v43 = vadd.f32 %v5049_v53, %v4114_v3  ;;  %v4119_v19 = vadd.f32 %v5542_v12, %v4111_v50  ;;  %v4138_v27 = vmax.f32 %v4130_v55, 0.0  ;;  %v7576_v3 = vld [vmem:[#allocation11_spill] sm:$0xff] }
 0x5cf   : > { %v4091_v8 = vpop.f32.mrf.mxu1  ;;  %v3459_v55 = vmax.f32 %v7576_v3, %v7575_v34 }
 0x5d0   : > { %v7357_v11 = vadd.f32 %v5049_v53, %v4119_v19  ;;  %v4117_v45 = vadd.f32 %v4109_v37, %v4091_v8  ;;  %v4136_v21 = vmax.f32 %v4128_v43, 0.0  ;;  %v4186_v44 = vadd.f32 %v4157_v25, %v4138_v27  ;;  %v7577_v43 = vld [vmem:[#allocation9_spill] sm:$0xff]  ;;  %v7579_v8 = vld [vmem:[#allocation14_spill] sm:$0xff] }
 0x5d1   : > { %v5543_v24 = vpop.f32.mrf.mxu1  ;;  %v3466_v19 = vmax.f32 %v3459_v55, %v7577_v43  ;;  %v7578_v25 = vld [vmem:[#allocation13_spill] sm:$0xff] }
 0x5d2   : > { %v4131_v36 = vadd.f32 %v5049_v53, %v4117_v45  ;;  %v4120_v35 = vadd.f32 %v5543_v24, %v4112_v10  ;;  %v4121_v9 = vadd.f32 %v5543_v24, %v4113_v23  ;;  %v4184_v32 = vadd.f32 %v4147_v30, %v4136_v21  ;;  %v7573_v23 = vld [vmem:[#allocation8_spill] sm:$0xff] }
 0x5d3   : > { %v4094_v46 = vpop.f32.mrf.mxu1  ;;  %v7382_v48 = vrot.slane %v4209_v1, %v7573_v23  ;;  %v3461_v14 = vmax.f32 %v7579_v8, %v7578_v25  ;;  %v7580_v45 = vld [vmem:[#allocation12_spill] sm:$0xff] }
 0x5d4   : > { %v4139_v54 = vmax.f32 %v4131_v36, 0.0  ;;  %v7359_v29 = vadd.f32 %v5049_v53, %v4120_v35  ;;  %v4118_v39 = vadd.f32 %v4110_v63, %v4094_v46  ;;  %v7361_v42 = vadd.f32 %v5049_v53, %v4121_v9 }
 0x5d5   : > { %v4192_v20 = vmax.f32 %v4184_v32, %v4185_v58  ;;  %v4415_v51 = vpop.f32.mrf.mxu1 }
 0x5d6   : > { %v7363_v40 = vadd.f32 %v4162_v6, %v4139_v54  ;;  %v7365_v57 = vadd.f32 %v5049_v53, %v4118_v39  ;;  %v3468_v6 = vmax.f32 %v3461_v14, %v7580_v45  ;;  %v4141_v54 = vmax.f32 %v7357_v11, 0.0 }
 0x5d7   : > { %v4417_v61 = vpop.f32.mrf.mxu1  ;;  %v4142_v30 = vmax.f32 %v7359_v29, 0.0 }
 0x5d8   : > { %v4193_v38 = vmax.f32 %v4186_v44, %v7363_v40  ;;  %v4140_v46 = vmax.f32 %v7365_v57, 0.0 }
 0x5d9   : > { %v4419_v63 = vpop.f32.mrf.mxu1 }
 0x5da   : > { %v4196_v60 = vmax.f32 %v4193_v38, %v4185_v58  ;;  %v4188_v44 = vadd.f32 %v4167_v33, %v4140_v46 }
 0x5db   : > { %v4420_v41 = vpop.f32.mrf.mxu1 }
 0x5dc   : > { %v4207_v62 = vpack.c.bf16 %v4196_v60, %v4192_v20  ;;  %v4143_v20 = vmax.f32 %v7361_v42, 0.0  ;;  %v4177_v60 = vpop.permute.xlu1 %4176 }
 0x5de   : > { %5058 = vmatmul.mubr.msk.bf16.vlgmr.msra.gmra.mxu0 %vm3834_vm2, %v4207_v62 }
 0x5df   : > { %4309 = vmatprep.mubr.bf16.mxu0 %v7572_v52  ;;  %4465 = vmatpush1.bf16.msra.mxu0 %v7279_v17 }
 0x5e0   : > { %4466 = vmatprep.subr.bf16.mxu0 %v7289_v16 }
 0x5e3   : > { %4467 = vmatpush1.bf16.msra.mxu0 %v7297_v15 }
 0x5e4   : > { %4468 = vmatprep.subr.bf16.mxu0 %v7307_v49 }
 0x5e7   : > { %4469 = vmatpush1.bf16.msra.mxu0 %v7315_v2 }
 0x5e8   : > { %4470 = vmatprep.subr.bf16.mxu0 %v7325_v4 }
 0x5eb   : > { %4471 = vmatpush1.bf16.msra.mxu0 %v7333_v31 }
 0x5ec   : > { %4614 = vmatprep.subr.bf16.mxu0 %v7274_v47  ;;  %v7386_v47 = vrot.slane %v4209_v1, %v4217_v0 }
 0x69e   : > { %v4301_v10 = vpop.f32.mrf.mxu0 }
 0x69f   : > { %v4302_v13 = vadd.f32 %v4301_v10, %v7382_v48 }
 0x6a0   : > { %v4303_v7 = vpop.f32.mrf.mxu0 }
 0x6a1   : > { %v4422_v18 = vadd.f32 %v4415_v51, %v4302_v13  ;;  %v4304_v5 = vadd.f32 %v4303_v7, %v7386_v47 }
 0x6a2   : > { %v4305_v42 = vpop.f32.mrf.mxu0 }
 0x6a3   : > { %v5068_v26 = vmul.f32 -1.442695, %v4422_v18  ;;  %v4423_v56 = vadd.f32 %v4417_v61, %v4304_v5  ;;  %v4190_v61 = vadd.f32 %v4177_v60, %v4142_v30 }
 0x6a5   : > { %5644 = vpow2.f32 %v5068_v26  ;;  %v5069_v27 = vmul.f32 -1.442695, %v4423_v56 }
 0x6a6   : > { %5646 = vtanh.f32 %v4423_v56 }
 0x6b2   : > { %v5645_v22 = vpop.eup %5644 }
 0x6b3   : > { %v4427_v50 = vadd.f32 1.0, %v5645_v22  ;;  %v5647_v53 = vpop.eup %5646 }
 0x6b5   : > { %5648 = vrcp.f32 %v4427_v50 }
 0x6b6   : > { %5650 = vpow2.f32 %v5069_v27 }
 0x6c2   : > { %v5649_v12 = vpop.eup %5648 }
 0x6c3   : > { %v4438_v37 = vmul.f32 %v5649_v12, %v5647_v53  ;;  %v5651_v24 = vpop.eup %5650  ;;  %v4437_v36 = vmul.f32 0.0, %v5649_v12 }
 0x6c4   : > { %v4434_v21 = vadd.f32 1.0, %v5651_v24 }
 0x6c5   : > { %4440 = vrot.lane.b32.xlu0 %v4438_v37, %s5717_s7 }
 0x6c6   : > { %5652 = vrcp.f32 %v4434_v21 }
 0x6c9   : > { %4171 = vperm.xlu0 %5584, %v3466_v19  }
 0x6cd   : > { %4181 = vperm.xlu0 %5584, %v3468_v6  }
 0x6d3   : > { %v5653_v59 = vpop.eup %5652 }
 0x737   : > { %v4441_v35 = vpop.permute.xlu0 %4440 }
 0x738   : > { %v7396_v9 = vadd.f32 %v4441_v35, %v4437_v36 }
 0x73a   : > { %5654 = vtanh.f32 %v7396_v9 }
 0x744   : > { %v4172_v39 = vpop.permute.xlu0 %4171 }
 0x745   : > { %v4189_v32 = vadd.f32 %v4172_v39, %v4141_v54 }
 0x747   : > { %v5655_v58 = vpop.eup %5654  ;;  %v4194_v38 = vmax.f32 %v4188_v44, %v4189_v32 }
 0x748   : > { %v4182_v62 = vpop.permute.xlu0 %4181  ;;  %v4445_v51 = vmul.f32 %v5655_v58, %v5653_v59 }
 0x749   : > { %v4191_v63 = vadd.f32 %v4182_v62, %v4143_v20  ;;  %v4197_v11 = vmax.f32 %v4194_v38, %v7363_v40  ;;  %v4307_v40 = vpop.f32.mrf.mxu0 }
 0x74a   : > { %v4449_v41 = vpack.c.bf16 %v4445_v51, %v4445_v51 }
 0x74b   : > { %v4195_v57 = vmax.f32 %v4190_v61, %v4191_v63 }
 0x74c   : > { %4451 = vrot.lane.b32.xlu1 %v4449_v41, %s5717_s7 }
 0x74d   : > { %v4198_v1 = vmax.f32 %v4195_v57, %v4189_v32 }
 0x74f   : > { %v4208_v29 = vpack.c.bf16 %v4198_v1, %v4197_v11 }
 0x751   : > { %5059 = vmatmul.mubr.msk.bf16.gmra.mxu0 %vm3834_vm2, %v4208_v29 }
 0x752   : > { %4488 = vmatprep.mubr.bf16.mxu0 %v7572_v52 }
 0x7be   : > { %v4452_v23 = vpop.permute.xlu1 %4451 }
 0x7bf   : > { %5070 = vmatmul.mubr.msk.bf16.vlgmr.msra.gmra.mxu0 %vm3834_vm2, %v4452_v23 }
 0x7c0   : > { %4615 = vmatpush1.bf16.msra.mxu0 %v7279_v17  ;;  %4638 = vmatprep.mubr.bf16.mxu0 %v7572_v52  ;;  %v4306_v52 = vadd.f32 %v4305_v42, %v7382_v48 }
 0x7c1   : > { %4616 = vmatprep.subr.bf16.mxu0 %v7289_v16 }
 0x7c4   : > { %4617 = vmatpush1.bf16.msra.mxu0 %v7297_v15 }
 0x7c5   : > { %4618 = vmatprep.subr.bf16.mxu0 %v7307_v49 }
 0x7c8   : > { %4619 = vmatpush1.bf16.msra.mxu0 %v7315_v2 }
 0x7c9   : > { %4620 = vmatprep.subr.bf16.mxu0 %v7325_v4  ;;  %v4308_v4 = vadd.f32 %v4307_v40, %v7386_v47 }
 0x7cc   : > { %4621 = vmatpush1.bf16.msra.mxu0 %v7333_v31 }
 0x811   : > { %v4311_v10 = vpop.f32.mrf.mxu0 }
 0x812   : > { %v4312_v14 = vadd.f32 %v4311_v10, %v7382_v48 }
 0x813   : > { %v4313_v13 = vpop.f32.mrf.mxu0 }
 0x814   : > { %v4314_v35 = vadd.f32 %v4313_v13, %v7386_v47 }
 0x815   : > { %v7416_v18 = vpop.f32.mrf.mxu0 }
 0x816   : > { %v4316_v41 = vadd.f32 %v7416_v18, %v7382_v48  ;;  %v5640_v48 = vld [vmem:[%s7494_s22 + $0x18] sm:$0xff]   ;;  %v5718_v18 = vmov 0.0  }
 0x817   : > { %v7418_v17 = vpop.f32.mrf.mxu0  ;;  %5544 = vmatprep.subr.bf16.mxu1 %v5718_v18 }
 0x818   : > { %v4318_v40 = vadd.f32 %v7418_v17, %v7386_v47  ;;  %v5641_v47 = vld [vmem:[%s7494_s22 + $0x10] sm:$0xff]   ;;  %v5642_v17 = vld [vmem:[%s7494_s22 + $0x8] sm:$0xff]  }
 0x87f   : > { %v4490_v16 = vpop.f32.mrf.mxu0 }
 0x880   : > { %v4497_v15 = vadd.f32 %v4490_v16, %v4306_v52 }
 0x881   : > { %v4492_v26 = vpop.f32.mrf.mxu0 }
 0x882   : > { %v5071_v49 = vmul.f32 -1.442695, %v4497_v15  ;;  %v4498_v31 = vadd.f32 %v4492_v26, %v4308_v4 }
 0x883   : > { %v4494_v28 = vpop.f32.mrf.mxu0 }
 0x884   : > { %5656 = vpow2.f32 %v5071_v49  ;;  %v5072_v50 = vmul.f32 -1.442695, %v4498_v31  ;;  %v5643_v49 = vld [vmem:[%s7494_s22] sm:$0xff]  }
 0x885   : > { %v4495_v2 = vpop.f32.mrf.mxu0  ;;  %5658 = vtanh.f32 %v4498_v31 }
 0x891   : > { %v5657_v0 = vpop.eup %5656 }
 0x892   : > { %v4502_v7 = vadd.f32 1.0, %v5657_v0  ;;  %v5659_v5 = vpop.eup %5658 }
 0x894   : > { %5660 = vrcp.f32 %v4502_v7 }
 0x895   : > { %5662 = vpow2.f32 %v5072_v50 }
 0x8a1   : > { %v5661_v56 = vpop.eup %5660 }
 0x8a2   : > { %v4513_v22 = vmul.f32 %v5661_v56, %v5659_v5  ;;  %v5663_v53 = vpop.eup %5662  ;;  %v4512_v3 = vmul.f32 %v5661_v56, %v7396_v9 }
 0x8a3   : > { %v4509_v34 = vadd.f32 1.0, %v5663_v53 }
 0x8a4   : > { %4515 = vrot.lane.b32.xlu0 %v4513_v22, %s5717_s7 }
 0x8a5   : > { %5664 = vrcp.f32 %v4509_v34  ;;  %v5079_v34 = vld [vmem:[%s7495_s23] ss:$0 sm:$0xff] }
 0x8b2   : > { %v5665_v37 = vpop.eup %5664 }
 0x916   : > { %v4516_v55 = vpop.permute.xlu0 %4515 }
 0x917   : > { %v4518_v12 = vadd.f32 %v4516_v55, %v4512_v3 }
 0x919   : > { %5666 = vtanh.f32 %v4518_v12 }
 0x926   : > { %v5667_v43 = vpop.eup %5666 }
 0x927   : > { %v4520_v19 = vmul.f32 %v5667_v43, %v5665_v37  ;;  %v5085_v37 = vld [vmem:[%s7496_s24] ss:$0 sm:$0xff] }
 0x929   : > { %v4524_v25 = vpack.c.bf16 %v4520_v19, %v4520_v19 }
 0x92b   : > { %4526 = vrot.lane.b32.xlu1 %v4524_v25, %s5717_s7 }
 0x99d   : > { %v4527_v8 = vpop.permute.xlu1 %4526 }
 0x99e   : > { %5073 = vmatmul.mubr.msk.bf16.vlgmr.msra.gmra.mxu1 %vm3834_vm2, %v4527_v8 }
 0x99f   : > { %5552 = vmatprep.mubr.msk.bf16.mxu1 %vm5719_vm3, %v5718_v18  ;;  %5545 = vmatpush3.bf16.msra.mxu1 %v5640_v48 }
 0x9a0   : > { %5546 = vmatprep.subr.bf16.mxu1 %v5718_v18 }
 0x9a3   : > { %5547 = vmatpush3.bf16.msra.mxu1 %v5641_v47 }
 0x9a4   : > { %5548 = vmatprep.subr.bf16.mxu1 %v5718_v18 }
 0x9a7   : > { %5549 = vmatpush3.bf16.msra.mxu1 %v5642_v17 }
 0x9a8   : > { %5550 = vmatprep.subr.bf16.mxu1 %v5718_v18 }
 0x9ab   : > { %5551 = vmatpush3.bf16.msra.mxu1 %v5643_v49 }
 0xa5e   : > { %v4565_v45 = vpop.f32.mrf.mxu1 }
 0xa5f   : > { %v4572_v6 = vadd.f32 %v4565_v45, %v4312_v14  ;;  %v5086_v14 = vld [vmem:[#allocation5] ss:$0 sm:$0xff] }
 0xa60   : > { %v4567_v27 = vpop.f32.mrf.mxu1 }
 0xa61   : > { %v5074_v24 = vmul.f32 -1.442695, %v4572_v6  ;;  %v4573_v9 = vadd.f32 %v4567_v27, %v4314_v35 }
 0xa62   : > { %v4569_v21 = vpop.f32.mrf.mxu1 }
 0xa63   : > { %5668 = vpow2.f32 %v5074_v24  ;;  %v5075_v44 = vmul.f32 -1.442695, %v4573_v9 }
 0xa64   : > { %v4570_v36 = vpop.f32.mrf.mxu1  ;;  %5670 = vtanh.f32 %v4573_v9 }
 0xa70   : > { %v5669_v46 = vpop.eup %5668 }
 0xa71   : > { %v4577_v33 = vadd.f32 1.0, %v5669_v46  ;;  %v5671_v54 = vpop.eup %5670 }
 0xa73   : > { %5672 = vrcp.f32 %v4577_v33 }
 0xa74   : > { %5674 = vpow2.f32 %v5075_v44 }
 0xa80   : > { %v5673_v39 = vpop.eup %5672 }
 0xa81   : > { %v4588_v30 = vmul.f32 %v5673_v39, %v5671_v54  ;;  %v5675_v32 = vpop.eup %5674  ;;  %v4587_v58 = vmul.f32 %v5673_v39, %v4518_v12 }
 0xa82   : > { %v4584_v59 = vadd.f32 1.0, %v5675_v32 }
 0xa83   : > { %4590 = vrot.lane.b32.xlu0 %v4588_v30, %s5717_s7 }
 0xa84   : > { %5676 = vrcp.f32 %v4584_v59 }
 0xa91   : > { %v5677_v60 = vpop.eup %5676 }
 0xaf5   : > { %v4591_v38 = vpop.permute.xlu0 %4590 }
 0xaf6   : > { %v4593_v20 = vadd.f32 %v4591_v38, %v4587_v58 }
 0xaf8   : > { %5678 = vtanh.f32 %v4593_v20 }
 0xb05   : > { %v5679_v62 = vpop.eup %5678 }
 0xb06   : > { %v4595_v51 = vmul.f32 %v5679_v62, %v5677_v60 }
 0xb08   : > { %v4599_v61 = vpack.c.bf16 %v4595_v51, %v4595_v51 }
 0xb0a   : > { %4601 = vrot.lane.b32.xlu1 %v4599_v61, %s5717_s7 }
 0xb7c   : > { %v4602_v63 = vpop.permute.xlu1 %4601 }
 0xb7d   : > { %5076 = vmatmul.mubr.msk.bf16.vlgmr.msra.gmra.mxu0 %vm3834_vm2, %v4602_v63 }
 0xc3d   : > { %v4640_v57 = vpop.f32.mrf.mxu0 }
 0xc3e   : > { %v4647_v11 = vadd.f32 %v4640_v57, %v4316_v41 }
 0xc3f   : > { %v4642_v1 = vpop.f32.mrf.mxu0 }
 0xc40   : > { %v5077_v29 = vmul.f32 -1.442695, %v4647_v11  ;;  %v4648_v10 = vadd.f32 %v4642_v1, %v4318_v40 }
 0xc41   : > { %v4644_v23 = vpop.f32.mrf.mxu0 }
 0xc42   : > { %5680 = vpow2.f32 %v5077_v29  ;;  %v5078_v28 = vmul.f32 -1.442695, %v4648_v10 }
 0xc43   : > { %v4645_v42 = vpop.f32.mrf.mxu0  ;;  %5682 = vtanh.f32 %v4648_v10 }
 0xc4f   : > { %v5681_v13 = vpop.eup %5680 }
 0xc50   : > { %v4652_v52 = vadd.f32 1.0, %v5681_v13  ;;  %v5683_v16 = vpop.eup %5682 }
 0xc52   : > { %5684 = vrcp.f32 %v4652_v52 }
 0xc53   : > { %5686 = vpow2.f32 %v5078_v28 }
 0xc5f   : > { %v5685_v15 = vpop.eup %5684 }
 0xc60   : > { %v4663_v26 = vmul.f32 %v5685_v15, %v5683_v16  ;;  %v5687_v2 = vpop.eup %5686  ;;  %v4662_v31 = vmul.f32 %v5685_v15, %v4593_v20 }
 0xc61   : > { %v4659_v4 = vadd.f32 1.0, %v5687_v2 }
 0xc62   : > { %4665 = vrot.lane.b32.xlu0 %v4663_v26, %s5717_s7 }
 0xc63   : > { %5688 = vrcp.f32 %v4659_v4 }
 0xc70   : > { %v5689_v5 = vpop.eup %5688 }
 0xcd4   : > { %v4666_v0 = vpop.permute.xlu0 %4665 }
 0xcd5   : > { %v4668_v7 = vadd.f32 %v4666_v0, %v4662_v31 }
 0xcd7   : > { %5690 = vtanh.f32 %v4668_v7 }
 0xce4   : > { %v5691_v56 = vpop.eup %5690 }
 0xce5   : > { %v4670_v22 = vmul.f32 %v5691_v56, %v5689_v5 }
 0xce7   : > { %v4679_v50 = vpack.c.bf16 %v4670_v22, %v4670_v22 }
 0xce9   : > { %4688 = vrot.lane.b32.xlu1 %v4679_v50, %s5717_s7  ;;  %s4845_s7 = sshll.u32 %s7585_s2, 3 }
 0xcea   : > { %s954_s27 = scalar_lea.vmem %s7497_s26, %s4845_s7 }
 0xd5b   : > { %v4689_v53 = vpop.permute.xlu1 %4688 }
 0xd5c   : > { %5553 = vmatmul.mubr.msk.bf16.vlgmr.msra.gmra.mxu1 %vm3834_vm2, %v4689_v53 }
 0xe1c   : > { %v4751_v3 = vpop.f32.mrf.mxu1 }
 0xe1d   : > { %v4752_v55 = vadd.f32 %v5079_v34, %v4751_v3 }
 0xe1e   : > { %v5554_v12 = vpop.f32.mrf.mxu1 }
 0xe1f   : > { %v4757_v43 = vmax.f32 %v4752_v55, 0.0 }
 0xe20   : > { %v4754_v19 = vpop.f32.mrf.mxu1 }
 0xe21   : > { %v4765_v25 = vmul.f32 %v5085_v37, %v4757_v43 }
 0xe22   : > { %v5555_v8 = vpop.f32.mrf.mxu1 }
 0xe23   : > { %4766 = vadd.xlane.f32.xlu0 %v4765_v25 }
 0xeac   : > { %v4767_v45 = vpop.xlane.xlu0 %4766 }
 0xead   : > { %v4775_v6 = vadd.f32 %v5086_v14, %v4767_v45 }
 0xeaf   : > { %4777 = vst.msk [vmem:[%s954_s27] sm:$0xff] %vm4776_vm4, %v4775_v6 }
 0xeb0 PF: > { %p39_p9 = scmp.ge.s32.totalorder %s5881_s25, 4   ;;  %s7581_s0 = smov %s5710_s10 }
 0xeb1   : > { %s7582_s10 = smov %s5890_s11  ;;  %s7583_s30 = smov %s5881_s25 }
 0xeb2   :  { %41 = sbr.rel (!%p39_p9) target bundleno = 22 (0x16), region = 212 }

</bundles_post_ra>
